<compile_context>
chip_gen: v7x
topology: tpu7x:2x2x1
jax: 0.10.0
libtpu: 0.0.40
codegen_flags: <defaults>
</compile_context>

<pallas_src>
import functools

import jax
import jax.numpy as jnp
import numpy as np
from jax.experimental import pallas as pl
from jax.experimental.pallas import tpu as pltpu


# ---------------------------------------------------------------------------
# Pallas kernel: one (batch, branch) grid step = full branch forward for one
# image. All tensors live in a lane-dense "rows x (W*C)" layout.
# ---------------------------------------------------------------------------
def _rpn_branch_kernel(z_ref, x_ref,
                       mk_ref, sk_ref, bk_ref,
                       ms_ref, ss_ref, bs_ref,
                       wh_ref, sh_ref, bh_ref,
                       o_ref, *, hid):
    f32 = jnp.float32

    def conv3_bn_relu(img, m_banded, scale, bias):
        # img:       (H, W*Cin)              flattened rows
        # m_banded:  (3, W*Cin, Wout*hid)    host-built block-Toeplitz weights
        # scale/bias:(1, Wout*hid)           folded BN, lane-tiled on host
        h_in = img.shape[0]
        h_out = h_in - 2
        acc = jnp.zeros((h_out, m_banded.shape[-1]), f32)
        for kh in range(3):
            acc = acc + jnp.dot(img[kh:kh + h_out, :], m_banded[kh],
                                preferred_element_type=f32)
        return jnp.maximum(acc * scale + bias, 0.0)        # (Hout, Wout*hid)

    # MXU inputs kept f32 to stay tight to the f32 reference; a bf16 cast here
    # is a 2-line change for extra MXU rate on v6e/v7x.
    z = z_ref[0].astype(f32)                               # (Hz, Wz*Cin)
    x = x_ref[0].astype(f32)                               # (Hx, Wx*Cin)

    kf = conv3_bn_relu(z, mk_ref[0], sk_ref[0], bk_ref[0])  # (Hk, Wk*hid)
    sf = conv3_bn_relu(x, ms_ref[0], ss_ref[0], bs_ref[0])  # (Hs, Ws*hid)

    hk = kf.shape[0]
    wk = kf.shape[1] // hid
    hs = sf.shape[0]
    ws = sf.shape[1] // hid
    ho, wo = hs - hk + 1, ws - wk + 1

    # Depthwise cross-correlation in the flattened layout:
    #   acc[i, j*hid+c] += sf[i+u, (j+v)*hid+c] * kf[u, v*hid+c]
    # -> contiguous window slices + lane-broadcast taps; 4 independent partial
    #    accumulators break the 36-deep serial add chain.
    n_parts = 4
    parts = [jnp.zeros((ho, wo * hid), f32) for _ in range(n_parts)]
    tap = 0
    for u in range(hk):
        for v in range(wk):
            win = sf[u:u + ho, v * hid:(v + wo) * hid]            # (Ho, Wo*hid)
            kvec = kf[u:u + 1, v * hid:(v + 1) * hid]             # (1, hid)
            kvec = jnp.concatenate([kvec] * wo, axis=-1)          # (1, Wo*hid)
            parts[tap % n_parts] = parts[tap % n_parts] + win * kvec
            tap += 1
    acc = (parts[0] + parts[1]) + (parts[2] + parts[3])

    # 1x1 head conv as a block-diagonal matmul -> output stays lane-dense.
    # (Generic in head width: out channels = wh.shape[-1] // Wo.)
    y = jnp.dot(acc, wh_ref[0], preferred_element_type=f32)       # (Ho, Wo*hidO)
    y = jnp.maximum(y * sh_ref[0] + bh_ref[0], 0.0)
    o_ref[0, 0] = y.astype(o_ref.dtype)


# ---------------------------------------------------------------------------
# Fused (cls + loc) wrapper. NHWC in / NHWC out, single pallas_call.
# ---------------------------------------------------------------------------
@jax.jit
def latent_depthwise_rpn_nhwc(z_f, x_f, sp):
    """LatentDepthwiseRPN.forward with both branches fused into one kernel."""
    B, Hz, Wz, Cin = z_f.shape
    _, Hx, Wx, _ = x_f.shape
    Hk, Wk = Hz - 2, Wz - 2
    Hs, Ws = Hx - 2, Wx - 2
    Ho, Wo = Hs - Hk + 1, Ws - Wk + 1
    hidden = sp["sk"].shape[-1] // Wk
    hid_out = sp["sh"].shape[-1] // Wo

    # Free host-side flatten into the lane-dense (rows, W*C) layout.
    z2 = z_f.reshape(B, Hz, Wz * Cin)
    x2 = x_f.reshape(B, Hx, Wx * Cin)

    def param_spec(arr):
        shape = arr.shape
        nd = len(shape)
        return pl.BlockSpec((1,) + tuple(shape[1:]),
                            lambda b, r, nd=nd: (r,) + (0,) * (nd - 1))

    ordered = ["Mk", "sk", "bk", "Ms", "ss", "bs", "Wh", "sh", "bh"]
    in_specs = [
        pl.BlockSpec((1, Hz, Wz * Cin), lambda b, r: (b, 0, 0)),
        pl.BlockSpec((1, Hx, Wx * Cin), lambda b, r: (b, 0, 0)),
    ] + [param_spec(sp[k]) for k in ordered]

    out = pl.pallas_call(
        functools.partial(_rpn_branch_kernel, hid=hidden),
        out_shape=jax.ShapeDtypeStruct((B, 2, Ho, Wo * hid_out), jnp.float32),
        grid=(B, 2),                                    # (batch, branch={cls,loc})
        in_specs=in_specs,
        out_specs=pl.BlockSpec((1, 1, Ho, Wo * hid_out),
                               lambda b, r: (b, r, 0, 0)),
        compiler_params=pltpu.CompilerParams(
            dimension_semantics=("parallel", "parallel")),
    )(z2, x2, *[sp[k] for k in ordered])

    out = out.reshape(B, 2, Ho, Wo, hid_out)
    return out[:, 0], out[:, 1]                          # (cls_fea, loc_fea) NHWC


def latent_depthwise_rpn_nchw(z_f_nchw, x_f_nchw, sp):
    """NCHW compatibility wrapper (matches the PyTorch module's I/O layout)."""
    z = jnp.transpose(z_f_nchw, (0, 2, 3, 1))
    x = jnp.transpose(x_f_nchw, (0, 2, 3, 1))
    cls_fea, loc_fea = latent_depthwise_rpn_nhwc(z, x, sp)
    to_nchw = lambda t: jnp.transpose(t, (0, 3, 1, 2))
    return to_nchw(cls_fea), to_nchw(loc_fea)


def multi_latent_rpn(z_fs, x_fs, stacked_params_per_level):
    """MultiLatentRPN.forward: per-level lists of features. NHWC in/out."""
    cls_feas, loc_feas = [], []
    for z_f, x_f, sp in zip(z_fs, x_fs, stacked_params_per_level):
        c, l = latent_depthwise_rpn_nhwc(z_f, x_f, sp)
        cls_feas.append(c)
        loc_feas.append(l)
    return cls_feas, loc_feas


# ---------------------------------------------------------------------------
# Host-side parameter packing (deterministic synthetic weights).
# ---------------------------------------------------------------------------
def _fold_bn(gamma, beta, mean, var, eps=1e-5):
    scale = gamma / jnp.sqrt(var + eps)
    bias = beta - mean * scale
    return scale, bias                                    # (hidden,)


def _banded_conv_weights(w_hwio, w_in):
    """3x3 'valid' conv along a flattened row -> (3, W*Cin, (W-2)*hid)."""
    _, _, cin, hid = w_hwio.shape
    w_out = w_in - 2
    m = np.zeros((3, w_in * cin, w_out * hid), np.float32)
    for kh in range(3):
        for j in range(w_out):
            for kw in range(3):
                m[kh, (j + kw) * cin:(j + kw + 1) * cin,
                  j * hid:(j + 1) * hid] = w_hwio[kh, kw]
    return m


def _block_diag(w, reps):
    """1x1 conv on a flattened row -> block-diagonal (reps*hid, reps*hidO)."""
    hid, hid_out = w.shape
    m = np.zeros((reps * hid, reps * hid_out), np.float32)
    for j in range(reps):
        m[j * hid:(j + 1) * hid, j * hid_out:(j + 1) * hid_out] = w
    return m


def make_branch_params(key, cin, hidden, hz, wz, hx, wx):
    """One LatentDepthwiseXCorr{Cls,Loc} branch, packed for the kernel."""
    ks = jax.random.split(key, 6)
    std = 0.1
    wk_oihw = jax.random.normal(ks[0], (hidden, cin, 3, 3), jnp.float32) * std
    ws_oihw = jax.random.normal(ks[1], (hidden, cin, 3, 3), jnp.float32) * std
    wh_oihw = jax.random.normal(ks[2], (hidden, hidden, 1, 1), jnp.float32) * std

    def bn(k):
        k1, k2, k3, k4 = jax.random.split(k, 4)
        gamma = 1.0 + 0.1 * jax.random.normal(k1, (hidden,), jnp.float32)
        beta = 0.1 * jax.random.normal(k2, (hidden,), jnp.float32)
        mean = 0.1 * jax.random.normal(k3, (hidden,), jnp.float32)
        var = jnp.abs(jax.random.normal(k4, (hidden,), jnp.float32)) + 0.5
        return _fold_bn(gamma, beta, mean, var)

    sk, bk = bn(ks[3])
    ss, bs = bn(ks[4])
    sh, bh = bn(ks[5])

    wk_hwio = np.transpose(np.asarray(wk_oihw), (2, 3, 1, 0))
    ws_hwio = np.transpose(np.asarray(ws_oihw), (2, 3, 1, 0))
    wh_2d = np.asarray(wh_oihw)[:, :, 0, 0].T             # (hid_in, hid_out)

    wk_w = wz - 2                                         # conv_kernel out width
    ws_w = wx - 2                                         # conv_search out width
    wo_w = ws_w - wk_w + 1                                # xcorr / head out width

    def tile_lane(v, reps):                               # (hid,) -> (1, reps*hid)
        return np.tile(np.asarray(v), reps)[None, :].astype(np.float32)

    return {
        # kernel-ready packed parameters (host-side precompute)
        "Mk": jnp.asarray(_banded_conv_weights(wk_hwio, wz)),
        "Ms": jnp.asarray(_banded_conv_weights(ws_hwio, wx)),
        "Wh": jnp.asarray(_block_diag(wh_2d, wo_w)),
        "sk": jnp.asarray(tile_lane(sk, wk_w)), "bk": jnp.asarray(tile_lane(bk, wk_w)),
        "ss": jnp.asarray(tile_lane(ss, ws_w)), "bs": jnp.asarray(tile_lane(bs, ws_w)),
        "sh": jnp.asarray(tile_lane(sh, wo_w)), "bh": jnp.asarray(tile_lane(bh, wo_w)),
        # raw copies, only for the pure-JAX reference check
        "_wk_oihw": wk_oihw, "_ws_oihw": ws_oihw, "_wh_oihw": wh_oihw,
        "_sk": sk, "_bk": bk, "_ss": ss, "_bs": bs, "_sh": sh, "_bh": bh,
    }


def stack_branches(p_cls, p_loc):
    """Stack cls/loc parameters along a leading branch axis for the fused call."""
    keys = ["Mk", "sk", "bk", "Ms", "ss", "bs", "Wh", "sh", "bh"]
    return {k: jnp.stack([p_cls[k], p_loc[k]], axis=0) for k in keys}


# ---------------------------------------------------------------------------
# Pure-JAX reference (independent of the Pallas kernel and of the banded /
# block-diagonal weight packing).
# ---------------------------------------------------------------------------
def reference_branch(z_nchw, x_nchw, p):
    def conv3(inp, w_oihw, scale, bias):
        y = jax.lax.conv_general_dilated(
            inp, w_oihw, (1, 1), "VALID",
            dimension_numbers=("NCHW", "OIHW", "NCHW"))
        y = y * scale.reshape(1, -1, 1, 1) + bias.reshape(1, -1, 1, 1)
        return jnp.maximum(y, 0.0)

    kf = conv3(z_nchw, p["_wk_oihw"], p["_sk"], p["_bk"])
    sf = conv3(x_nchw, p["_ws_oihw"], p["_ss"], p["_bs"])

    B, C, Hk, Wk = kf.shape
    _, _, Hs, Ws = sf.shape
    out = jax.lax.conv_general_dilated(
        sf.reshape(1, B * C, Hs, Ws), kf.reshape(B * C, 1, Hk, Wk),
        (1, 1), "VALID", dimension_numbers=("NCHW", "OIHW", "NCHW"),
        feature_group_count=B * C)
    out = out.reshape(B, C, out.shape[2], out.shape[3])

    y = jax.lax.conv_general_dilated(
        out, p["_wh_oihw"], (1, 1), "VALID",
        dimension_numbers=("NCHW", "OIHW", "NCHW"))
    y = y * p["_sh"].reshape(1, -1, 1, 1) + p["_bh"].reshape(1, -1, 1, 1)
    return jnp.maximum(y, 0.0)


if __name__ == "__main__":
    key = jax.random.PRNGKey(0)
    k_in, k_p = jax.random.split(key)

    # Small shapes consistent with the module (template z_f smaller than x_f).
    B, Cin, hidden = 2, 8, 16
    Hz = Wz = 8
    Hx = Wx = 16
    n_levels = 2                                  # MultiLatentRPN feature levels

    kz, kx = jax.random.split(k_in)
    # NHWC end-to-end (channels-last) — no NCHW<->NHWC transposes on the fast path.
    z_fs = [jax.random.normal(jax.random.fold_in(kz, i), (B, Hz, Wz, Cin), jnp.float32)
            for i in range(n_levels)]
    x_fs = [jax.random.normal(jax.random.fold_in(kx, i), (B, Hx, Wx, Cin), jnp.float32)
            for i in range(n_levels)]

    level_params = []
    for i in range(n_levels):
        kc, kl = jax.random.split(jax.random.fold_in(k_p, i))
        p_cls = make_branch_params(kc, Cin, hidden, Hz, Wz, Hx, Wx)
        p_loc = make_branch_params(kl, Cin, hidden, Hz, Wz, Hx, Wx)
        level_params.append({"cls": p_cls, "loc": p_loc,
                             "stacked": stack_branches(p_cls, p_loc)})

    cls_feas, loc_feas = multi_latent_rpn(
        z_fs, x_fs, [lp["stacked"] for lp in level_params])
    jax.block_until_ready((cls_feas, loc_feas))

    # Correctness check against an independent pure-JAX NCHW reference.
    for i in range(n_levels):
        z_nchw = jnp.transpose(z_fs[i], (0, 3, 1, 2))
        x_nchw = jnp.transpose(x_fs[i], (0, 3, 1, 2))
        ref_cls = reference_branch(z_nchw, x_nchw, level_params[i]["cls"])
        ref_loc = reference_branch(z_nchw, x_nchw, level_params[i]["loc"])
        got_cls = jnp.transpose(cls_feas[i], (0, 3, 1, 2))
        got_loc = jnp.transpose(loc_feas[i], (0, 3, 1, 2))
        np.testing.assert_allclose(np.asarray(got_cls), np.asarray(ref_cls),
                                   rtol=2e-2, atol=2e-2)
        np.testing.assert_allclose(np.asarray(got_loc), np.asarray(ref_loc),
                                   rtol=2e-2, atol=2e-2)

    print("KERNEL_OK")
</pallas_src>

<mosaic_0001>
module attributes {stable_mosaic.version = 11 : i64} {
  func.func @_rpn_branch_kernel(%arg0: i32, %arg1: i32, %arg2: memref<1x8x64xf32, #tpu.memory_space<vmem>>, %arg3: memref<1x16x128xf32, #tpu.memory_space<vmem>>, %arg4: memref<1x3x64x96xf32, #tpu.memory_space<vmem>>, %arg5: memref<1x1x96xf32, #tpu.memory_space<vmem>>, %arg6: memref<1x1x96xf32, #tpu.memory_space<vmem>>, %arg7: memref<1x3x128x224xf32, #tpu.memory_space<vmem>>, %arg8: memref<1x1x224xf32, #tpu.memory_space<vmem>>, %arg9: memref<1x1x224xf32, #tpu.memory_space<vmem>>, %arg10: memref<1x144x144xf32, #tpu.memory_space<vmem>>, %arg11: memref<1x1x144xf32, #tpu.memory_space<vmem>>, %arg12: memref<1x1x144xf32, #tpu.memory_space<vmem>>, %arg13: memref<1x1x9x144xf32, #tpu.memory_space<vmem>>) attributes {dimension_semantics = [#tpu.dimension_semantics<parallel>, #tpu.dimension_semantics<parallel>], iteration_bounds = array<i64: 2, 2>, scalar_prefetch = 0 : i64, scratch_operands = 0 : i64, tpu.core_type = #tpu.core_type<tc>, window_params = [{transform_indices = @transform_0, window_bounds = array<i64: 1, 8, 64>}, {transform_indices = @transform_1, window_bounds = array<i64: 1, 16, 128>}, {transform_indices = @transform_2, window_bounds = array<i64: 1, 3, 64, 96>}, {transform_indices = @transform_3, window_bounds = array<i64: 1, 1, 96>}, {transform_indices = @transform_4, window_bounds = array<i64: 1, 1, 96>}, {transform_indices = @transform_5, window_bounds = array<i64: 1, 3, 128, 224>}, {transform_indices = @transform_6, window_bounds = array<i64: 1, 1, 224>}, {transform_indices = @transform_7, window_bounds = array<i64: 1, 1, 224>}, {transform_indices = @transform_8, window_bounds = array<i64: 1, 144, 144>}, {transform_indices = @transform_9, window_bounds = array<i64: 1, 1, 144>}, {transform_indices = @transform_10, window_bounds = array<i64: 1, 1, 144>}, {transform_indices = @transform_11, window_bounds = array<i64: 1, 1, 9, 144>}]} {
    %c0 = arith.constant 0 : index
    %c0_0 = arith.constant 0 : index
    %c0_1 = arith.constant 0 : index
    %0 = vector.load %arg2[%c0, %c0_0, %c0_1] : memref<1x8x64xf32, #tpu.memory_space<vmem>>, vector<1x8x64xf32>
    %1 = vector.shape_cast %0 : vector<1x8x64xf32> to vector<8x64xf32>
    %c0_2 = arith.constant 0 : index
    %c0_3 = arith.constant 0 : index
    %c0_4 = arith.constant 0 : index
    %2 = vector.load %arg3[%c0_2, %c0_3, %c0_4] : memref<1x16x128xf32, #tpu.memory_space<vmem>>, vector<1x16x128xf32>
    %3 = vector.shape_cast %2 : vector<1x16x128xf32> to vector<16x128xf32>
    %c0_5 = arith.constant 0 : index
    %c0_6 = arith.constant 0 : index
    %c0_7 = arith.constant 0 : index
    %c0_8 = arith.constant 0 : index
    %4 = vector.load %arg4[%c0_5, %c0_6, %c0_7, %c0_8] : memref<1x3x64x96xf32, #tpu.memory_space<vmem>>, vector<1x3x64x96xf32>
    %5 = vector.shape_cast %4 : vector<1x3x64x96xf32> to vector<3x64x96xf32>
    %c0_9 = arith.constant 0 : index
    %c0_10 = arith.constant 0 : index
    %c0_11 = arith.constant 0 : index
    %6 = vector.load %arg5[%c0_9, %c0_10, %c0_11] : memref<1x1x96xf32, #tpu.memory_space<vmem>>, vector<1x1x96xf32>
    %7 = vector.shape_cast %6 : vector<1x1x96xf32> to vector<1x96xf32>
    %c0_12 = arith.constant 0 : index
    %c0_13 = arith.constant 0 : index
    %c0_14 = arith.constant 0 : index
    %8 = vector.load %arg6[%c0_12, %c0_13, %c0_14] : memref<1x1x96xf32, #tpu.memory_space<vmem>>, vector<1x1x96xf32>
    %9 = vector.shape_cast %8 : vector<1x1x96xf32> to vector<1x96xf32>
    %cst = arith.constant 0.000000e+00 : f32
    %10 = vector.broadcast %cst : f32 to vector<6x96xf32>
    %11 = vector.extract_strided_slice %1 {offsets = [0, 0], sizes = [6, 64], strides = [1, 1]} : vector<8x64xf32> to vector<6x64xf32>
    %12 = vector.extract_strided_slice %5 {offsets = [0, 0, 0], sizes = [1, 64, 96], strides = [1, 1, 1]} : vector<3x64x96xf32> to vector<1x64x96xf32>
    %13 = vector.shape_cast %12 : vector<1x64x96xf32> to vector<64x96xf32>
    %cst_15 = arith.constant dense<0.000000e+00> : vector<6x96xf32>
    %14 = tpu.matmul %11, %13, %cst_15 {dimension_numbers = #tpu.dot_dimension_numbers<[1], [0], [0], [1], [0, 0, 1, 1], [], []>} : vector<6x64xf32>, vector<64x96xf32>, vector<6x96xf32> -> vector<6x96xf32>
    %15 = arith.addf %10, %14 : vector<6x96xf32>
    %16 = vector.extract_strided_slice %1 {offsets = [1, 0], sizes = [6, 64], strides = [1, 1]} : vector<8x64xf32> to vector<6x64xf32>
    %17 = vector.extract_strided_slice %5 {offsets = [1, 0, 0], sizes = [1, 64, 96], strides = [1, 1, 1]} : vector<3x64x96xf32> to vector<1x64x96xf32>
    %18 = vector.shape_cast %17 : vector<1x64x96xf32> to vector<64x96xf32>
    %cst_16 = arith.constant dense<0.000000e+00> : vector<6x96xf32>
    %19 = tpu.matmul %16, %18, %cst_16 {dimension_numbers = #tpu.dot_dimension_numbers<[1], [0], [0], [1], [0, 0, 1, 1], [], []>} : vector<6x64xf32>, vector<64x96xf32>, vector<6x96xf32> -> vector<6x96xf32>
    %20 = arith.addf %15, %19 : vector<6x96xf32>
    %21 = vector.extract_strided_slice %1 {offsets = [2, 0], sizes = [6, 64], strides = [1, 1]} : vector<8x64xf32> to vector<6x64xf32>
    %22 = vector.extract_strided_slice %5 {offsets = [2, 0, 0], sizes = [1, 64, 96], strides = [1, 1, 1]} : vector<3x64x96xf32> to vector<1x64x96xf32>
    %23 = vector.shape_cast %22 : vector<1x64x96xf32> to vector<64x96xf32>
    %cst_17 = arith.constant dense<0.000000e+00> : vector<6x96xf32>
    %24 = tpu.matmul %21, %23, %cst_17 {dimension_numbers = #tpu.dot_dimension_numbers<[1], [0], [0], [1], [0, 0, 1, 1], [], []>} : vector<6x64xf32>, vector<64x96xf32>, vector<6x96xf32> -> vector<6x96xf32>
    %25 = arith.addf %20, %24 : vector<6x96xf32>
    %26 = vector.broadcast %7 : vector<1x96xf32> to vector<6x96xf32>
    %27 = arith.mulf %25, %26 : vector<6x96xf32>
    %28 = vector.broadcast %9 : vector<1x96xf32> to vector<6x96xf32>
    %29 = arith.addf %27, %28 : vector<6x96xf32>
    %cst_18 = arith.constant 0.000000e+00 : f32
    %30 = vector.broadcast %cst_18 : f32 to vector<6x96xf32>
    %31 = arith.maximumf %29, %30 : vector<6x96xf32>
    %c0_19 = arith.constant 0 : index
    %c0_20 = arith.constant 0 : index
    %c0_21 = arith.constant 0 : index
    %c0_22 = arith.constant 0 : index
    %32 = vector.load %arg7[%c0_19, %c0_20, %c0_21, %c0_22] : memref<1x3x128x224xf32, #tpu.memory_space<vmem>>, vector<1x3x128x224xf32>
    %33 = vector.shape_cast %32 : vector<1x3x128x224xf32> to vector<3x128x224xf32>
    %c0_23 = arith.constant 0 : index
    %c0_24 = arith.constant 0 : index
    %c0_25 = arith.constant 0 : index
    %34 = vector.load %arg8[%c0_23, %c0_24, %c0_25] : memref<1x1x224xf32, #tpu.memory_space<vmem>>, vector<1x1x224xf32>
    %35 = vector.shape_cast %34 : vector<1x1x224xf32> to vector<1x224xf32>
    %c0_26 = arith.constant 0 : index
    %c0_27 = arith.constant 0 : index
    %c0_28 = arith.constant 0 : index
    %36 = vector.load %arg9[%c0_26, %c0_27, %c0_28] : memref<1x1x224xf32, #tpu.memory_space<vmem>>, vector<1x1x224xf32>
    %37 = vector.shape_cast %36 : vector<1x1x224xf32> to vector<1x224xf32>
    %cst_29 = arith.constant 0.000000e+00 : f32
    %38 = vector.broadcast %cst_29 : f32 to vector<14x224xf32>
    %39 = vector.extract_strided_slice %3 {offsets = [0, 0], sizes = [14, 128], strides = [1, 1]} : vector<16x128xf32> to vector<14x128xf32>
    %40 = vector.extract_strided_slice %33 {offsets = [0, 0, 0], sizes = [1, 128, 224], strides = [1, 1, 1]} : vector<3x128x224xf32> to vector<1x128x224xf32>
    %41 = vector.shape_cast %40 : vector<1x128x224xf32> to vector<128x224xf32>
    %cst_30 = arith.constant dense<0.000000e+00> : vector<14x224xf32>
    %42 = tpu.matmul %39, %41, %cst_30 {dimension_numbers = #tpu.dot_dimension_numbers<[1], [0], [0], [1], [0, 0, 1, 1], [], []>} : vector<14x128xf32>, vector<128x224xf32>, vector<14x224xf32> -> vector<14x224xf32>
    %43 = arith.addf %38, %42 : vector<14x224xf32>
    %44 = vector.extract_strided_slice %3 {offsets = [1, 0], sizes = [14, 128], strides = [1, 1]} : vector<16x128xf32> to vector<14x128xf32>
    %45 = vector.extract_strided_slice %33 {offsets = [1, 0, 0], sizes = [1, 128, 224], strides = [1, 1, 1]} : vector<3x128x224xf32> to vector<1x128x224xf32>
    %46 = vector.shape_cast %45 : vector<1x128x224xf32> to vector<128x224xf32>
    %cst_31 = arith.constant dense<0.000000e+00> : vector<14x224xf32>
    %47 = tpu.matmul %44, %46, %cst_31 {dimension_numbers = #tpu.dot_dimension_numbers<[1], [0], [0], [1], [0, 0, 1, 1], [], []>} : vector<14x128xf32>, vector<128x224xf32>, vector<14x224xf32> -> vector<14x224xf32>
    %48 = arith.addf %43, %47 : vector<14x224xf32>
    %49 = vector.extract_strided_slice %3 {offsets = [2, 0], sizes = [14, 128], strides = [1, 1]} : vector<16x128xf32> to vector<14x128xf32>
    %50 = vector.extract_strided_slice %33 {offsets = [2, 0, 0], sizes = [1, 128, 224], strides = [1, 1, 1]} : vector<3x128x224xf32> to vector<1x128x224xf32>
    %51 = vector.shape_cast %50 : vector<1x128x224xf32> to vector<128x224xf32>
    %cst_32 = arith.constant dense<0.000000e+00> : vector<14x224xf32>
    %52 = tpu.matmul %49, %51, %cst_32 {dimension_numbers = #tpu.dot_dimension_numbers<[1], [0], [0], [1], [0, 0, 1, 1], [], []>} : vector<14x128xf32>, vector<128x224xf32>, vector<14x224xf32> -> vector<14x224xf32>
    %53 = arith.addf %48, %52 : vector<14x224xf32>
    %54 = vector.broadcast %35 : vector<1x224xf32> to vector<14x224xf32>
    %55 = arith.mulf %53, %54 : vector<14x224xf32>
    %56 = vector.broadcast %37 : vector<1x224xf32> to vector<14x224xf32>
    %57 = arith.addf %55, %56 : vector<14x224xf32>
    %cst_33 = arith.constant 0.000000e+00 : f32
    %58 = vector.broadcast %cst_33 : f32 to vector<14x224xf32>
    %59 = arith.maximumf %57, %58 : vector<14x224xf32>
    %cst_34 = arith.constant 0.000000e+00 : f32
    %60 = vector.broadcast %cst_34 : f32 to vector<9x144xf32>
    %cst_35 = arith.constant 0.000000e+00 : f32
    %61 = vector.broadcast %cst_35 : f32 to vector<9x144xf32>
    %cst_36 = arith.constant 0.000000e+00 : f32
    %62 = vector.broadcast %cst_36 : f32 to vector<9x144xf32>
    %cst_37 = arith.constant 0.000000e+00 : f32
    %63 = vector.broadcast %cst_37 : f32 to vector<9x144xf32>
    %64 = vector.extract_strided_slice %59 {offsets = [0, 0], sizes = [9, 144], strides = [1, 1]} : vector<14x224xf32> to vector<9x144xf32>
    %65 = vector.extract_strided_slice %31 {offsets = [0, 0], sizes = [1, 16], strides = [1, 1]} : vector<6x96xf32> to vector<1x16xf32>
    %66 = tpu.concatenate %65, %65, %65, %65, %65, %65, %65, %65, %65 in 1 : vector<1x16xf32>, vector<1x16xf32>, vector<1x16xf32>, vector<1x16xf32>, vector<1x16xf32>, vector<1x16xf32>, vector<1x16xf32>, vector<1x16xf32>, vector<1x16xf32> -> vector<1x144xf32>
    %67 = vector.broadcast %66 : vector<1x144xf32> to vector<9x144xf32>
    %68 = arith.mulf %64, %67 : vector<9x144xf32>
    %69 = arith.addf %60, %68 : vector<9x144xf32>
    %70 = vector.extract_strided_slice %59 {offsets = [0, 16], sizes = [9, 144], strides = [1, 1]} : vector<14x224xf32> to vector<9x144xf32>
    %71 = vector.extract_strided_slice %31 {offsets = [0, 16], sizes = [1, 16], strides = [1, 1]} : vector<6x96xf32> to vector<1x16xf32>
    %72 = tpu.concatenate %71, %71, %71, %71, %71, %71, %71, %71, %71 in 1 : vector<1x16xf32>, vector<1x16xf32>, vector<1x16xf32>, vector<1x16xf32>, vector<1x16xf32>, vector<1x16xf32>, vector<1x16xf32>, vector<1x16xf32>, vector<1x16xf32> -> vector<1x144xf32>
    %73 = vector.broadcast %72 : vector<1x144xf32> to vector<9x144xf32>
    %74 = arith.mulf %70, %73 : vector<9x144xf32>
    %75 = arith.addf %61, %74 : vector<9x144xf32>
    %76 = vector.extract_strided_slice %59 {offsets = [0, 32], sizes = [9, 144], strides = [1, 1]} : vector<14x224xf32> to vector<9x144xf32>
    %77 = vector.extract_strided_slice %31 {offsets = [0, 32], sizes = [1, 16], strides = [1, 1]} : vector<6x96xf32> to vector<1x16xf32>
    %78 = tpu.concatenate %77, %77, %77, %77, %77, %77, %77, %77, %77 in 1 : vector<1x16xf32>, vector<1x16xf32>, vector<1x16xf32>, vector<1x16xf32>, vector<1x16xf32>, vector<1x16xf32>, vector<1x16xf32>, vector<1x16xf32>, vector<1x16xf32> -> vector<1x144xf32>
    %79 = vector.broadcast %78 : vector<1x144xf32> to vector<9x144xf32>
    %80 = arith.mulf %76, %79 : vector<9x144xf32>
    %81 = arith.addf %62, %80 : vector<9x144xf32>
    %82 = vector.extract_strided_slice %59 {offsets = [0, 48], sizes = [9, 144], strides = [1, 1]} : vector<14x224xf32> to vector<9x144xf32>
    %83 = vector.extract_strided_slice %31 {offsets = [0, 48], sizes = [1, 16], strides = [1, 1]} : vector<6x96xf32> to vector<1x16xf32>
    %84 = tpu.concatenate %83, %83, %83, %83, %83, %83, %83, %83, %83 in 1 : vector<1x16xf32>, vector<1x16xf32>, vector<1x16xf32>, vector<1x16xf32>, vector<1x16xf32>, vector<1x16xf32>, vector<1x16xf32>, vector<1x16xf32>, vector<1x16xf32> -> vector<1x144xf32>
    %85 = vector.broadcast %84 : vector<1x144xf32> to vector<9x144xf32>
    %86 = arith.mulf %82, %85 : vector<9x144xf32>
    %87 = arith.addf %63, %86 : vector<9x144xf32>
    %88 = vector.extract_strided_slice %59 {offsets = [0, 64], sizes = [9, 144], strides = [1, 1]} : vector<14x224xf32> to vector<9x144xf32>
    %89 = vector.extract_strided_slice %31 {offsets = [0, 64], sizes = [1, 16], strides = [1, 1]} : vector<6x96xf32> to vector<1x16xf32>
    %90 = tpu.concatenate %89, %89, %89, %89, %89, %89, %89, %89, %89 in 1 : vector<1x16xf32>, vector<1x16xf32>, vector<1x16xf32>, vector<1x16xf32>, vector<1x16xf32>, vector<1x16xf32>, vector<1x16xf32>, vector<1x16xf32>, vector<1x16xf32> -> vector<1x144xf32>
    %91 = vector.broadcast %90 : vector<1x144xf32> to vector<9x144xf32>
    %92 = arith.mulf %88, %91 : vector<9x144xf32>
    %93 = arith.addf %69, %92 : vector<9x144xf32>
    %94 = vector.extract_strided_slice %59 {offsets = [0, 80], sizes = [9, 144], strides = [1, 1]} : vector<14x224xf32> to vector<9x144xf32>
    %95 = vector.extract_strided_slice %31 {offsets = [0, 80], sizes = [1, 16], strides = [1, 1]} : vector<6x96xf32> to vector<1x16xf32>
    %96 = tpu.concatenate %95, %95, %95, %95, %95, %95, %95, %95, %95 in 1 : vector<1x16xf32>, vector<1x16xf32>, vector<1x16xf32>, vector<1x16xf32>, vector<1x16xf32>, vector<1x16xf32>, vector<1x16xf32>, vector<1x16xf32>, vector<1x16xf32> -> vector<1x144xf32>
    %97 = vector.broadcast %96 : vector<1x144xf32> to vector<9x144xf32>
    %98 = arith.mulf %94, %97 : vector<9x144xf32>
    %99 = arith.addf %75, %98 : vector<9x144xf32>
    %100 = vector.extract_strided_slice %59 {offsets = [1, 0], sizes = [9, 144], strides = [1, 1]} : vector<14x224xf32> to vector<9x144xf32>
    %101 = vector.extract_strided_slice %31 {offsets = [1, 0], sizes = [1, 16], strides = [1, 1]} : vector<6x96xf32> to vector<1x16xf32>
    %102 = tpu.concatenate %101, %101, %101, %101, %101, %101, %101, %101, %101 in 1 : vector<1x16xf32>, vector<1x16xf32>, vector<1x16xf32>, vector<1x16xf32>, vector<1x16xf32>, vector<1x16xf32>, vector<1x16xf32>, vector<1x16xf32>, vector<1x16xf32> -> vector<1x144xf32>
    %103 = vector.broadcast %102 : vector<1x144xf32> to vector<9x144xf32>
    %104 = arith.mulf %100, %103 : vector<9x144xf32>
    %105 = arith.addf %81, %104 : vector<9x144xf32>
    %106 = vector.extract_strided_slice %59 {offsets = [1, 16], sizes = [9, 144], strides = [1, 1]} : vector<14x224xf32> to vector<9x144xf32>
    %107 = vector.extract_strided_slice %31 {offsets = [1, 16], sizes = [1, 16], strides = [1, 1]} : vector<6x96xf32> to vector<1x16xf32>
    %108 = tpu.concatenate %107, %107, %107, %107, %107, %107, %107, %107, %107 in 1 : vector<1x16xf32>, vector<1x16xf32>, vector<1x16xf32>, vector<1x16xf32>, vector<1x16xf32>, vector<1x16xf32>, vector<1x16xf32>, vector<1x16xf32>, vector<1x16xf32> -> vector<1x144xf32>
    %109 = vector.broadcast %108 : vector<1x144xf32> to vector<9x144xf32>
    %110 = arith.mulf %106, %109 : vector<9x144xf32>
    %111 = arith.addf %87, %110 : vector<9x144xf32>
    %112 = vector.extract_strided_slice %59 {offsets = [1, 32], sizes = [9, 144], strides = [1, 1]} : vector<14x224xf32> to vector<9x144xf32>
    %113 = vector.extract_strided_slice %31 {offsets = [1, 32], sizes = [1, 16], strides = [1, 1]} : vector<6x96xf32> to vector<1x16xf32>
    %114 = tpu.concatenate %113, %113, %113, %113, %113, %113, %113, %113, %113 in 1 : vector<1x16xf32>, vector<1x16xf32>, vector<1x16xf32>, vector<1x16xf32>, vector<1x16xf32>, vector<1x16xf32>, vector<1x16xf32>, vector<1x16xf32>, vector<1x16xf32> -> vector<1x144xf32>
    %115 = vector.broadcast %114 : vector<1x144xf32> to vector<9x144xf32>
    %116 = arith.mulf %112, %115 : vector<9x144xf32>
    %117 = arith.addf %93, %116 : vector<9x144xf32>
    %118 = vector.extract_strided_slice %59 {offsets = [1, 48], sizes = [9, 144], strides = [1, 1]} : vector<14x224xf32> to vector<9x144xf32>
    %119 = vector.extract_strided_slice %31 {offsets = [1, 48], sizes = [1, 16], strides = [1, 1]} : vector<6x96xf32> to vector<1x16xf32>
    %120 = tpu.concatenate %119, %119, %119, %119, %119, %119, %119, %119, %119 in 1 : vector<1x16xf32>, vector<1x16xf32>, vector<1x16xf32>, vector<1x16xf32>, vector<1x16xf32>, vector<1x16xf32>, vector<1x16xf32>, vector<1x16xf32>, vector<1x16xf32> -> vector<1x144xf32>
    %121 = vector.broadcast %120 : vector<1x144xf32> to vector<9x144xf32>
    %122 = arith.mulf %118, %121 : vector<9x144xf32>
    %123 = arith.addf %99, %122 : vector<9x144xf32>
    %124 = vector.extract_strided_slice %59 {offsets = [1, 64], sizes = [9, 144], strides = [1, 1]} : vector<14x224xf32> to vector<9x144xf32>
    %125 = vector.extract_strided_slice %31 {offsets = [1, 64], sizes = [1, 16], strides = [1, 1]} : vector<6x96xf32> to vector<1x16xf32>
    %126 = tpu.concatenate %125, %125, %125, %125, %125, %125, %125, %125, %125 in 1 : vector<1x16xf32>, vector<1x16xf32>, vector<1x16xf32>, vector<1x16xf32>, vector<1x16xf32>, vector<1x16xf32>, vector<1x16xf32>, vector<1x16xf32>, vector<1x16xf32> -> vector<1x144xf32>
    %127 = vector.broadcast %126 : vector<1x144xf32> to vector<9x144xf32>
    %128 = arith.mulf %124, %127 : vector<9x144xf32>
    %129 = arith.addf %105, %128 : vector<9x144xf32>
    %130 = vector.extract_strided_slice %59 {offsets = [1, 80], sizes = [9, 144], strides = [1, 1]} : vector<14x224xf32> to vector<9x144xf32>
    %131 = vector.extract_strided_slice %31 {offsets = [1, 80], sizes = [1, 16], strides = [1, 1]} : vector<6x96xf32> to vector<1x16xf32>
    %132 = tpu.concatenate %131, %131, %131, %131, %131, %131, %131, %131, %131 in 1 : vector<1x16xf32>, vector<1x16xf32>, vector<1x16xf32>, vector<1x16xf32>, vector<1x16xf32>, vector<1x16xf32>, vector<1x16xf32>, vector<1x16xf32>, vector<1x16xf32> -> vector<1x144xf32>
    %133 = vector.broadcast %132 : vector<1x144xf32> to vector<9x144xf32>
    %134 = arith.mulf %130, %133 : vector<9x144xf32>
    %135 = arith.addf %111, %134 : vector<9x144xf32>
    %136 = vector.extract_strided_slice %59 {offsets = [2, 0], sizes = [9, 144], strides = [1, 1]} : vector<14x224xf32> to vector<9x144xf32>
    %137 = vector.extract_strided_slice %31 {offsets = [2, 0], sizes = [1, 16], strides = [1, 1]} : vector<6x96xf32> to vector<1x16xf32>
    %138 = tpu.concatenate %137, %137, %137, %137, %137, %137, %137, %137, %137 in 1 : vector<1x16xf32>, vector<1x16xf32>, vector<1x16xf32>, vector<1x16xf32>, vector<1x16xf32>, vector<1x16xf32>, vector<1x16xf32>, vector<1x16xf32>, vector<1x16xf32> -> vector<1x144xf32>
    %139 = vector.broadcast %138 : vector<1x144xf32> to vector<9x144xf32>
    %140 = arith.mulf %136, %139 : vector<9x144xf32>
    %141 = arith.addf %117, %140 : vector<9x144xf32>
    %142 = vector.extract_strided_slice %59 {offsets = [2, 16], sizes = [9, 144], strides = [1, 1]} : vector<14x224xf32> to vector<9x144xf32>
    %143 = vector.extract_strided_slice %31 {offsets = [2, 16], sizes = [1, 16], strides = [1, 1]} : vector<6x96xf32> to vector<1x16xf32>
    %144 = tpu.concatenate %143, %143, %143, %143, %143, %143, %143, %143, %143 in 1 : vector<1x16xf32>, vector<1x16xf32>, vector<1x16xf32>, vector<1x16xf32>, vector<1x16xf32>, vector<1x16xf32>, vector<1x16xf32>, vector<1x16xf32>, vector<1x16xf32> -> vector<1x144xf32>
    %145 = vector.broadcast %144 : vector<1x144xf32> to vector<9x144xf32>
    %146 = arith.mulf %142, %145 : vector<9x144xf32>
    %147 = arith.addf %123, %146 : vector<9x144xf32>
    %148 = vector.extract_strided_slice %59 {offsets = [2, 32], sizes = [9, 144], strides = [1, 1]} : vector<14x224xf32> to vector<9x144xf32>
    %149 = vector.extract_strided_slice %31 {offsets = [2, 32], sizes = [1, 16], strides = [1, 1]} : vector<6x96xf32> to vector<1x16xf32>
    %150 = tpu.concatenate %149, %149, %149, %149, %149, %149, %149, %149, %149 in 1 : vector<1x16xf32>, vector<1x16xf32>, vector<1x16xf32>, vector<1x16xf32>, vector<1x16xf32>, vector<1x16xf32>, vector<1x16xf32>, vector<1x16xf32>, vector<1x16xf32> -> vector<1x144xf32>
    %151 = vector.broadcast %150 : vector<1x144xf32> to vector<9x144xf32>
    %152 = arith.mulf %148, %151 : vector<9x144xf32>
    %153 = arith.addf %129, %152 : vector<9x144xf32>
    %154 = vector.extract_strided_slice %59 {offsets = [2, 48], sizes = [9, 144], strides = [1, 1]} : vector<14x224xf32> to vector<9x144xf32>
    %155 = vector.extract_strided_slice %31 {offsets = [2, 48], sizes = [1, 16], strides = [1, 1]} : vector<6x96xf32> to vector<1x16xf32>
    %156 = tpu.concatenate %155, %155, %155, %155, %155, %155, %155, %155, %155 in 1 : vector<1x16xf32>, vector<1x16xf32>, vector<1x16xf32>, vector<1x16xf32>, vector<1x16xf32>, vector<1x16xf32>, vector<1x16xf32>, vector<1x16xf32>, vector<1x16xf32> -> vector<1x144xf32>
    %157 = vector.broadcast %156 : vector<1x144xf32> to vector<9x144xf32>
    %158 = arith.mulf %154, %157 : vector<9x144xf32>
    %159 = arith.addf %135, %158 : vector<9x144xf32>
    %160 = vector.extract_strided_slice %59 {offsets = [2, 64], sizes = [9, 144], strides = [1, 1]} : vector<14x224xf32> to vector<9x144xf32>
    %161 = vector.extract_strided_slice %31 {offsets = [2, 64], sizes = [1, 16], strides = [1, 1]} : vector<6x96xf32> to vector<1x16xf32>
    %162 = tpu.concatenate %161, %161, %161, %161, %161, %161, %161, %161, %161 in 1 : vector<1x16xf32>, vector<1x16xf32>, vector<1x16xf32>, vector<1x16xf32>, vector<1x16xf32>, vector<1x16xf32>, vector<1x16xf32>, vector<1x16xf32>, vector<1x16xf32> -> vector<1x144xf32>
    %163 = vector.broadcast %162 : vector<1x144xf32> to vector<9x144xf32>
    %164 = arith.mulf %160, %163 : vector<9x144xf32>
    %165 = arith.addf %141, %164 : vector<9x144xf32>
    %166 = vector.extract_strided_slice %59 {offsets = [2, 80], sizes = [9, 144], strides = [1, 1]} : vector<14x224xf32> to vector<9x144xf32>
    %167 = vector.extract_strided_slice %31 {offsets = [2, 80], sizes = [1, 16], strides = [1, 1]} : vector<6x96xf32> to vector<1x16xf32>
    %168 = tpu.concatenate %167, %167, %167, %167, %167, %167, %167, %167, %167 in 1 : vector<1x16xf32>, vector<1x16xf32>, vector<1x16xf32>, vector<1x16xf32>, vector<1x16xf32>, vector<1x16xf32>, vector<1x16xf32>, vector<1x16xf32>, vector<1x16xf32> -> vector<1x144xf32>
    %169 = vector.broadcast %168 : vector<1x144xf32> to vector<9x144xf32>
    %170 = arith.mulf %166, %169 : vector<9x144xf32>
    %171 = arith.addf %147, %170 : vector<9x144xf32>
    %172 = vector.extract_strided_slice %59 {offsets = [3, 0], sizes = [9, 144], strides = [1, 1]} : vector<14x224xf32> to vector<9x144xf32>
    %173 = vector.extract_strided_slice %31 {offsets = [3, 0], sizes = [1, 16], strides = [1, 1]} : vector<6x96xf32> to vector<1x16xf32>
    %174 = tpu.concatenate %173, %173, %173, %173, %173, %173, %173, %173, %173 in 1 : vector<1x16xf32>, vector<1x16xf32>, vector<1x16xf32>, vector<1x16xf32>, vector<1x16xf32>, vector<1x16xf32>, vector<1x16xf32>, vector<1x16xf32>, vector<1x16xf32> -> vector<1x144xf32>
    %175 = vector.broadcast %174 : vector<1x144xf32> to vector<9x144xf32>
    %176 = arith.mulf %172, %175 : vector<9x144xf32>
    %177 = arith.addf %153, %176 : vector<9x144xf32>
    %178 = vector.extract_strided_slice %59 {offsets = [3, 16], sizes = [9, 144], strides = [1, 1]} : vector<14x224xf32> to vector<9x144xf32>
    %179 = vector.extract_strided_slice %31 {offsets = [3, 16], sizes = [1, 16], strides = [1, 1]} : vector<6x96xf32> to vector<1x16xf32>
    %180 = tpu.concatenate %179, %179, %179, %179, %179, %179, %179, %179, %179 in 1 : vector<1x16xf32>, vector<1x16xf32>, vector<1x16xf32>, vector<1x16xf32>, vector<1x16xf32>, vector<1x16xf32>, vector<1x16xf32>, vector<1x16xf32>, vector<1x16xf32> -> vector<1x144xf32>
    %181 = vector.broadcast %180 : vector<1x144xf32> to vector<9x144xf32>
    %182 = arith.mulf %178, %181 : vector<9x144xf32>
    %183 = arith.addf %159, %182 : vector<9x144xf32>
    %184 = vector.extract_strided_slice %59 {offsets = [3, 32], sizes = [9, 144], strides = [1, 1]} : vector<14x224xf32> to vector<9x144xf32>
    %185 = vector.extract_strided_slice %31 {offsets = [3, 32], sizes = [1, 16], strides = [1, 1]} : vector<6x96xf32> to vector<1x16xf32>
    %186 = tpu.concatenate %185, %185, %185, %185, %185, %185, %185, %185, %185 in 1 : vector<1x16xf32>, vector<1x16xf32>, vector<1x16xf32>, vector<1x16xf32>, vector<1x16xf32>, vector<1x16xf32>, vector<1x16xf32>, vector<1x16xf32>, vector<1x16xf32> -> vector<1x144xf32>
    %187 = vector.broadcast %186 : vector<1x144xf32> to vector<9x144xf32>
    %188 = arith.mulf %184, %187 : vector<9x144xf32>
    %189 = arith.addf %165, %188 : vector<9x144xf32>
    %190 = vector.extract_strided_slice %59 {offsets = [3, 48], sizes = [9, 144], strides = [1, 1]} : vector<14x224xf32> to vector<9x144xf32>
    %191 = vector.extract_strided_slice %31 {offsets = [3, 48], sizes = [1, 16], strides = [1, 1]} : vector<6x96xf32> to vector<1x16xf32>
    %192 = tpu.concatenate %191, %191, %191, %191, %191, %191, %191, %191, %191 in 1 : vector<1x16xf32>, vector<1x16xf32>, vector<1x16xf32>, vector<1x16xf32>, vector<1x16xf32>, vector<1x16xf32>, vector<1x16xf32>, vector<1x16xf32>, vector<1x16xf32> -> vector<1x144xf32>
    %193 = vector.broadcast %192 : vector<1x144xf32> to vector<9x144xf32>
    %194 = arith.mulf %190, %193 : vector<9x144xf32>
    %195 = arith.addf %171, %194 : vector<9x144xf32>
    %196 = vector.extract_strided_slice %59 {offsets = [3, 64], sizes = [9, 144], strides = [1, 1]} : vector<14x224xf32> to vector<9x144xf32>
    %197 = vector.extract_strided_slice %31 {offsets = [3, 64], sizes = [1, 16], strides = [1, 1]} : vector<6x96xf32> to vector<1x16xf32>
    %198 = tpu.concatenate %197, %197, %197, %197, %197, %197, %197, %197, %197 in 1 : vector<1x16xf32>, vector<1x16xf32>, vector<1x16xf32>, vector<1x16xf32>, vector<1x16xf32>, vector<1x16xf32>, vector<1x16xf32>, vector<1x16xf32>, vector<1x16xf32> -> vector<1x144xf32>
    %199 = vector.broadcast %198 : vector<1x144xf32> to vector<9x144xf32>
    %200 = arith.mulf %196, %199 : vector<9x144xf32>
    %201 = arith.addf %177, %200 : vector<9x144xf32>
    %202 = vector.extract_strided_slice %59 {offsets = [3, 80], sizes = [9, 144], strides = [1, 1]} : vector<14x224xf32> to vector<9x144xf32>
    %203 = vector.extract_strided_slice %31 {offsets = [3, 80], sizes = [1, 16], strides = [1, 1]} : vector<6x96xf32> to vector<1x16xf32>
    %204 = tpu.concatenate %203, %203, %203, %203, %203, %203, %203, %203, %203 in 1 : vector<1x16xf32>, vector<1x16xf32>, vector<1x16xf32>, vector<1x16xf32>, vector<1x16xf32>, vector<1x16xf32>, vector<1x16xf32>, vector<1x16xf32>, vector<1x16xf32> -> vector<1x144xf32>
    %205 = vector.broadcast %204 : vector<1x144xf32> to vector<9x144xf32>
    %206 = arith.mulf %202, %205 : vector<9x144xf32>
    %207 = arith.addf %183, %206 : vector<9x144xf32>
    %208 = vector.extract_strided_slice %59 {offsets = [4, 0], sizes = [9, 144], strides = [1, 1]} : vector<14x224xf32> to vector<9x144xf32>
    %209 = vector.extract_strided_slice %31 {offsets = [4, 0], sizes = [1, 16], strides = [1, 1]} : vector<6x96xf32> to vector<1x16xf32>
    %210 = tpu.concatenate %209, %209, %209, %209, %209, %209, %209, %209, %209 in 1 : vector<1x16xf32>, vector<1x16xf32>, vector<1x16xf32>, vector<1x16xf32>, vector<1x16xf32>, vector<1x16xf32>, vector<1x16xf32>, vector<1x16xf32>, vector<1x16xf32> -> vector<1x144xf32>
    %211 = vector.broadcast %210 : vector<1x144xf32> to vector<9x144xf32>
    %212 = arith.mulf %208, %211 : vector<9x144xf32>
    %213 = arith.addf %189, %212 : vector<9x144xf32>
    %214 = vector.extract_strided_slice %59 {offsets = [4, 16], sizes = [9, 144], strides = [1, 1]} : vector<14x224xf32> to vector<9x144xf32>
    %215 = vector.extract_strided_slice %31 {offsets = [4, 16], sizes = [1, 16], strides = [1, 1]} : vector<6x96xf32> to vector<1x16xf32>
    %216 = tpu.concatenate %215, %215, %215, %215, %215, %215, %215, %215, %215 in 1 : vector<1x16xf32>, vector<1x16xf32>, vector<1x16xf32>, vector<1x16xf32>, vector<1x16xf32>, vector<1x16xf32>, vector<1x16xf32>, vector<1x16xf32>, vector<1x16xf32> -> vector<1x144xf32>
    %217 = vector.broadcast %216 : vector<1x144xf32> to vector<9x144xf32>
    %218 = arith.mulf %214, %217 : vector<9x144xf32>
    %219 = arith.addf %195, %218 : vector<9x144xf32>
    %220 = vector.extract_strided_slice %59 {offsets = [4, 32], sizes = [9, 144], strides = [1, 1]} : vector<14x224xf32> to vector<9x144xf32>
    %221 = vector.extract_strided_slice %31 {offsets = [4, 32], sizes = [1, 16], strides = [1, 1]} : vector<6x96xf32> to vector<1x16xf32>
    %222 = tpu.concatenate %221, %221, %221, %221, %221, %221, %221, %221, %221 in 1 : vector<1x16xf32>, vector<1x16xf32>, vector<1x16xf32>, vector<1x16xf32>, vector<1x16xf32>, vector<1x16xf32>, vector<1x16xf32>, vector<1x16xf32>, vector<1x16xf32> -> vector<1x144xf32>
    %223 = vector.broadcast %222 : vector<1x144xf32> to vector<9x144xf32>
    %224 = arith.mulf %220, %223 : vector<9x144xf32>
    %225 = arith.addf %201, %224 : vector<9x144xf32>
    %226 = vector.extract_strided_slice %59 {offsets = [4, 48], sizes = [9, 144], strides = [1, 1]} : vector<14x224xf32> to vector<9x144xf32>
    %227 = vector.extract_strided_slice %31 {offsets = [4, 48], sizes = [1, 16], strides = [1, 1]} : vector<6x96xf32> to vector<1x16xf32>
    %228 = tpu.concatenate %227, %227, %227, %227, %227, %227, %227, %227, %227 in 1 : vector<1x16xf32>, vector<1x16xf32>, vector<1x16xf32>, vector<1x16xf32>, vector<1x16xf32>, vector<1x16xf32>, vector<1x16xf32>, vector<1x16xf32>, vector<1x16xf32> -> vector<1x144xf32>
    %229 = vector.broadcast %228 : vector<1x144xf32> to vector<9x144xf32>
    %230 = arith.mulf %226, %229 : vector<9x144xf32>
    %231 = arith.addf %207, %230 : vector<9x144xf32>
    %232 = vector.extract_strided_slice %59 {offsets = [4, 64], sizes = [9, 144], strides = [1, 1]} : vector<14x224xf32> to vector<9x144xf32>
    %233 = vector.extract_strided_slice %31 {offsets = [4, 64], sizes = [1, 16], strides = [1, 1]} : vector<6x96xf32> to vector<1x16xf32>
    %234 = tpu.concatenate %233, %233, %233, %233, %233, %233, %233, %233, %233 in 1 : vector<1x16xf32>, vector<1x16xf32>, vector<1x16xf32>, vector<1x16xf32>, vector<1x16xf32>, vector<1x16xf32>, vector<1x16xf32>, vector<1x16xf32>, vector<1x16xf32> -> vector<1x144xf32>
    %235 = vector.broadcast %234 : vector<1x144xf32> to vector<9x144xf32>
    %236 = arith.mulf %232, %235 : vector<9x144xf32>
    %237 = arith.addf %213, %236 : vector<9x144xf32>
    %238 = vector.extract_strided_slice %59 {offsets = [4, 80], sizes = [9, 144], strides = [1, 1]} : vector<14x224xf32> to vector<9x144xf32>
    %239 = vector.extract_strided_slice %31 {offsets = [4, 80], sizes = [1, 16], strides = [1, 1]} : vector<6x96xf32> to vector<1x16xf32>
    %240 = tpu.concatenate %239, %239, %239, %239, %239, %239, %239, %239, %239 in 1 : vector<1x16xf32>, vector<1x16xf32>, vector<1x16xf32>, vector<1x16xf32>, vector<1x16xf32>, vector<1x16xf32>, vector<1x16xf32>, vector<1x16xf32>, vector<1x16xf32> -> vector<1x144xf32>
    %241 = vector.broadcast %240 : vector<1x144xf32> to vector<9x144xf32>
    %242 = arith.mulf %238, %241 : vector<9x144xf32>
    %243 = arith.addf %219, %242 : vector<9x144xf32>
    %244 = vector.extract_strided_slice %59 {offsets = [5, 0], sizes = [9, 144], strides = [1, 1]} : vector<14x224xf32> to vector<9x144xf32>
    %245 = vector.extract_strided_slice %31 {offsets = [5, 0], sizes = [1, 16], strides = [1, 1]} : vector<6x96xf32> to vector<1x16xf32>
    %246 = tpu.concatenate %245, %245, %245, %245, %245, %245, %245, %245, %245 in 1 : vector<1x16xf32>, vector<1x16xf32>, vector<1x16xf32>, vector<1x16xf32>, vector<1x16xf32>, vector<1x16xf32>, vector<1x16xf32>, vector<1x16xf32>, vector<1x16xf32> -> vector<1x144xf32>
    %247 = vector.broadcast %246 : vector<1x144xf32> to vector<9x144xf32>
    %248 = arith.mulf %244, %247 : vector<9x144xf32>
    %249 = arith.addf %225, %248 : vector<9x144xf32>
    %250 = vector.extract_strided_slice %59 {offsets = [5, 16], sizes = [9, 144], strides = [1, 1]} : vector<14x224xf32> to vector<9x144xf32>
    %251 = vector.extract_strided_slice %31 {offsets = [5, 16], sizes = [1, 16], strides = [1, 1]} : vector<6x96xf32> to vector<1x16xf32>
    %252 = tpu.concatenate %251, %251, %251, %251, %251, %251, %251, %251, %251 in 1 : vector<1x16xf32>, vector<1x16xf32>, vector<1x16xf32>, vector<1x16xf32>, vector<1x16xf32>, vector<1x16xf32>, vector<1x16xf32>, vector<1x16xf32>, vector<1x16xf32> -> vector<1x144xf32>
    %253 = vector.broadcast %252 : vector<1x144xf32> to vector<9x144xf32>
    %254 = arith.mulf %250, %253 : vector<9x144xf32>
    %255 = arith.addf %231, %254 : vector<9x144xf32>
    %256 = vector.extract_strided_slice %59 {offsets = [5, 32], sizes = [9, 144], strides = [1, 1]} : vector<14x224xf32> to vector<9x144xf32>
    %257 = vector.extract_strided_slice %31 {offsets = [5, 32], sizes = [1, 16], strides = [1, 1]} : vector<6x96xf32> to vector<1x16xf32>
    %258 = tpu.concatenate %257, %257, %257, %257, %257, %257, %257, %257, %257 in 1 : vector<1x16xf32>, vector<1x16xf32>, vector<1x16xf32>, vector<1x16xf32>, vector<1x16xf32>, vector<1x16xf32>, vector<1x16xf32>, vector<1x16xf32>, vector<1x16xf32> -> vector<1x144xf32>
    %259 = vector.broadcast %258 : vector<1x144xf32> to vector<9x144xf32>
    %260 = arith.mulf %256, %259 : vector<9x144xf32>
    %261 = arith.addf %237, %260 : vector<9x144xf32>
    %262 = vector.extract_strided_slice %59 {offsets = [5, 48], sizes = [9, 144], strides = [1, 1]} : vector<14x224xf32> to vector<9x144xf32>
    %263 = vector.extract_strided_slice %31 {offsets = [5, 48], sizes = [1, 16], strides = [1, 1]} : vector<6x96xf32> to vector<1x16xf32>
    %264 = tpu.concatenate %263, %263, %263, %263, %263, %263, %263, %263, %263 in 1 : vector<1x16xf32>, vector<1x16xf32>, vector<1x16xf32>, vector<1x16xf32>, vector<1x16xf32>, vector<1x16xf32>, vector<1x16xf32>, vector<1x16xf32>, vector<1x16xf32> -> vector<1x144xf32>
    %265 = vector.broadcast %264 : vector<1x144xf32> to vector<9x144xf32>
    %266 = arith.mulf %262, %265 : vector<9x144xf32>
    %267 = arith.addf %243, %266 : vector<9x144xf32>
    %268 = vector.extract_strided_slice %59 {offsets = [5, 64], sizes = [9, 144], strides = [1, 1]} : vector<14x224xf32> to vector<9x144xf32>
    %269 = vector.extract_strided_slice %31 {offsets = [5, 64], sizes = [1, 16], strides = [1, 1]} : vector<6x96xf32> to vector<1x16xf32>
    %270 = tpu.concatenate %269, %269, %269, %269, %269, %269, %269, %269, %269 in 1 : vector<1x16xf32>, vector<1x16xf32>, vector<1x16xf32>, vector<1x16xf32>, vector<1x16xf32>, vector<1x16xf32>, vector<1x16xf32>, vector<1x16xf32>, vector<1x16xf32> -> vector<1x144xf32>
    %271 = vector.broadcast %270 : vector<1x144xf32> to vector<9x144xf32>
    %272 = arith.mulf %268, %271 : vector<9x144xf32>
    %273 = arith.addf %249, %272 : vector<9x144xf32>
    %274 = vector.extract_strided_slice %59 {offsets = [5, 80], sizes = [9, 144], strides = [1, 1]} : vector<14x224xf32> to vector<9x144xf32>
    %275 = vector.extract_strided_slice %31 {offsets = [5, 80], sizes = [1, 16], strides = [1, 1]} : vector<6x96xf32> to vector<1x16xf32>
    %276 = tpu.concatenate %275, %275, %275, %275, %275, %275, %275, %275, %275 in 1 : vector<1x16xf32>, vector<1x16xf32>, vector<1x16xf32>, vector<1x16xf32>, vector<1x16xf32>, vector<1x16xf32>, vector<1x16xf32>, vector<1x16xf32>, vector<1x16xf32> -> vector<1x144xf32>
    %277 = vector.broadcast %276 : vector<1x144xf32> to vector<9x144xf32>
    %278 = arith.mulf %274, %277 : vector<9x144xf32>
    %279 = arith.addf %255, %278 : vector<9x144xf32>
    %280 = arith.addf %261, %267 : vector<9x144xf32>
    %281 = arith.addf %273, %279 : vector<9x144xf32>
    %282 = arith.addf %280, %281 : vector<9x144xf32>
    %c0_38 = arith.constant 0 : index
    %c0_39 = arith.constant 0 : index
    %c0_40 = arith.constant 0 : index
    %283 = vector.load %arg10[%c0_38, %c0_39, %c0_40] : memref<1x144x144xf32, #tpu.memory_space<vmem>>, vector<1x144x144xf32>
    %284 = vector.shape_cast %283 : vector<1x144x144xf32> to vector<144x144xf32>
    %cst_41 = arith.constant dense<0.000000e+00> : vector<9x144xf32>
    %285 = tpu.matmul %282, %284, %cst_41 {dimension_numbers = #tpu.dot_dimension_numbers<[1], [0], [0], [1], [0, 0, 1, 1], [], []>} : vector<9x144xf32>, vector<144x144xf32>, vector<9x144xf32> -> vector<9x144xf32>
    %c0_42 = arith.constant 0 : index
    %c0_43 = arith.constant 0 : index
    %c0_44 = arith.constant 0 : index
    %286 = vector.load %arg11[%c0_42, %c0_43, %c0_44] : memref<1x1x144xf32, #tpu.memory_space<vmem>>, vector<1x1x144xf32>
    %287 = vector.shape_cast %286 : vector<1x1x144xf32> to vector<1x144xf32>
    %288 = vector.broadcast %287 : vector<1x144xf32> to vector<9x144xf32>
    %289 = arith.mulf %285, %288 : vector<9x144xf32>
    %c0_45 = arith.constant 0 : index
    %c0_46 = arith.constant 0 : index
    %c0_47 = arith.constant 0 : index
    %290 = vector.load %arg12[%c0_45, %c0_46, %c0_47] : memref<1x1x144xf32, #tpu.memory_space<vmem>>, vector<1x1x144xf32>
    %291 = vector.shape_cast %290 : vector<1x1x144xf32> to vector<1x144xf32>
    %292 = vector.broadcast %291 : vector<1x144xf32> to vector<9x144xf32>
    %293 = arith.addf %289, %292 : vector<9x144xf32>
    %cst_48 = arith.constant 0.000000e+00 : f32
    %294 = vector.broadcast %cst_48 : f32 to vector<9x144xf32>
    %295 = arith.maximumf %293, %294 : vector<9x144xf32>
    %c0_49 = arith.constant 0 : index
    %c0_50 = arith.constant 0 : index
    %c0_51 = arith.constant 0 : index
    %c0_52 = arith.constant 0 : index
    %296 = vector.load %arg13[%c0_49, %c0_50, %c0_51, %c0_52] : memref<1x1x9x144xf32, #tpu.memory_space<vmem>>, vector<1x1x9x144xf32>
    %297 = vector.shape_cast %296 : vector<1x1x9x144xf32> to vector<9x144xf32>
    %298 = vector.shape_cast %295 : vector<9x144xf32> to vector<1x1x9x144xf32>
    tpu.vector_store %arg13[%c0_49, %c0_50, %c0_51, %c0_52], %298 {strides = array<i32>} : memref<1x1x9x144xf32, #tpu.memory_space<vmem>>, vector<1x1x9x144xf32>,
    return
  }
  func.func @transform_0(%arg0: i32, %arg1: i32) -> (i32, i32, i32) {
    %c0_i32 = arith.constant 0 : i32
    %c0_i32_0 = arith.constant 0 : i32
    %c0_i32_1 = arith.constant 0 : i32
    return %arg0, %c0_i32, %c0_i32_0 : i32, i32, i32
  }
  func.func @transform_1(%arg0: i32, %arg1: i32) -> (i32, i32, i32) {
    %c0_i32 = arith.constant 0 : i32
    %c0_i32_0 = arith.constant 0 : i32
    %c0_i32_1 = arith.constant 0 : i32
    return %arg0, %c0_i32, %c0_i32_0 : i32, i32, i32
  }
  func.func @transform_2(%arg0: i32, %arg1: i32) -> (i32, i32, i32, i32) {
    %c0_i32 = arith.constant 0 : i32
    %c0_i32_0 = arith.constant 0 : i32
    %c0_i32_1 = arith.constant 0 : i32
    %c0_i32_2 = arith.constant 0 : i32
    return %arg1, %c0_i32, %c0_i32_0, %c0_i32_1 : i32, i32, i32, i32
  }
  func.func @transform_3(%arg0: i32, %arg1: i32) -> (i32, i32, i32) {
    %c0_i32 = arith.constant 0 : i32
    %c0_i32_0 = arith.constant 0 : i32
    %c0_i32_1 = arith.constant 0 : i32
    return %arg1, %c0_i32, %c0_i32_0 : i32, i32, i32
  }
  func.func @transform_4(%arg0: i32, %arg1: i32) -> (i32, i32, i32) {
    %c0_i32 = arith.constant 0 : i32
    %c0_i32_0 = arith.constant 0 : i32
    %c0_i32_1 = arith.constant 0 : i32
    return %arg1, %c0_i32, %c0_i32_0 : i32, i32, i32
  }
  func.func @transform_5(%arg0: i32, %arg1: i32) -> (i32, i32, i32, i32) {
    %c0_i32 = arith.constant 0 : i32
    %c0_i32_0 = arith.constant 0 : i32
    %c0_i32_1 = arith.constant 0 : i32
    %c0_i32_2 = arith.constant 0 : i32
    return %arg1, %c0_i32, %c0_i32_0, %c0_i32_1 : i32, i32, i32, i32
  }
  func.func @transform_6(%arg0: i32, %arg1: i32) -> (i32, i32, i32) {
    %c0_i32 = arith.constant 0 : i32
    %c0_i32_0 = arith.constant 0 : i32
    %c0_i32_1 = arith.constant 0 : i32
    return %arg1, %c0_i32, %c0_i32_0 : i32, i32, i32
  }
  func.func @transform_7(%arg0: i32, %arg1: i32) -> (i32, i32, i32) {
    %c0_i32 = arith.constant 0 : i32
    %c0_i32_0 = arith.constant 0 : i32
    %c0_i32_1 = arith.constant 0 : i32
    return %arg1, %c0_i32, %c0_i32_0 : i32, i32, i32
  }
  func.func @transform_8(%arg0: i32, %arg1: i32) -> (i32, i32, i32) {
    %c0_i32 = arith.constant 0 : i32
    %c0_i32_0 = arith.constant 0 : i32
    %c0_i32_1 = arith.constant 0 : i32
    return %arg1, %c0_i32, %c0_i32_0 : i32, i32, i32
  }
  func.func @transform_9(%arg0: i32, %arg1: i32) -> (i32, i32, i32) {
    %c0_i32 = arith.constant 0 : i32
    %c0_i32_0 = arith.constant 0 : i32
    %c0_i32_1 = arith.constant 0 : i32
    return %arg1, %c0_i32, %c0_i32_0 : i32, i32, i32
  }
  func.func @transform_10(%arg0: i32, %arg1: i32) -> (i32, i32, i32) {
    %c0_i32 = arith.constant 0 : i32
    %c0_i32_0 = arith.constant 0 : i32
    %c0_i32_1 = arith.constant 0 : i32
    return %arg1, %c0_i32, %c0_i32_0 : i32, i32, i32
  }
  func.func @transform_11(%arg0: i32, %arg1: i32) -> (i32, i32, i32, i32) {
    %c0_i32 = arith.constant 0 : i32
    %c0_i32_0 = arith.constant 0 : i32
    %c0_i32_1 = arith.constant 0 : i32
    return %arg0, %arg1, %c0_i32, %c0_i32_0 : i32, i32, i32, i32
  }
}

</mosaic_0001>

<bundles_post_ra>
// kernel: latent_depthwise_rpn_nhwc.1
= control target key start
LH: loop header
LB: loop body
LE: loop exit
PB: predicated region body
PF: predicated region fallthrough
CT: control target
= control target key end

     0   :  { %s3704_s17 = smov 0   ;;  %s3706_s18 = smov 0   ;;  %s5564_s0 = inlined_call_operand.vmem [shape: f32[2,8,64], index: 0, kind: input, shape index: {}]   ;;  %s5565_s1 = inlined_call_operand.vmem [shape: f32[2,16,128], index: 1, kind: input, shape index: {}]   ;;  %s5566_s2 = inlined_call_operand.vmem [shape: f32[2,3,64,96], index: 2, kind: input, shape index: {}]   ;;  %s5567_s3 = inlined_call_operand.vmem [shape: f32[2,1,96], index: 3, kind: input, shape index: {}]   ;;  %s5568_s4 = inlined_call_operand.vmem [shape: f32[2,1,96], index: 4, kind: input, shape index: {}]   ;;  %s5569_s5 = inlined_call_operand.vmem [shape: f32[2,3,128,224], index: 5, kind: input, shape index: {}]   ;;  %s5570_s6 = inlined_call_operand.vmem [shape: f32[2,1,224], index: 6, kind: input, shape index: {}]   ;;  %s5571_s7 = inlined_call_operand.vmem [shape: f32[2,1,224], index: 7, kind: input, shape index: {}]   ;;  %s5572_s8 = inlined_call_operand.vmem [shape: f32[2,144,144], index: 8, kind: input, shape index: {}]   ;;  %s5573_s9 = inlined_call_operand.vmem [shape: f32[2,1,144], index: 9, kind: input, shape index: {}]   ;;  %s5574_s10 = inlined_call_operand.vmem [shape: f32[2,1,144], index: 10, kind: input, shape index: {}]   ;;  %s5575_s11 = inlined_call_operand.vmem [shape: f32[2,2,9,144], index: 11, kind: output, shape index: {}]  }
   0x1   :  { %s3708_s19 = smov 0   ;;  %s3710_s20 = smov 0  }
   0x2   :  { %s3712_s21 = smov 0  }
   0x3 LB: > { %s30_s22 = sadd.s32 1, %s3624_s19  ;;  %s33_s23 = sadd.s32 1, %s3628_s20  ;;  %s3632_s21 = sphi %s3712_s21, %s21_s21   ;;  %s3628_s20 = sphi %s3710_s20, %s5711_s20   ;;  %s3624_s19 = sphi %s3708_s19, %s5710_s19   ;;  %s3620_s18 = sphi %s3706_s18, %s5709_s18   ;;  %s3616_s17 = sphi %s3704_s17, %s5708_s17  }
   0x4   : > { %p31_p0 = scmp.ge.s32.totalorder %s30_s22, 2  ;;  %p3253_p1 = scmp.ge.s32.totalorder %s3632_s21, 1 }
   0x5   : > { %p442_p2 = scmp.lt.s32.totalorder %s3632_s21, 5 }
   0x6   : > { %s5713_s22 = smov (%p31_p0, %s30_s22), 0  ;;  %s5715_s23 = smov (!%p31_p0, %s33_s23), %s3628_s20 }
   0x7   : > { %p443_p3 = pnand %p3253_p1, %p442_p2  ;;  %p35_p4 = scmp.ge.s32.totalorder %s5715_s23, 2 }
   0x9   : > { %s5717_s23 = smov (%p35_p4, %s5715_s23), 0  ;;  %446 = sbr.rel (%p443_p3) target bundleno = 1220 (0x4c4), region = 64 }
  0x10   : > { %p536_p5 = scmp.lt.s32.totalorder %s3616_s17, 1  ;;  %v3634_v0 = vmov 0.0|0.0   ;;  %vm3635_vm0 = vmmov 0   ;;  %v3636_v1 = vmov 0.0   ;;  %p527_p6 = scmp.lt.s32.totalorder %s3620_s18, 1  ;;  %vm613_vm1 = vcmask 523264  }
  0x11   : > { %3361 = vmatprep.subr.bf16.mxu0 %v3634_v0  ;;  %3320 = vmatprep.mubr.msk.f32.mxu0 %vm3635_vm0, %v3636_v1  ;;  %vm1107_vm2 = vcmask 1045504   ;;  %vm947_vm3 = vcmask 1046528   ;;  %s3640_s26 = smov 16   ;;  %s3643_s29 = smov 96   ;;  %vm2021_vm4 = vcmask 1044480   ;;  %vm1250_vm5 = vcmask 130048  }
  0x12   : > { %s5719_s17 = smov (!%p536_p5, %s3616_s17), 1  ;;  %1017 = vmatprep.mubr.f32.mxu1 %v3636_v1  ;;  %s5721_s18 = smov (!%p527_p6, %s3620_s18), 1  ;;  %vm1252_vm6 = vcmask 261120   ;;  %vm1254_vm7 = vcmask 392192   ;;  %vm1257_vm8 = vcmask 654336   ;;  %vm1259_vm9 = vcmask 785408  }
  0x13   : > { %s3541_s24 = smul.u32 192, %s5719_s17  ;;  %s5576_s13 = sshll.u32 %s5721_s18, 3  ;;  %vm1261_vm10 = vcmask 916480   ;;  %vm2553_vm11 = vcmask 1042432   ;;  %vm2307_vm12 = vcmask 1043456   ;;  %vm3047_vm13 = vcmask 122880  }
  0x14   : > { %s3542_s25 = smul.u32 768, %s5719_s17  ;;  %s530_s16 = scalar_lea.vmem %s5564_s0, %s5576_s13 }
  0x15   : > { %s3748_s28 = scalar_lea.vmem %s5566_s2, %s3541_s24  ;;  %v3790_v37 = vld [vmem:[%s530_s16] sm:$0xff]  ;;  %s3276_s24 = sshll.u32 %s5721_s18, 4 }
  0x16   : > { %s3753_s12 = scalar_lea.vmem %s5569_s5, %s3542_s25  ;;  %v593_v2 = vld [vmem:[%s3748_s28 + $0x40] sm:$0xff]  ;;  %v594_v3 = vld [vmem:[%s3748_s28 + $0x48] sm:$0xff]  ;;  %v595_v4 = vld [vmem:[%s3748_s28 + $0x50] sm:$0xff]  ;;  %v612_v43 = vrot.slane %v3790_v37, 1  ;;  %s535_s27 = scalar_lea.vmem %s5565_s1, %s3276_s24 }
  0x17   : > { %v3362_v5 = vpack.c.bf16 %v594_v3, %v593_v2  ;;  %v880_v6 = vld [vmem:[%s3753_s12 + $0x108] sm:$0xff]  ;;  %v882_v7 = vld [vmem:[%s3753_s12 + $0x118] sm:$0xff]  ;;  %v879_v8 = vld [vmem:[%s3753_s12 + $0x100] sm:$0xff]  ;;  %s543_s30 = scalar_lea.vmem %s5567_s3, %s5719_s17  ;;  %s546_s16 = scalar_lea.vmem %s5568_s4, %s5719_s17 }
  0x18   : > { %v3397_v9 = vpack.c.bf16 %v882_v7, %v880_v6  ;;  %v881_v10 = vld [vmem:[%s3753_s12 + $0x110] sm:$0xff]  ;;  %v596_v11 = vld [vmem:[%s3748_s28 + $0x58] sm:$0xff]  ;;  %v884_v12 = vld [vmem:[%s3753_s12 + $0x128] sm:$0xff]  ;;  %s5577_s24 = smov 112   ;;  %s5579_s25 = smov 48  }
  0x19   : > { %3363 = vmatpush3.bf16.msra.mxu0 %v3362_v5  ;;  %v3399_v13 = vpack.c.bf16 %v881_v10, %v879_v8  ;;  %v3365_v14 = vpack.c.bf16 %v596_v11, %v595_v4  ;;  %v886_v15 = vld [vmem:[%s3753_s12 + $0x138] sm:$0xff]  ;;  %v883_v16 = vld [vmem:[%s3753_s12 + $0x120] sm:$0xff]  ;;  %v885_v17 = vld [vmem:[%s3753_s12 + $0x130] sm:$0xff]  ;;  %s5629_s13 = smov 48  }
  0x1a   : > { %3398 = vmatprep.subr.bf16.mxu1 %v3397_v9  ;;  %3364 = vmatprep.subr.bf16.mxu0 %v3634_v0  ;;  %v3401_v18 = vpack.c.bf16 %v886_v15, %v884_v12  ;;  %v597_v19 = vld [vmem:[%s3748_s28 + $0x60] sm:$0xff]  ;;  %v598_v20 = vld [vmem:[%s3748_s28 + $0x68] sm:$0xff]  ;;  %v3403_v22 = vpack.c.bf16 %v885_v17, %v883_v16  ;;  %v890_v23 = vld [vmem:[%s3753_s12 + $0x158] sm:$0xff] }
  0x1b   : > { %v888_v21 = vld [vmem:[%s3753_s12 + $0x148] sm:$0xff]  ;;  %3400 = vmatpush1.bf16.msra.mxu1 %v3399_v13  ;;  %v887_v25 = vld [vmem:[%s3753_s12 + $0x140] sm:$0xff]  ;;  %v889_v26 = vld [vmem:[%s3753_s12 + $0x150] sm:$0xff]  ;;  %v3368_v27 = vpack.c.bf16 %v598_v20, %v597_v19 }
  0x1c   : > { %3402 = vmatprep.subr.bf16.mxu1 %v3401_v18  ;;  %v3405_v24 = vpack.c.bf16 %v890_v23, %v888_v21  ;;  %v892_v28 = vld [vmem:[%s3753_s12 + $0x168] sm:$0xff]  ;;  %v894_v29 = vld [vmem:[%s3753_s12 + $0x178] sm:$0xff]  ;;  %v599_v30 = vld [vmem:[%s3748_s28 + $0x70] sm:$0xff]  ;;  %v3407_v32 = vpack.c.bf16 %v889_v26, %v887_v25 }
  0x1d   : > { %3366 = vmatpush3.bf16.msra.mxu0 %v3365_v14  ;;  %v600_v31 = vld [vmem:[%s3748_s28 + $0x78] sm:$0xff]  ;;  %v3409_v33 = vpack.c.bf16 %v894_v29, %v892_v28  ;;  %v891_v34 = vld [vmem:[%s3753_s12 + $0x160] sm:$0xff]  ;;  %v893_v35 = vld [vmem:[%s3753_s12 + $0x170] sm:$0xff] }
  0x1e   : > { %3367 = vmatprep.subr.bf16.mxu0 %v3634_v0  ;;  %v3371_v36 = vpack.c.bf16 %v600_v31, %v599_v30  ;;  %v896_v38 = vld [vmem:[%s3753_s12 + $0x188] sm:$0xff]  ;;  %v898_v39 = vld [vmem:[%s3753_s12 + $0x198] sm:$0xff]  ;;  %v585_v40 = vld [vmem:[%s3748_s28] sm:$0xff]  ;;  %v3411_v42 = vpack.c.bf16 %v893_v35, %v891_v34 }
  0x1f   : > { %3404 = vmatpush1.bf16.msra.mxu1 %v3403_v22  ;;  %v586_v41 = vld [vmem:[%s3748_s28 + $0x8] sm:$0xff]  ;;  %v3413_v44 = vpack.c.bf16 %v898_v39, %v896_v38  ;;  %v895_v45 = vld [vmem:[%s3753_s12 + $0x180] sm:$0xff]  ;;  %v897_v46 = vld [vmem:[%s3753_s12 + $0x190] sm:$0xff] }
  0x20   : > { %3406 = vmatprep.subr.bf16.mxu1 %v3405_v24  ;;  %v3374_v47 = vpack.c.bf16 %v586_v41, %v585_v40  ;;  %v900_v48 = vld [vmem:[%s3753_s12 + $0x1a8] sm:$0xff]  ;;  %v902_v49 = vld [vmem:[%s3753_s12 + $0x1b8] sm:$0xff]  ;;  %v587_v50 = vld [vmem:[%s3748_s28 + $0x10] sm:$0xff]  ;;  %v3415_v52 = vpack.c.bf16 %v897_v46, %v895_v45 }
  0x21   : > { %3369 = vmatpush3.bf16.msra.mxu0 %v3368_v27  ;;  %v588_v51 = vld [vmem:[%s3748_s28 + $0x18] sm:$0xff]  ;;  %v3809_v53 = vld [vmem:[%s535_s27] sm:$0xff]  ;;  %v3417_v54 = vpack.c.bf16 %v902_v49, %v900_v48  ;;  %v901_v56 = vld [vmem:[%s3753_s12 + $0x1b0] sm:$0xff] }
  0x22   : > { %3370 = vmatprep.subr.bf16.mxu0 %v3634_v0  ;;  %v899_v55 = vld [vmem:[%s3753_s12 + $0x1a0] sm:$0xff]  ;;  %v3814_v57 = vld [vmem:[%s535_s27 + $0x8] sm:$0xff]  ;;  %v1108_v58 = vrot.slane %v3809_v53, 2  ;;  %v3377_v59 = vpack.c.bf16 %v588_v51, %v587_v50  ;;  %v906_v61 = vld [vmem:[%s3753_s12 + $0x1d8] sm:$0xff]  ;;  %v948_v23 = vrot.slane %v3809_v53, 1  ;;  %s3641_s27 = smov 80  }
  0x23   : > { %3408 = vmatpush1.bf16.msra.mxu1 %v3407_v32  ;;  %v904_v60 = vld [vmem:[%s3753_s12 + $0x1c8] sm:$0xff]  ;;  %v1109_v62 = vrot.slane %v3814_v57, 2  ;;  %v589_v63 = vld [vmem:[%s3748_s28 + $0x20] sm:$0xff]  ;;  %v3419_v3 = vpack.c.bf16 %v901_v56, %v899_v55  ;;  %v905_v7 = vld [vmem:[%s3753_s12 + $0x1d0] sm:$0xff]  ;;  %v949_v24 = vrot.slane %v3814_v57, 1 }
  0x24   : > { %3410 = vmatprep.subr.bf16.mxu1 %v3409_v33  ;;  %v590_v2 = vld [vmem:[%s3748_s28 + $0x28] sm:$0xff]  ;;  %v3421_v5 = vpack.c.bf16 %v906_v61, %v904_v60  ;;  %v903_v6 = vld [vmem:[%s3753_s12 + $0x1c0] sm:$0xff]  ;;  %v910_v10 = vld [vmem:[%s3753_s12 + $0x1f8] sm:$0xff] }
  0x25   : > { %3372 = vmatpush3.bf16.msra.mxu0 %v3371_v36  ;;  %v3828_v4 = vsel %vm1107_vm2, %v1108_v58, %v1109_v62  ;;  %v3380_v8 = vpack.c.bf16 %v590_v2, %v589_v63  ;;  %v908_v9 = vld [vmem:[%s3753_s12 + $0x1e8] sm:$0xff]  ;;  %v591_v11 = vld [vmem:[%s3748_s28 + $0x30] sm:$0xff]  ;;  %v592_v12 = vld [vmem:[%s3748_s28 + $0x38] sm:$0xff]  ;;  %v3423_v13 = vpack.c.bf16 %v905_v7, %v903_v6  ;;  %v950_v33 = vsel %vm947_vm3, %v948_v23, %v949_v24 }
  0x26   : > { %3373 = vmatprep.subr.bf16.mxu0 %v3634_v0  ;;  %v3425_v14 = vpack.c.bf16 %v910_v10, %v908_v9  ;;  %v907_v15 = vld [vmem:[%s3753_s12 + $0x1e0] sm:$0xff]  ;;  %v909_v16 = vld [vmem:[%s3753_s12 + $0x1f0] sm:$0xff]  ;;  %v3383_v17 = vpack.c.bf16 %v592_v12, %v591_v11  ;;  %v848_v18 = vld [vmem:[%s3753_s12 + $0x8] sm:$0xff]  ;;  %v758_v2 = vrot.slane %v3790_v37, 2 }
  0x27   : > { %3412 = vmatpush1.bf16.msra.mxu1 %v3411_v42  ;;  %v850_v19 = vld [vmem:[%s3753_s12 + $0x18] sm:$0xff]  ;;  %v601_v20 = vld [vmem:[%s3748_s28 + $0x80] sm:$0xff]  ;;  %v602_v21 = vld [vmem:[%s3748_s28 + $0x88] sm:$0xff]  ;;  %v3427_v22 = vpack.c.bf16 %v909_v16, %v907_v15 }
  0x28   : > { %3321 = vmatmul.mubr.msk.f32.vlgmr.msra.gmra.mrb[0].mxu0 %vm613_vm1, %v612_v43  ;;  %3414 = vmatprep.subr.bf16.mxu1 %v3413_v44  ;;  %v3429_v25 = vpack.c.bf16 %v850_v19, %v848_v18  ;;  %v847_v26 = vld [vmem:[%s3753_s12] sm:$0xff]  ;;  %v849_v27 = vld [vmem:[%s3753_s12 + $0x10] sm:$0xff]  ;;  %v3386_v28 = vpack.c.bf16 %v602_v21, %v601_v20  ;;  %v852_v29 = vld [vmem:[%s3753_s12 + $0x28] sm:$0xff] }
  0x29   : > { %3375 = vmatpush3.bf16.msra.mxu0 %v3374_v47  ;;  %3339 = vmatprep.mubr.msk.f32.mxu0 %vm3635_vm0, %v3636_v1  ;;  %v854_v30 = vld [vmem:[%s3753_s12 + $0x38] sm:$0xff]  ;;  %v603_v31 = vld [vmem:[%s3748_s28 + $0x90] sm:$0xff]  ;;  %v3431_v34 = vpack.c.bf16 %v849_v27, %v847_v26  ;;  %v851_v36 = vld [vmem:[%s3753_s12 + $0x20] sm:$0xff] }
  0x2a   : > { %3376 = vmatprep.subr.bf16.mxu0 %v3634_v0  ;;  %v604_v32 = vld [vmem:[%s3748_s28 + $0x98] sm:$0xff]  ;;  %v3433_v35 = vpack.c.bf16 %v854_v30, %v852_v29  ;;  %v853_v38 = vld [vmem:[%s3753_s12 + $0x30] sm:$0xff]  ;;  %v856_v40 = vld [vmem:[%s3753_s12 + $0x48] sm:$0xff] }
  0x2b   : > { %3416 = vmatpush1.bf16.msra.mxu1 %v3415_v52  ;;  %v3389_v39 = vpack.c.bf16 %v604_v32, %v603_v31  ;;  %v858_v41 = vld [vmem:[%s3753_s12 + $0x58] sm:$0xff]  ;;  %v605_v42 = vld [vmem:[%s3748_s28 + $0xa0] sm:$0xff]  ;;  %v606_v43 = vld [vmem:[%s3748_s28 + $0xa8] sm:$0xff]  ;;  %v3435_v44 = vpack.c.bf16 %v853_v38, %v851_v36 }
  0x2c   : > { %3418 = vmatprep.subr.bf16.mxu1 %v3417_v54  ;;  %v3437_v45 = vpack.c.bf16 %v858_v41, %v856_v40  ;;  %v855_v46 = vld [vmem:[%s3753_s12 + $0x40] sm:$0xff]  ;;  %v857_v47 = vld [vmem:[%s3753_s12 + $0x50] sm:$0xff]  ;;  %v3392_v48 = vpack.c.bf16 %v606_v43, %v605_v42  ;;  %v860_v49 = vld [vmem:[%s3753_s12 + $0x68] sm:$0xff] }
  0x2d   : > { %3378 = vmatpush3.bf16.msra.mxu0 %v3377_v59  ;;  %v862_v50 = vld [vmem:[%s3753_s12 + $0x78] sm:$0xff]  ;;  %v607_v51 = vld [vmem:[%s3748_s28 + $0xb0] sm:$0xff]  ;;  %v3439_v54 = vpack.c.bf16 %v857_v47, %v855_v46  ;;  %v859_v56 = vld [vmem:[%s3753_s12 + $0x60] sm:$0xff] }
  0x2e   : > { %3379 = vmatprep.subr.bf16.mxu0 %v3634_v0  ;;  %v608_v52 = vld [vmem:[%s3748_s28 + $0xb8] sm:$0xff]  ;;  %v3441_v55 = vpack.c.bf16 %v862_v50, %v860_v49  ;;  %v861_v58 = vld [vmem:[%s3753_s12 + $0x70] sm:$0xff]  ;;  %v864_v60 = vld [vmem:[%s3753_s12 + $0x88] sm:$0xff]  ;;  %s3642_s28 = smov 64  }
  0x2f   : > { %3420 = vmatpush1.bf16.msra.mxu1 %v3419_v3  ;;  %v3395_v59 = vpack.c.bf16 %v608_v52, %v607_v51  ;;  %v866_v61 = vld [vmem:[%s3753_s12 + $0x98] sm:$0xff]  ;;  %v3443_v63 = vpack.c.bf16 %v861_v58, %v859_v56  ;;  %v865_v6 = vld [vmem:[%s3753_s12 + $0x90] sm:$0xff]  ;;  %v868_v7 = vld [vmem:[%s3753_s12 + $0xa8] sm:$0xff] }
  0x30   : > { %3422 = vmatprep.subr.bf16.mxu1 %v3421_v5  ;;  %v3445_v3 = vpack.c.bf16 %v866_v61, %v864_v60  ;;  %v863_v5 = vld [vmem:[%s3753_s12 + $0x80] sm:$0xff]  ;;  %v869_v11 = vld [vmem:[%s3753_s12 + $0xb0] sm:$0xff]  ;;  %v874_v12 = vld [vmem:[%s3753_s12 + $0xd8] sm:$0xff] }
  0x31   : > { %3381 = vmatpush3.bf16.msra.mxu0 %v3380_v8  ;;  %v870_v8 = vld [vmem:[%s3753_s12 + $0xb8] sm:$0xff]  ;;  %v867_v10 = vld [vmem:[%s3753_s12 + $0xa0] sm:$0xff]  ;;  %v873_v16 = vld [vmem:[%s3753_s12 + $0xd0] sm:$0xff] }
  0x32   : > { %3382 = vmatprep.subr.bf16.mxu0 %v3634_v0  ;;  %v3449_v9 = vpack.c.bf16 %v870_v8, %v868_v7  ;;  %v871_v15 = vld [vmem:[%s3753_s12 + $0xc0] sm:$0xff]  ;;  %v878_v18 = vld [vmem:[%s3753_s12 + $0xf8] sm:$0xff]  ;;  %v912_v23 = vld [vmem:[%s3753_s12 + $0x208] sm:$0xff] }
  0x33   : > { %3424 = vmatpush1.bf16.msra.mxu1 %v3423_v13  ;;  %v3451_v13 = vpack.c.bf16 %v869_v11, %v867_v10  ;;  %v3455_v19 = vpack.c.bf16 %v873_v16, %v871_v15  ;;  %v875_v21 = vld [vmem:[%s3753_s12 + $0xe0] sm:$0xff]  ;;  %v916_v29 = vld [vmem:[%s3753_s12 + $0x228] sm:$0xff]  ;;  %v918_v30 = vld [vmem:[%s3753_s12 + $0x238] sm:$0xff] }
  0x34   : > { %3426 = vmatprep.subr.bf16.mxu1 %v3425_v14  ;;  %v911_v27 = vld [vmem:[%s3753_s12 + $0x200] sm:$0xff]  ;;  %v3465_v32 = vpack.c.bf16 %v918_v30, %v916_v29  ;;  %v922_v36 = vld [vmem:[%s3753_s12 + $0x258] sm:$0xff]  ;;  %v921_v41 = vld [vmem:[%s3753_s12 + $0x250] sm:$0xff] }
  0x35   : > { %3384 = vmatpush3.bf16.msra.mxu0 %v3383_v17  ;;  %v876_v17 = vld [vmem:[%s3753_s12 + $0xe8] sm:$0xff]  ;;  %v919_v40 = vld [vmem:[%s3753_s12 + $0x240] sm:$0xff]  ;;  %v926_v43 = vld [vmem:[%s3753_s12 + $0x278] sm:$0xff] }
  0x36   : > { %3385 = vmatprep.subr.bf16.mxu0 %v3634_v0  ;;  %v3457_v20 = vpack.c.bf16 %v878_v18, %v876_v17  ;;  %v924_v42 = vld [vmem:[%s3753_s12 + $0x268] sm:$0xff]  ;;  %v925_v46 = vld [vmem:[%s3753_s12 + $0x270] sm:$0xff]  ;;  %v927_v51 = vld [vmem:[%s3753_s12 + $0x280] sm:$0xff] }
  0x37   : > { %3428 = vmatpush1.bf16.msra.mxu1 %v3427_v22  ;;  %v877_v22 = vld [vmem:[%s3753_s12 + $0xf0] sm:$0xff]  ;;  %v928_v47 = vld [vmem:[%s3753_s12 + $0x288] sm:$0xff]  ;;  %v942_v8 = vld [vmem:[%s3753_s12 + $0x2f8] sm:$0xff] }
  0x38   : > { %3340 = vmatmul.mubr.msk.f32.vlgmr.msra.gmra.mrb[0].mxu0 %vm613_vm1, %v3790_v37  ;;  %3430 = vmatprep.subr.bf16.mxu1 %v3429_v25  ;;  %v872_v37 = vld [vmem:[%s3753_s12 + $0xc8] sm:$0xff]  ;;  %v3459_v25 = vpack.c.bf16 %v877_v22, %v875_v21  ;;  %v929_v52 = vld [vmem:[%s3753_s12 + $0x290] sm:$0xff]  ;;  %v939_v10 = vld [vmem:[%s3753_s12 + $0x2e0] sm:$0xff] }
  0x39   : > { %3387 = vmatpush3.bf16.msra.mxu0 %v3386_v28  ;;  %3358 = vmatprep.mubr.msk.f32.mxu0 %vm3635_vm0, %v3636_v1  ;;  %v3453_v14 = vpack.c.bf16 %v874_v12, %v872_v37  ;;  %v913_v28 = vld [vmem:[%s3753_s12 + $0x210] sm:$0xff]  ;;  %v3479_v56 = vpack.c.bf16 %v929_v52, %v927_v51  ;;  %v936_v61 = vld [vmem:[%s3753_s12 + $0x2c8] sm:$0xff]  ;;  %v3270_v12 = vld [vmem:[%s543_s30] ss:$0 sm:$0xff]  ;;  %s3960_s30 = sshll.u32 %s5719_s17, 1 }
  0x3a   : > { %1018 = vmatmul.mubr.f32.vlgmr.msra.gmra.mrb[0].mxu1 %v950_v33  ;;  %3388 = vmatprep.subr.bf16.mxu0 %v3634_v0  ;;  %v3463_v31 = vpack.c.bf16 %v913_v28, %v911_v27  ;;  %v915_v33 = vld [vmem:[%s3753_s12 + $0x220] sm:$0xff]  ;;  %v933_v60 = vld [vmem:[%s3753_s12 + $0x2b0] sm:$0xff]  ;;  %v940_v7 = vld [vmem:[%s3753_s12 + $0x2e8] sm:$0xff]  ;;  %s568_s14 = scalar_lea.vmem %s5573_s9, %s3960_s30 }
  0x3b   : > { %3432 = vmatpush1.bf16.msra.mxu1 %v3431_v34  ;;  %1023 = vmatprep.mubr.f32.mxu1 %v3636_v1  ;;  %v917_v34 = vld [vmem:[%s3753_s12 + $0x230] sm:$0xff] }
  0x3c   : > { %3434 = vmatprep.subr.bf16.mxu1 %v3433_v35  ;;  %v920_v35 = vld [vmem:[%s3753_s12 + $0x248] sm:$0xff]  ;;  %v3467_v38 = vpack.c.bf16 %v917_v34, %v915_v33  ;;  %v941_v11 = vld [vmem:[%s3753_s12 + $0x2f0] sm:$0xff] }
  0x3d   : > { %3390 = vmatpush3.bf16.msra.mxu0 %v3389_v39  ;;  %v3469_v39 = vpack.c.bf16 %v922_v36, %v920_v35  ;;  %v3491_v37 = vpack.c.bf16 %v941_v11, %v939_v10 }
  0x3e   : > { %3391 = vmatprep.subr.bf16.mxu0 %v3634_v0  ;;  %1024 = vmatmul.mubr.f32.gmra.mrb[2].mxu1 %v949_v24  ;;  %v914_v24 = vld [vmem:[%s3753_s12 + $0x218] sm:$0xff] }
  0x3f   : > { %3436 = vmatpush1.bf16.msra.mxu1 %v3435_v44  ;;  %1094 = vmatprep.mubr.f32.mxu1 %v3636_v1  ;;  %v3461_v26 = vpack.c.bf16 %v914_v24, %v912_v23  ;;  %v3473_v44 = vpack.c.bf16 %v926_v43, %v924_v42 }
  0x40   : > { %3438 = vmatprep.subr.bf16.mxu1 %v3437_v45  ;;  %v923_v45 = vld [vmem:[%s3753_s12 + $0x260] sm:$0xff] }
  0x41   : > { %3393 = vmatpush3.bf16.msra.mxu0 %v3392_v48  ;;  %v930_v48 = vld [vmem:[%s3753_s12 + $0x298] sm:$0xff]  ;;  %v3475_v49 = vpack.c.bf16 %v925_v46, %v923_v45 }
  0x42   : > { %3394 = vmatprep.subr.bf16.mxu0 %v3634_v0  ;;  %v3447_v0 = vpack.c.bf16 %v865_v6, %v863_v5  ;;  %v3477_v50 = vpack.c.bf16 %v930_v48, %v928_v47  ;;  %v935_v5 = vld [vmem:[%s3753_s12 + $0x2c0] sm:$0xff]  ;;  %v937_v6 = vld [vmem:[%s3753_s12 + $0x2d0] sm:$0xff] }
  0x43   : > { %3440 = vmatpush1.bf16.msra.mxu1 %v3439_v54  ;;  %v932_v54 = vld [vmem:[%s3753_s12 + $0x2a8] sm:$0xff] }
  0x44   : > { %3442 = vmatprep.subr.bf16.mxu1 %v3441_v55  ;;  %v934_v55 = vld [vmem:[%s3753_s12 + $0x2b8] sm:$0xff] }
  0x45   : > { %3396 = vmatpush3.bf16.msra.mxu0 %v3395_v59  ;;  %v3481_v58 = vpack.c.bf16 %v934_v55, %v932_v54  ;;  %v931_v59 = vld [vmem:[%s3753_s12 + $0x2a0] sm:$0xff] }
  0x47   : > { %3444 = vmatpush1.bf16.msra.mxu1 %v3443_v63  ;;  %v938_v63 = vld [vmem:[%s3753_s12 + $0x2d8] sm:$0xff]  ;;  %s3637_s12 = smov 32  }
  0x48   : > { %3359 = vmatmul.mubr.msk.f32.vlgmr.msra.gmra.mrb[0].mxu0 %vm613_vm1, %v758_v2  ;;  %3446 = vmatprep.subr.bf16.mxu1 %v3445_v3  ;;  %v3483_v2 = vpack.c.bf16 %v933_v60, %v931_v59  ;;  %v3485_v3 = vpack.c.bf16 %v938_v63, %v936_v61 }
  0x4b   : > { %3448 = vmatpush1.bf16.msra.mxu1 %v3447_v0  ;;  %v3487_v0 = vpack.c.bf16 %v937_v6, %v935_v5 }
  0x4c   : > { %3450 = vmatprep.subr.bf16.mxu1 %v3449_v9  ;;  %v3489_v9 = vpack.c.bf16 %v942_v8, %v940_v7 }
  0x4f   : > { %3452 = vmatpush1.bf16.msra.mxu1 %v3451_v13  ;;  %v3271_v13 = vld [vmem:[%s546_s16] ss:$0 sm:$0xff]  ;;  %s555_s16 = scalar_lea.vmem %s5570_s6, %s3960_s30 }
  0x50   : > { %3454 = vmatprep.subr.bf16.mxu1 %v3453_v14 }
  0x53   : > { %3456 = vmatpush1.bf16.msra.mxu1 %v3455_v19 }
  0x54   : > { %3458 = vmatprep.subr.bf16.mxu1 %v3457_v20 }
  0x57   : > { %3460 = vmatpush1.bf16.msra.mxu1 %v3459_v25 }
  0x58   : > { %3462 = vmatprep.subr.bf16.mxu1 %v3461_v26 }
  0x5a   : > { %1095 = vmatmul.mubr.f32.vlgmr.msra.gmra.mrb[0].mxu1 %v3809_v53  ;;  %v3471_v53 = vpack.c.bf16 %v921_v41, %v919_v40 }
  0x5b   : > { %3464 = vmatpush1.bf16.msra.mxu1 %v3463_v31  ;;  %1100 = vmatprep.mubr.f32.mxu1 %v3636_v1 }
  0x5c   : > { %3466 = vmatprep.subr.bf16.mxu1 %v3465_v32 }
  0x5e   : > { %1101 = vmatmul.mubr.f32.gmra.mrb[2].mxu1 %v3814_v57 }
  0x5f   : > { %3468 = vmatpush1.bf16.msra.mxu1 %v3467_v38  ;;  %1177 = vmatprep.mubr.f32.mxu1 %v3636_v1 }
  0x60   : > { %3470 = vmatprep.subr.bf16.mxu1 %v3469_v39 }
  0x63   : > { %3472 = vmatpush1.bf16.msra.mxu1 %v3471_v53 }
  0x64   : > { %3474 = vmatprep.subr.bf16.mxu1 %v3473_v44 }
  0x67   : > { %3476 = vmatpush1.bf16.msra.mxu1 %v3475_v49 }
  0x68   : > { %3478 = vmatprep.subr.bf16.mxu1 %v3477_v50 }
  0x6b   : > { %3480 = vmatpush1.bf16.msra.mxu1 %v3479_v56 }
  0x6c   : > { %3482 = vmatprep.subr.bf16.mxu1 %v3481_v58 }
  0x6f   : > { %3484 = vmatpush1.bf16.msra.mxu1 %v3483_v2 }
  0x70   : > { %3486 = vmatprep.subr.bf16.mxu1 %v3485_v3 }
  0x73   : > { %3488 = vmatpush1.bf16.msra.mxu1 %v3487_v0 }
  0x74   : > { %3490 = vmatprep.subr.bf16.mxu1 %v3489_v9 }
  0x77   : > { %3492 = vmatpush1.bf16.msra.mxu1 %v3491_v37 }
  0x7a   : > { %1178 = vmatmul.mubr.f32.vlgmr.msra.gmra.mrb[0].mxu1 %v3828_v4 }
  0x7b   : > { %1183 = vmatprep.mubr.f32.mxu1 %v3636_v1  ;;  %v1195_v1 = vlaneseq }
  0x7d   : > { %v3966_v57 = vshrl.u32 %v1195_v1, 7 }
  0x7e   : > { %1184 = vmatmul.mubr.f32.gmra.mrb[2].mxu1 %v1109_v62  ;;  %v943_v62 = vld [vmem:[%s555_s16] sm:$0x3] }
  0x7f   : > { %v3973_v18 = vsub.s32 0, %v3966_v57  ;;  %v3978_v22 = vsub.s32 1, %v3966_v57  ;;  %v3987_v36 = vsub.s32 3, %v3966_v57 }
  0x81   : > { %5627 = vst [vmem:[#allocation3_spill] sm:$0xff] %v3973_v18  ;;  %v1198_v20 = vrot.slane %v943_v62, %v3973_v18  ;;  %5628 = vst [vmem:[#allocation4_spill] sm:$0xff] %v3978_v22  ;;  %v1202_v26 = vrot.slane %v943_v62, %v3978_v22 }
 0x11b   : > { %v827_v14 = vpop.f32.mrb[0].mxu0 }
 0x11c   : > { %v838_v15 = vmul.f32 %v3270_v12, %v827_v14  ;;  %v3360_v16 = vpop.f32.mrb[1].mxu0 }
 0x11e   : > { %v845_v17 = vadd.f32 %v3271_v13, %v838_v15  ;;  %v4062_v15 = vsub.s32 5, %v3966_v57 }
 0x120   : > { %v3943_v4 = vmax.f32 %v845_v17, 0.0 }
 0x122   : > { %5626 = vst [vmem:[#allocation2_spill] sm:$0xff] %v3943_v4  ;;  %1232 = vrot.lane.b32.xlu1 %v3943_v4, %s3637_s12  ;;  %1247 = vrot.lane.b32.xlu0 %v3943_v4, %s5577_s24  ;;  %v1482_v40 = vrot.slane %v3943_v4, %v3978_v22  ;;  %v2012_v42 = vrot.slane %v3943_v4, %v3987_v36  ;;  %s3543_s24 = smul.u32 288, %s5719_s17 }
 0x126   : > { %1235 = vrot.lane.b32.xlu1 %v3943_v4, %s5579_s25  ;;  %1229 = vrot.lane.b32.xlu0 %v3943_v4, %s3640_s26  ;;  %s559_s25 = scalar_lea.vmem %s5571_s7, %s3960_s30 }
 0x127   : > { %v944_v19 = vld [vmem:[%s559_s25] sm:$0x3] }
 0x128   : > { %v1213_v21 = vrot.slane %v944_v19, %v3973_v18  ;;  %v1217_v30 = vrot.slane %v944_v19, %v3978_v22 }
 0x12a   : > { %1241 = vrot.lane.b32.xlu1 %v3943_v4, %s3641_s27  ;;  %1238 = vrot.lane.b32.xlu0 %v3943_v4, %s3642_s28 }
 0x12e   : > { %1244 = vrot.lane.b32.xlu0 %v3943_v4, %s3643_s29 }
 0x14d   : > { %v1179_v23 = vpop.f32.mrb[0].mxu1 }
 0x14e   : > { %v1205_v24 = vmul.f32 %v1198_v20, %v1179_v23  ;;  %v1181_v25 = vpop.f32.mrb[1].mxu1 }
 0x14f   : > { %v1206_v29 = vmul.f32 %v1202_v26, %v1181_v25 }
 0x150   : > { %v3981_v27 = vadd.f32 %v1213_v21, %v1205_v24 }
 0x151   : > { %v1185_v28 = vpop.f32.mrb[2].mxu1  ;;  %v1221_v38 = vadd.f32 %v1217_v30, %v1206_v29 }
 0x152   : > { %v1207_v31 = vmul.f32 %v1198_v20, %v1185_v28  ;;  %v1187_v32 = vpop.f32.mrb[3].mxu1 }
 0x153   : > { %v1208_v33 = vmul.f32 %v1202_v26, %v1187_v32  ;;  %v3996_v43 = vmax.f32 %v1221_v38, 0.0 }
 0x154   : > { %v3984_v34 = vadd.f32 %v1213_v21, %v1207_v31 }
 0x155   : > { %v1223_v35 = vadd.f32 %v1217_v30, %v1208_v33  ;;  %v1484_v45 = vmul.f32 %v1482_v40, %v3996_v43  ;;  %v2014_v48 = vmul.f32 %v2012_v42, %v3996_v43 }
 0x157   : > { %v3989_v39 = vmax.f32 %v1223_v35, 0.0  ;;  %v1494_v47 = vrot.slane %v1484_v45, 1  ;;  %v2025_v50 = vrot.slane %v2014_v48, 3 }
 0x159   : > { %v1486_v41 = vmul.f32 %v1482_v40, %v3989_v39  ;;  %v2016_v44 = vmul.f32 %v2012_v42, %v3989_v39 }
 0x15b   : > { %v1495_v53 = vrot.slane %v1486_v41, 1  ;;  %v2026_v46 = vrot.slane %v2016_v44, 3 }
 0x15d   : > { %1503 = vrot.lane.b32.xlu0 %v1495_v53, %s3637_s12  ;;  %v1496_v49 = vsel %vm947_vm3, %v1494_v47, %v1495_v53  ;;  %v2027_v51 = vsel %vm2021_vm4, %v2025_v50, %v2026_v46 }
 0x161   : > { %2034 = vrot.lane.b32.xlu0 %v2026_v46, %s3637_s12 }
 0x165   : > { %1499 = vrot.lane.b32.xlu0 %v1496_v49, %s3637_s12  ;;  %v4136_v49 = vsub.s32 2, %v3966_v57 }
 0x167   : > { %5630 = vst [vmem:[#allocation5_spill] sm:$0xff] %v4136_v49 }
 0x169   : > { %2030 = vrot.lane.b32.xlu0 %v2027_v51, %s3637_s12 }
 0x194   : > { %v4007_v52 = vpop.permute.xlu1 %1232  ;;  %v4009_v54 = vpop.permute.xlu0 %1247 }
 0x195   : > { %v1522_v55 = vrot.slane %v4009_v54, %v3978_v22  ;;  %v1279_v58 = vsel %vm1250_vm5, %v4009_v54, %v3943_v4  ;;  %v2053_v6 = vrot.slane %v4009_v54, %v3987_v36  ;;  %v2585_v1 = vrot.slane %v4009_v54, %v4062_v15 }
 0x197   : > { %1527 = vrot.lane.b32.xlu0 %v1522_v55, %s3640_s26 }
 0x198   : > { %v4014_v56 = vpop.permute.xlu1 %1235  ;;  %v4019_v59 = vpop.permute.xlu0 %1229 }
 0x199   : > { %v1280_v60 = vsel %vm1252_vm6, %v1279_v58, %v4019_v59  ;;  %v1718_v61 = vrot.slane %v4014_v56, %v3978_v22  ;;  %v2249_v11 = vrot.slane %v4014_v56, %v3987_v36  ;;  %v2781_v23 = vrot.slane %v4014_v56, %v4062_v15 }
 0x19a   : > { %v1281_v63 = vsel %vm1254_vm7, %v1280_v60, %v4007_v52  ;;  %v1439_v47 = vrot.slane %v4014_v56, %v3973_v18  ;;  %v1963_v58 = vrot.slane %v4014_v56, %v4136_v49 }
 0x19b   : > { %1723 = vrot.lane.b32.xlu0 %v1718_v61, %s3641_s27  ;;  %v1282_v2 = vsel %vm613_vm1, %v1281_v63, %v4014_v56 }
 0x19c   : > { %v4030_v3 = vpop.permute.xlu0 %1238  ;;  %v4032_v5 = vpop.permute.xlu1 %1241 }
 0x19d   : > { %v1283_v7 = vsel %vm1257_vm8, %v1282_v2, %v4030_v3  ;;  %v1425_v8 = vsel %vm1250_vm5, %v4014_v56, %v4030_v3  ;;  %v1375_v26 = vsel %vm1250_vm5, %v4030_v3, %v4032_v5  ;;  %v1620_v29 = vrot.slane %v4032_v5, %v3978_v22 }
 0x19e   : > { %v1284_v9 = vsel %vm1259_vm9, %v1283_v7, %v4032_v5  ;;  %v1426_v10 = vsel %vm1252_vm6, %v1425_v8, %v4032_v5  ;;  %v1669_v33 = vrot.slane %v4030_v3, %v3978_v22  ;;  %v1357_v42 = vrot.slane %v4032_v5, %v3973_v18 }
 0x19f   : > { %2058 = vrot.lane.b32.xlu0 %v2053_v6, %s3640_s26  ;;  %v1875_v51 = vrot.slane %v4032_v5, %v4136_v49  ;;  %v2151_v61 = vrot.slane %v4032_v5, %v3987_v36  ;;  %v2200_v2 = vrot.slane %v4030_v3, %v3987_v36  ;;  %v4165_v7 = vsub.s32 4, %v3966_v57 }
 0x1a0   : > { %v4042_v0 = vpop.permute.xlu0 %1244  ;;  %v2683_v57 = vrot.slane %v4032_v5, %v4062_v15 }
 0x1a1   : > { %v4052_v37 = vsel %vm1261_vm10, %v1284_v9, %v4042_v0  ;;  %v1427_v12 = vsel %vm1254_vm7, %v1426_v10, %v4042_v0  ;;  %v1343_v19 = vsel %vm1250_vm5, %v4032_v5, %v4042_v0  ;;  %v1376_v28 = vsel %vm1252_vm6, %v1375_v26, %v4042_v0  ;;  %5631 = vst [vmem:[#allocation6_spill] sm:$0xff] %v4165_v7 }
 0x1a2   : > { %v1518_v13 = vrot.slane %v4052_v37, %v3978_v22  ;;  %v1428_v14 = vsel %vm613_vm1, %v1427_v12, %v4009_v54  ;;  %v1344_v21 = vsel %vm1252_vm6, %v1343_v19, %v4009_v54  ;;  %v2049_v24 = vrot.slane %v4052_v37, %v3987_v36 }
 0x1a3   : > { %2254 = vrot.lane.b32.xlu0 %v2249_v11, %s3641_s27  ;;  %v1429_v16 = vsel %vm1257_vm8, %v1428_v14, %v3943_v4  ;;  %v1345_v25 = vsel %vm1254_vm7, %v1344_v21, %v3943_v4  ;;  %v1377_v32 = vsel %vm1254_vm7, %v1376_v28, %v4009_v54  ;;  %v2581_v38 = vrot.slane %v4052_v37, %v4062_v15 }
 0x1a4   : > { %1525 = vrot.lane.b32.xlu1 %v1518_v13, %s3640_s26  ;;  %v1430_v17 = vsel %vm1259_vm9, %v1429_v16, %v4019_v59  ;;  %v1346_v31 = vsel %vm613_vm1, %v1345_v25, %v4019_v59  ;;  %v1378_v40 = vsel %vm613_vm1, %v1377_v32, %v3943_v4  ;;  %v2407_v8 = vrot.slane %v4032_v5, %v4165_v7 }
 0x1a5   : > { %v4073_v62 = vsel %vm1261_vm10, %v1430_v17, %v4007_v52  ;;  %v1347_v35 = vsel %vm1257_vm8, %v1346_v31, %v4007_v52  ;;  %v1379_v53 = vsel %vm1257_vm8, %v1378_v40, %v4019_v59  ;;  %v2495_v10 = vrot.slane %v4014_v56, %v4165_v7 }
 0x1a6   : > { %v1714_v20 = vrot.slane %v4073_v62, %v3978_v22  ;;  %v2245_v30 = vrot.slane %v4073_v62, %v3987_v36  ;;  %v1348_v41 = vsel %vm1259_vm9, %v1347_v35, %v4014_v56  ;;  %v2777_v44 = vrot.slane %v4073_v62, %v4062_v15 }
 0x1a7   : > { %2590 = vrot.lane.b32.xlu0 %v2585_v1, %s3640_s26  ;;  %v1349_v45 = vsel %vm1261_vm10, %v1348_v41, %v4030_v3  ;;  %v1380_v46 = vsel %vm1259_vm9, %v1379_v53, %v4007_v52  ;;  %v1435_v63 = vrot.slane %v4073_v62, %v3973_v18  ;;  %v1959_v9 = vrot.slane %v4073_v62, %v4136_v49 }
 0x1a8   : > { %1721 = vrot.lane.b32.xlu1 %v1714_v20, %s3641_s27  ;;  %v1616_v48 = vrot.slane %v1349_v45, %v3978_v22  ;;  %v4140_v50 = vsel %vm1261_vm10, %v1380_v46, %v4014_v56  ;;  %v1353_v60 = vrot.slane %v1349_v45, %v3973_v18  ;;  %v1871_v6 = vrot.slane %v1349_v45, %v4136_v49 }
 0x1a9   : > { %v1665_v55 = vrot.slane %v4140_v50, %v3978_v22  ;;  %v2147_v11 = vrot.slane %v1349_v45, %v3987_v36  ;;  %v1311_v12 = vsel %vm1250_vm5, %v4042_v0, %v4009_v54  ;;  %v2196_v13 = vrot.slane %v4140_v50, %v3987_v36 }
 0x1aa   : > { %v1312_v14 = vsel %vm1252_vm6, %v1311_v12, %v3943_v4  ;;  %v2732_v16 = vrot.slane %v4030_v3, %v4062_v15  ;;  %v2403_v17 = vrot.slane %v1349_v45, %v4165_v7  ;;  %v1571_v19 = vrot.slane %v4042_v0, %v3978_v22 }
 0x1ab   : > { %2786 = vrot.lane.b32.xlu0 %v2781_v23, %s3641_s27  ;;  %v1313_v1 = vsel %vm1254_vm7, %v1312_v14, %v4019_v59  ;;  %v2491_v20 = vrot.slane %v4073_v62, %v4165_v7  ;;  %v1293_v23 = vrot.slane %v4009_v54, %v3973_v18  ;;  %v2679_v25 = vrot.slane %v1349_v45, %v4062_v15 }
 0x1ac   : > { %2056 = vrot.lane.b32.xlu1 %v2049_v24, %s3640_s26  ;;  %v1314_v21 = vsel %vm613_vm1, %v1313_v1, %v4007_v52  ;;  %v1325_v26 = vrot.slane %v4042_v0, %v3973_v18  ;;  %v2728_v28 = vrot.slane %v4140_v50, %v4062_v15  ;;  %v1797_v32 = vrot.slane %v4009_v54, %v4136_v49 }
 0x1ad   : > { %v1315_v24 = vsel %vm1257_vm8, %v1314_v21, %v4014_v56  ;;  %v1836_v35 = vrot.slane %v4042_v0, %v4136_v49  ;;  %v1914_v41 = vrot.slane %v4030_v3, %v4136_v49  ;;  %v1793_v45 = vrot.slane %v4052_v37, %v4136_v49 }
 0x1ae   : > { %v1316_v62 = vsel %vm1259_vm9, %v1315_v24, %v4030_v3  ;;  %v2329_v46 = vrot.slane %v4009_v54, %v4165_v7 }
 0x1af   : > { %1625 = vrot.lane.b32.xlu0 %v1620_v29, %s5629_s13  ;;  %v4221_v29 = vsel %vm1261_vm10, %v1316_v62, %v4032_v5 }
 0x1b0   : > { %2252 = vrot.lane.b32.xlu1 %v2245_v30, %s3641_s27  ;;  %v1389_v30 = vrot.slane %v4030_v3, %v3973_v18  ;;  %v1567_v31 = vrot.slane %v4221_v29, %v3978_v22 }
 0x1b3   : > { %1674 = vrot.lane.b32.xlu0 %v1669_v33, %s3642_s28  ;;  %v1289_v33 = vrot.slane %v4052_v37, %v3973_v18 }
 0x1b4   : > { %2588 = vrot.lane.b32.xlu1 %v2581_v38, %s3640_s26  ;;  %v1321_v38 = vrot.slane %v4221_v29, %v3973_v18 }
 0x1b7   : > { %1362 = vrot.lane.b32.xlu0 %v1357_v42, %s5629_s13  ;;  %v1385_v42 = vrot.slane %v4140_v50, %v3973_v18 }
 0x1b8   : > { %2784 = vrot.lane.b32.xlu1 %v2777_v44, %s3641_s27  ;;  %v2102_v44 = vrot.slane %v4042_v0, %v3987_v36 }
 0x1bb   : > { %1444 = vrot.lane.b32.xlu0 %v1439_v47, %s3641_s27  ;;  %v1832_v47 = vrot.slane %v4221_v29, %v4136_v49 }
 0x1bc   : > { %1623 = vrot.lane.b32.xlu1 %v1616_v48, %s5629_s13  ;;  %v1251_v48 = vsel %vm1250_vm5, %v3943_v4, %v4019_v59 }
 0x1bf   : > { %1880 = vrot.lane.b32.xlu0 %v1875_v51, %s5629_s13 }
 0x1c0   : > { %1672 = vrot.lane.b32.xlu1 %v1665_v55, %s3642_s28  ;;  %v2368_v55 = vrot.slane %v4042_v0, %v4165_v7 }
 0x1c3   : > { %1968 = vrot.lane.b32.xlu0 %v1963_v58, %s3641_s27  ;;  %v1253_v58 = vsel %vm1252_vm6, %v1251_v48, %v4007_v52 }
 0x1c4   : > { %1360 = vrot.lane.b32.xlu1 %v1353_v60, %s5629_s13  ;;  %v1910_v60 = vrot.slane %v4140_v50, %v4136_v49  ;;  %v1255_v59 = vsel %vm1254_vm7, %v1253_v58, %v4014_v56  ;;  %v2325_v56 = vrot.slane %v4052_v37, %v4165_v7 }
 0x1c5   : > { %v1256_v52 = vsel %vm613_vm1, %v1255_v59, %v4030_v3 }
 0x1c7   : > { %2156 = vrot.lane.b32.xlu0 %v2151_v61, %s5629_s13 }
 0x1c8   : > { %1442 = vrot.lane.b32.xlu1 %v1435_v63, %s3641_s27  ;;  %v2446_v63 = vrot.slane %v4030_v3, %v4165_v7  ;;  %v2364_v3 = vrot.slane %v4221_v29, %v4165_v7 }
 0x1cb   : > { %2205 = vrot.lane.b32.xlu0 %v2200_v2, %s3642_s28  ;;  %v2098_v2 = vrot.slane %v4221_v29, %v3987_v36 }
 0x1cc   : > { %1878 = vrot.lane.b32.xlu1 %v1871_v6, %s5629_s13 }
 0x1cf   : > { %2412 = vrot.lane.b32.xlu0 %v2407_v8, %s5629_s13  ;;  %v4240_v40 = vpop.permute.xlu0 %1503  ;;  %v2634_v8 = vrot.slane %v4042_v0, %v4062_v15 }
 0x1d0   : > { %1966 = vrot.lane.b32.xlu1 %v1959_v9, %s3641_s27  ;;  %5632 = vst [vmem:[#allocation7_spill] sm:$0xff] %v4240_v40  ;;  %v1258_v9 = vsel %vm1257_vm8, %v1256_v52, %v4032_v5  ;;  %v2442_v5 = vrot.slane %v4140_v50, %v4165_v7 }
 0x1d3   : > { %2500 = vrot.lane.b32.xlu0 %v2495_v10, %s3641_s27  ;;  %v4250_v53 = vpop.permute.xlu0 %2034  ;;  %v1260_v10 = vsel %vm1259_vm9, %v1258_v9, %v4042_v0  ;;  %v4313_v0 = vmax.f32 %v3984_v34, 0.0 }
 0x1d4   : > { %2154 = vrot.lane.b32.xlu1 %v2147_v11, %s5629_s13  ;;  %5633 = vst [vmem:[#allocation8_spill] sm:$0xff] %v4250_v53 }
 0x1d7   : > { %2688 = vrot.lane.b32.xlu0 %v2683_v57, %s5629_s13  ;;  %v4265_v51 = vpop.permute.xlu0 %1499  ;;  %v4303_v57 = vsel %vm1261_vm10, %v1260_v10, %v4009_v54  ;;  %v2630_v54 = vrot.slane %v4221_v29, %v4062_v15 }
 0x1d8   : > { %2203 = vrot.lane.b32.xlu1 %v2196_v13, %s3642_s28  ;;  %5634 = vst [vmem:[#allocation9_spill] sm:$0xff] %v4265_v51  ;;  %5636 = vst [vmem:[#allocation11_spill] sm:$0xff] %v4303_v57  ;;  %v1478_v12 = vrot.slane %v4303_v57, %v3978_v22  ;;  %v2008_v50 = vrot.slane %v4303_v57, %v3987_v36 }
 0x1db   : > { %2737 = vrot.lane.b32.xlu0 %v2732_v16, %s3642_s28  ;;  %v4279_v61 = vpop.permute.xlu0 %2030  ;;  %v1485_v16 = vmul.f32 %v1478_v12, %v4313_v0 }
 0x1dc   : > { %2410 = vrot.lane.b32.xlu1 %v2403_v17, %s5629_s13  ;;  %5635 = vst [vmem:[#allocation10_spill] sm:$0xff] %v4279_v61  ;;  %v4327_v17 = vmax.f32 %v3981_v27, 0.0 }
 0x1de   : > { %v1483_v21 = vmul.f32 %v1478_v12, %v4327_v17  ;;  %v2013_v27 = vmul.f32 %v2008_v50, %v4327_v17 }
 0x1df   : > { %1576 = vrot.lane.b32.xlu0 %v1571_v19, %s3637_s12  ;;  %v1492_v19 = vrot.slane %v1485_v16, 1 }
 0x1e0   : > { %2498 = vrot.lane.b32.xlu1 %v2491_v20, %s3641_s27  ;;  %v2015_v20 = vmul.f32 %v2008_v50, %v4313_v0  ;;  %v2022_v29 = vrot.slane %v2013_v27, 3  ;;  %s5358_s27 = scalar_lea.vmem %s5572_s8, %s3543_s24  ;;  %s5706_s24 = sshll.u32 %s5721_s18, 3 }
 0x1e2   : > { %v2023_v36 = vrot.slane %v2015_v20, 3 }
 0x1e3   : > { %1298 = vrot.lane.b32.xlu0 %v1293_v23, %s3640_s26 }
 0x1e4   : > { %2686 = vrot.lane.b32.xlu1 %v2679_v25, %s5629_s13  ;;  %v1491_v25 = vrot.slane %v1483_v21, 1  ;;  %s572_s13 = scalar_lea.vmem %s5574_s10, %s3960_s30 }
 0x1e7   : > { %1330 = vrot.lane.b32.xlu0 %v1325_v26, %s3637_s12 }
 0x1e8   : > { %2735 = vrot.lane.b32.xlu1 %v2728_v28, %s3642_s28  ;;  %v1493_v28 = vsel %vm947_vm3, %v1491_v25, %v1492_v19 }
 0x1eb   : > { %1394 = vrot.lane.b32.xlu0 %v1389_v30, %s3642_s28 }
 0x1ec   : > { %1574 = vrot.lane.b32.xlu1 %v1567_v31, %s3637_s12  ;;  %v2024_v31 = vsel %vm2021_vm4, %v2022_v29, %v2023_v36 }
 0x1ef   : > { %1802 = vrot.lane.b32.xlu0 %v1797_v32, %s3640_s26 }
 0x1f0   : > { %1296 = vrot.lane.b32.xlu1 %v1289_v33, %s3640_s26 }
 0x1f3   : > { %1841 = vrot.lane.b32.xlu0 %v1836_v35, %s3637_s12 }
 0x1f4   : > { %1328 = vrot.lane.b32.xlu1 %v1321_v38, %s3637_s12 }
 0x1f7   : > { %1919 = vrot.lane.b32.xlu0 %v1914_v41, %s3642_s28 }
 0x1f8   : > { %1392 = vrot.lane.b32.xlu1 %v1385_v42, %s3642_s28 }
 0x1fb   : > { %2107 = vrot.lane.b32.xlu0 %v2102_v44, %s3637_s12 }
 0x1fc   : > { %1800 = vrot.lane.b32.xlu1 %v1793_v45, %s3640_s26 }
 0x1ff   : > { %2334 = vrot.lane.b32.xlu0 %v2329_v46, %s3640_s26 }
 0x200   : > { %1839 = vrot.lane.b32.xlu1 %v1832_v47, %s3637_s12 }
 0x203   : > { %2373 = vrot.lane.b32.xlu0 %v2368_v55, %s3637_s12 }
 0x204   : > { %1917 = vrot.lane.b32.xlu1 %v1910_v60, %s3642_s28 }
 0x207   : > { %2451 = vrot.lane.b32.xlu0 %v2446_v63, %s3642_s28 }
 0x208   : > { %2105 = vrot.lane.b32.xlu1 %v2098_v2, %s3637_s12 }
 0x209   : > { %v1528_v6 = vpop.permute.xlu0 %1527 }
 0x20b   : > { %2639 = vrot.lane.b32.xlu0 %v2634_v8, %s3637_s12 }
 0x20c   : > { %2332 = vrot.lane.b32.xlu1 %v2325_v56, %s3640_s26 }
 0x20d   : > { %v1724_v11 = vpop.permute.xlu0 %1723 }
 0x210   : > { %2371 = vrot.lane.b32.xlu1 %v2364_v3, %s3637_s12 }
 0x211   : > { %v4306_v37 = vpop.permute.xlu0 %2058 }
 0x214   : > { %2449 = vrot.lane.b32.xlu1 %v2442_v5, %s3642_s28 }
 0x215   : > { %v4316_v13 = vpop.permute.xlu0 %2254 }
 0x216   : > { %v4318_v14 = vpop.permute.xlu1 %1525 }
 0x217   : > { %v4372_v58 = vsel %vm1250_vm5, %v4318_v14, %v1528_v6  ;;  %v4380_v63 = vmul.f32 %v4318_v14, %v4313_v0 }
 0x218   : > { %2637 = vrot.lane.b32.xlu1 %v2630_v54, %s3637_s12  ;;  %v4387_v8 = vmul.f32 %v4372_v58, %v3989_v39 }
 0x219   : > { %v4329_v34 = vpop.permute.xlu0 %2590  ;;  %v5590_v9 = vrot.slane %v4380_v63, 1 }
 0x21a   : > { %v4331_v1 = vpop.permute.xlu1 %1721  ;;  %v5587_v3 = vrot.slane %v4387_v8, 1 }
 0x21b   : > { %v4392_v6 = vsel %vm1257_vm8, %v4331_v1, %v1724_v11  ;;  %v4400_v10 = vmul.f32 %v4331_v1, %v4313_v0 }
 0x21c   : > { %1501 = vrot.lane.b32.xlu1 %v1492_v19, %s3637_s12  ;;  %v4405_v5 = vmul.f32 %v4392_v6, %v3989_v39 }
 0x21d   : > { %v4336_v23 = vpop.permute.xlu0 %2786  ;;  %v5586_v16 = vrot.slane %v4400_v10, 1 }
 0x21e   : > { %v4338_v24 = vpop.permute.xlu1 %2056  ;;  %v5585_v19 = vrot.slane %v4405_v5, 1 }
 0x21f   : > { %v4413_v11 = vsel %vm1250_vm5, %v4338_v24, %v4306_v37  ;;  %v4423_v50 = vmul.f32 %v4338_v24, %v4313_v0 }
 0x220   : > { %2032 = vrot.lane.b32.xlu1 %v2023_v36, %s3637_s12  ;;  %v4428_v20 = vmul.f32 %v4413_v11, %v3989_v39 }
 0x221   : > { %v4342_v62 = vpop.permute.xlu0 %1625  ;;  %v5584_v36 = vrot.slane %v4423_v50, 3 }
 0x222   : > { %v4344_v26 = vpop.permute.xlu1 %2252 }
 0x223   : > { %v4436_v37 = vsel %vm1257_vm8, %v4344_v26, %v4316_v13  ;;  %v4446_v25 = vmul.f32 %v4344_v26, %v4313_v0 }
 0x224   : > { %1497 = vrot.lane.b32.xlu1 %v1493_v28, %s3637_s12  ;;  %v5581_v28 = vrot.slane %v4428_v20, 3  ;;  %v4453_v13 = vmul.f32 %v4436_v37, %v3989_v39 }
 0x225   : > { %v4351_v32 = vpop.permute.xlu0 %1674 }
 0x226   : > { %v4348_v30 = vpop.permute.xlu1 %2588 }
 0x227   : > { %v4461_v29 = vsel %vm1250_vm5, %v4348_v30, %v4329_v34 }
 0x228   : > { %2028 = vrot.lane.b32.xlu1 %v2024_v31, %s3637_s12 }
 0x229   : > { %v4356_v35 = vpop.permute.xlu0 %1362 }
 0x22a   : > { %v4354_v33 = vpop.permute.xlu1 %2784  ;;  %5637 = vst [vmem:[#allocation12_spill] sm:$0xff] %v4356_v35 }
 0x22b   : > { %v4484_v34 = vsel %vm1257_vm8, %v4354_v33, %v4336_v23 }
 0x22c   : > { %v4501_v23 = vmul.f32 %v4484_v34, %v3989_v39 }
 0x22d   : > { %v1445_v42 = vpop.permute.xlu0 %1444 }
 0x22e   : > { %v4358_v38 = vpop.permute.xlu1 %1623 }
 0x231   : > { %v4364_v45 = vpop.permute.xlu0 %1880 }
 0x232   : > { %v4360_v41 = vpop.permute.xlu1 %1672  ;;  %5639 = vst [vmem:[#allocation14_spill] sm:$0xff] %v4364_v45 }
 0x233   : > { %v4544_v7 = vmul.f32 %v4360_v41, %v4313_v0 }
 0x235   : > { %v4382_v2 = vpop.permute.xlu0 %1968  ;;  %v5605_v61 = vrot.slane %v4544_v7, 1 }
 0x236   : > { %v4362_v44 = vpop.permute.xlu1 %1360 }
 0x237   : > { %5638 = vst [vmem:[#allocation13_spill] sm:$0xff] %v4362_v44  ;;  %v1728_v44 = vmul.f32 %v4331_v1, %v4327_v17  ;;  %v2063_v1 = vmul.f32 %v4338_v24, %v4327_v17  ;;  %v2259_v24 = vmul.f32 %v4344_v26, %v4327_v17 }
 0x239   : > { %v2157_v12 = vpop.permute.xlu0 %2156  ;;  %v2267_v26 = vrot.slane %v2259_v24, 3 }
 0x23a   : > { %v1443_v46 = vpop.permute.xlu1 %1442 }
 0x23b   : > { %v1449_v47 = vmul.f32 %v1443_v46, %v4327_v17  ;;  %v1446_v48 = vsel %vm1257_vm8, %v1443_v46, %v1445_v42  ;;  %v1451_v59 = vmul.f32 %v1443_v46, %v4313_v0  ;;  %v5582_v42 = vrot.slane %v4446_v25, 3 }
 0x23c   : > { %v1450_v55 = vmul.f32 %v1446_v48, %v3996_v43  ;;  %v1452_v52 = vmul.f32 %v1446_v48, %v3989_v39  ;;  %v4471_v46 = vmul.f32 %v4348_v30, %v4313_v0  ;;  %v4476_v48 = vmul.f32 %v4461_v29, %v3989_v39 }
 0x23d   : > { %1457 = vrot.lane.b32.xlu1 %v1449_v47, %s3642_s28  ;;  %v4448_v27 = vpop.permute.xlu0 %2205  ;;  %v5583_v47 = vrot.slane %v4453_v13, 3 }
 0x23e   : > { %v4374_v60 = vpop.permute.xlu1 %1878  ;;  %1459 = vrot.lane.b32.xlu0 %v1450_v55, %s3642_s28 }
 0x23f   : > { %5640 = vst [vmem:[#allocation15_spill] sm:$0xff] %v4374_v60 }
 0x241   : > { %1461 = vrot.lane.b32.xlu1 %v1451_v59, %s3642_s28  ;;  %v4486_v55 = vpop.permute.xlu0 %2412 }
 0x242   : > { %v4394_v56 = vpop.permute.xlu1 %1966  ;;  %1463 = vrot.lane.b32.xlu0 %v1452_v52, %s3642_s28  ;;  %5642 = vst [vmem:[#allocation17_spill] sm:$0xff] %v4486_v55  ;;  %v5588_v52 = vrot.slane %v4471_v46, 5 }
 0x243   : > { %v4569_v51 = vmul.f32 %v4394_v56, %v4313_v0 }
 0x245   : > { %1550 = vrot.lane.b32.xlu1 %v5590_v9, %s3637_s12 }
 0x246   : > { %v4415_v54 = vpop.permute.xlu1 %2154  ;;  %1552 = vrot.lane.b32.xlu0 %v5587_v3, %s3637_s12  ;;  %v4521_v3 = vpop.permute.xlu0 %2500 }
 0x247   : > { %v4578_v53 = vsel %vm1254_vm7, %v4415_v54, %v2157_v12  ;;  %v4591_v40 = vmul.f32 %v4415_v54, %v4313_v0  ;;  %v1532_v12 = vmul.f32 %v4318_v14, %v4327_v17 }
 0x249   : > { %1746 = vrot.lane.b32.xlu1 %v5586_v16, %s3643_s29  ;;  %v4519_v16 = vmul.f32 %v4358_v38, %v4313_v0  ;;  %v5613_v14 = vrot.slane %v4591_v40, 3  ;;  %v1540_v45 = vrot.slane %v1532_v12, 1  ;;  %v1736_v12 = vrot.slane %v1728_v44, 1 }
 0x24a   : > { %v4438_v21 = vpop.permute.xlu1 %2203  ;;  %1748 = vrot.lane.b32.xlu0 %v5585_v19, %s3643_s29  ;;  %v2071_v44 = vrot.slane %v2063_v1, 3 }
 0x24b   : > { %v5601_v22 = vrot.slane %v4519_v16, 1 }
 0x24d   : > { %2081 = vrot.lane.b32.xlu1 %v5584_v36, %s3637_s12 }
 0x24e   : > { %v4463_v31 = vpop.permute.xlu1 %2410  ;;  %2083 = vrot.lane.b32.xlu0 %v5581_v28, %s3637_s12  ;;  %v4496_v28 = vmul.f32 %v4354_v33, %v4313_v0 }
 0x24f   : > { %5641 = vst [vmem:[#allocation16_spill] sm:$0xff] %v4463_v31  ;;  %v4597_v31 = vmul.f32 %v4578_v53, %v3989_v39 }
 0x250   : > { %v5597_v19 = vrot.slane %v4496_v28, 5 }
 0x251   : > { %2277 = vrot.lane.b32.xlu1 %v5582_v42, %s3643_s29  ;;  %v5589_v42 = vrot.slane %v4476_v48, 5  ;;  %5645 = vst [vmem:[#allocation20_spill] sm:$0xff] %v4597_v31  ;;  %v2173_v35 = vrot.slane %v4597_v31, 3 }
 0x252   : > { %v4488_v59 = vpop.permute.xlu1 %2498  ;;  %2279 = vrot.lane.b32.xlu0 %v5583_v47, %s3643_s29  ;;  %v4509_v47 = vsel %vm1254_vm7, %v4358_v38, %v4342_v62 }
 0x253   : > { %v4526_v62 = vmul.f32 %v4509_v47, %v3989_v39 }
 0x255   : > { %2613 = vrot.lane.b32.xlu1 %v5588_v52, %s3637_s12  ;;  %v5598_v52 = vrot.slane %v4501_v23, 5  ;;  %v5602_v18 = vrot.slane %v4526_v62, 1 }
 0x256   : > { %v4511_v36 = vpop.permute.xlu1 %2686  ;;  %2615 = vrot.lane.b32.xlu0 %v5589_v42, %s3637_s12  ;;  %v4534_v42 = vsel %vm613_vm1, %v4360_v41, %v4351_v32  ;;  %v4557_v32 = vsel %vm1257_vm8, %v4394_v56, %v4382_v2 }
 0x257   : > { %v4574_v2 = vmul.f32 %v4557_v32, %v3989_v39 }
 0x259   : > { %2809 = vrot.lane.b32.xlu1 %v5597_v19, %s3643_s29  ;;  %v4549_v19 = vmul.f32 %v4534_v42, %v3989_v39  ;;  %v5612_v55 = vrot.slane %v4574_v2, 2 }
 0x25a   : > { %v4536_v9 = vpop.permute.xlu1 %2735  ;;  %2811 = vrot.lane.b32.xlu0 %v5598_v52, %s3643_s29  ;;  %v4559_v52 = vpop.permute.xlu0 %2688 }
 0x25d   : > { %1648 = vrot.lane.b32.xlu1 %v5601_v22, %s3643_s29  ;;  %v5606_v22 = vrot.slane %v4549_v19, 1 }
 0x25e   : > { %v4561_v49 = vpop.permute.xlu1 %1574  ;;  %1650 = vrot.lane.b32.xlu0 %v5602_v18, %s3643_s29 }
 0x25f   : > { %5643 = vst [vmem:[#allocation18_spill] sm:$0xff] %v4561_v49  ;;  %v5610_v49 = vrot.slane %v4569_v51, 2 }
 0x261   : > { %1697 = vrot.lane.b32.xlu1 %v5605_v61, %s3643_s29  ;;  %v4599_v61 = vpop.permute.xlu0 %2737 }
 0x262   : > { %v4583_v18 = vpop.permute.xlu1 %1296  ;;  %1699 = vrot.lane.b32.xlu0 %v5606_v22, %s3643_s29  ;;  %v1533_v22 = vmul.f32 %v4372_v58, %v3996_v43  ;;  %v1729_v58 = vmul.f32 %v4392_v6, %v3996_v43 }
 0x263   : > { %5644 = vst [vmem:[#allocation19_spill] sm:$0xff] %v4583_v18 }
 0x264   : > { %v1543_v18 = vrot.slane %v1533_v22, 1  ;;  %v5649_v22 = vrot.slane %v4380_v63, 1 }
 0x265   : > { %1991 = vrot.lane.b32.xlu1 %v5610_v49, %s3642_s28  ;;  %v4621_v49 = vpop.permute.xlu0 %1576 }
 0x266   : > { %v4607_v60 = vpop.permute.xlu1 %1328  ;;  %1993 = vrot.lane.b32.xlu0 %v5612_v55, %s3642_s28  ;;  %5647 = vst [vmem:[#allocation22_spill] sm:$0xff] %v4621_v49  ;;  %v1542_v6 = vsel %vm947_vm3, %v1540_v45, %v5649_v22  ;;  %v1739_v55 = vrot.slane %v1729_v58, 1  ;;  %v5651_v45 = vrot.slane %v4400_v10, 1  ;;  %v2595_v10 = vmul.f32 %v4348_v30, %v4327_v17 }
 0x267   : > { %5646 = vst [vmem:[#allocation21_spill] sm:$0xff] %v4607_v60 }
 0x268   : > { %v2603_v30 = vrot.slane %v2595_v10, 5  ;;  %v4705_v10 = vmul.f32 %v4438_v21, %v4313_v0 }
 0x269   : > { %2179 = vrot.lane.b32.xlu1 %v5613_v14, %s3643_s29  ;;  %v2064_v14 = vmul.f32 %v4413_v11, %v3996_v43  ;;  %v4644_v63 = vpop.permute.xlu0 %1298  ;;  %v1738_v11 = vsel %vm947_vm3, %v1736_v12, %v5651_v45  ;;  %v5653_v12 = vrot.slane %v4423_v50, 3  ;;  %v2791_v50 = vmul.f32 %v4354_v33, %v4327_v17 }
 0x26a   : > { %v4623_v60 = vpop.permute.xlu1 %1392  ;;  %2181 = vrot.lane.b32.xlu0 %v2173_v35, %s3643_s29  ;;  %v5656_v45 = vrot.slane %v4453_v13, 3 }
 0x26b   : > { %5648 = vst [vmem:[#allocation23_spill] sm:$0xff] %v4623_v60  ;;  %v5650_v60 = vrot.slane %v4387_v8, 1  ;;  %v2074_v58 = vrot.slane %v2064_v14, 3  ;;  %v2260_v8 = vmul.f32 %v4436_v37, %v3996_v43  ;;  %v2073_v14 = vsel %vm2021_vm4, %v2071_v44, %v5653_v12 }
 0x26c   : > { %v2596_v37 = vmul.f32 %v4461_v29, %v3996_v43  ;;  %v5655_v44 = vrot.slane %v4446_v25, 3  ;;  %v2799_v33 = vrot.slane %v2791_v50, 5  ;;  %v5657_v25 = vrot.slane %v4471_v46, 5 }
 0x26d   : > { %1546 = vrot.lane.b32.xlu1 %v1542_v6, %s3637_s12  ;;  %v1545_v49 = vsel %vm947_vm3, %v1543_v18, %v5650_v60  ;;  %v5652_v18 = vrot.slane %v4405_v5, 1  ;;  %v2270_v1 = vrot.slane %v2260_v8, 3  ;;  %v5654_v5 = vrot.slane %v4428_v20, 3  ;;  %v4669_v22 = vpop.permute.xlu0 %1330 }
 0x26e   : > { %v4639_v31 = vpop.permute.xlu1 %1800  ;;  %1548 = vrot.lane.b32.xlu0 %v1545_v49, %s3637_s12  ;;  %v2269_v29 = vsel %vm2021_vm4, %v2267_v26, %v5655_v44  ;;  %v2606_v24 = vrot.slane %v2596_v37, 5  ;;  %v2792_v20 = vmul.f32 %v4484_v34, %v3996_v43  ;;  %v4696_v34 = vsel %vm613_vm1, %v4438_v21, %v4448_v27 }
 0x26f   : > { %v1741_v49 = vsel %vm947_vm3, %v1739_v55, %v5652_v18  ;;  %v2076_v55 = vsel %vm2021_vm4, %v2074_v58, %v5654_v5  ;;  %v2605_v18 = vsel %vm2553_vm11, %v2603_v30, %v5657_v25  ;;  %v2544_v46 = vrot.slane %v3943_v4, %v4062_v15 }
 0x270   : > { %v2802_v13 = vrot.slane %v2792_v20, 5  ;;  %v1630_v27 = vmul.f32 %v4358_v38, %v4327_v17  ;;  %v4713_v12 = vmul.f32 %v4696_v34, %v3989_v39  ;;  %v5660_v37 = vrot.slane %v4501_v23, 5 }
 0x271   : > { %1742 = vrot.lane.b32.xlu1 %v1738_v11, %s3643_s29  ;;  %v2272_v11 = vsel %vm2021_vm4, %v2270_v1, %v5656_v45  ;;  %v4688_v8 = vpop.permute.xlu0 %1394  ;;  %v2219_v38 = vrot.slane %v4705_v10, 3  ;;  %v1679_v44 = vmul.f32 %v4360_v41, %v4327_v17  ;;  %v4736_v23 = vsel %vm1257_vm8, %v4488_v59, %v4521_v3 }
 0x272   : > { %v4655_v60 = vpop.permute.xlu1 %1839  ;;  %1744 = vrot.lane.b32.xlu0 %v1741_v49, %s3643_s29  ;;  %v5658_v49 = vrot.slane %v4476_v48, 5  ;;  %v5659_v48 = vrot.slane %v4496_v28, 5  ;;  %v2804_v5 = vsel %vm2553_vm11, %v2802_v13, %v5660_v37  ;;  %v2546_v28 = vmul.f32 %v2544_v46, %v3996_v43 }
 0x273   : > { %v1638_v50 = vrot.slane %v1630_v27, 1  ;;  %v1973_v41 = vmul.f32 %v4394_v56, %v4327_v17  ;;  %v5662_v25 = vrot.slane %v4519_v16, 1  ;;  %v5663_v10 = vrot.slane %v4544_v7, 1 }
 0x274   : > { %v2608_v26 = vsel %vm2553_vm11, %v2606_v24, %v5658_v49  ;;  %v2557_v45 = vrot.slane %v2546_v28, 5  ;;  %v2161_v49 = vmul.f32 %v4415_v54, %v4327_v17  ;;  %v4767_v16 = vsel %vm1254_vm7, %v4511_v36, %v4559_v52 }
 0x275   : > { %2077 = vrot.lane.b32.xlu1 %v2073_v14, %s3637_s12  ;;  %v2801_v14 = vsel %vm2553_vm11, %v2799_v33, %v5659_v48  ;;  %v4725_v30 = vpop.permute.xlu0 %1802  ;;  %v4748_v33 = vmul.f32 %v4736_v23, %v3989_v39  ;;  %v1981_v56 = vrot.slane %v1973_v41, 2  ;;  %v2210_v7 = vmul.f32 %v4438_v21, %v4327_v17 }
 0x276   : > { %v4671_v6 = vpop.permute.xlu1 %1917  ;;  %2079 = vrot.lane.b32.xlu0 %v2076_v55, %s3637_s12  ;;  %v2548_v55 = vmul.f32 %v2544_v46, %v3989_v39  ;;  %v2169_v54 = vrot.slane %v2161_v49, 3  ;;  %v5664_v52 = vrot.slane %v4569_v51, 2  ;;  %v5666_v21 = vrot.slane %v4591_v40, 3 }
 0x277   : > { %v2540_v51 = vrot.slane %v4303_v57, %v4062_v15  ;;  %v1631_v40 = vmul.f32 %v4509_v47, %v3996_v43  ;;  %v1680_v47 = vmul.f32 %v4534_v42, %v3996_v43 }
 0x278   : > { %v2558_v24 = vrot.slane %v2548_v55, 5  ;;  %v1983_v37 = vsel %vm1107_vm2, %v1981_v56, %v5664_v52  ;;  %v2218_v55 = vrot.slane %v2210_v7, 3  ;;  %v2695_v7 = vmul.f32 %v4511_v36, %v4313_v0 }
 0x279   : > { %2273 = vrot.lane.b32.xlu1 %v2269_v29, %s3643_s29  ;;  %v2222_v29 = vrot.slane %v4713_v12, 3  ;;  %v4750_v3 = vpop.permute.xlu0 %1841  ;;  %v2545_v15 = vmul.f32 %v2540_v51, %v4327_v17  ;;  %v1641_v49 = vrot.slane %v1631_v40, 1  ;;  %v1690_v52 = vrot.slane %v1680_v47, 1 }
 0x27a   : > { %2275 = vrot.lane.b32.xlu0 %v2272_v11, %s3643_s29  ;;  %v4686_v58 = vpop.permute.xlu1 %2105  ;;  %v1687_v11 = vrot.slane %v1679_v44, 1  ;;  %v2559_v13 = vsel %vm2553_vm11, %v2557_v45, %v2558_v24  ;;  %v2505_v44 = vmul.f32 %v4488_v59, %v4327_v17 }
 0x27c   : > { %v1689_v46 = vsel %vm947_vm3, %v1687_v11, %v5663_v10  ;;  %v2513_v41 = vrot.slane %v2505_v44, 4 }
 0x27d   : > { %2609 = vrot.lane.b32.xlu1 %v2605_v18, %s3637_s12  ;;  %v1640_v18 = vsel %vm947_vm3, %v1638_v50, %v5662_v25  ;;  %v4772_v48 = vpop.permute.xlu0 %1919  ;;  %v2171_v50 = vsel %vm2021_vm4, %v2169_v54, %v5666_v21 }
 0x27e   : > { %2611 = vrot.lane.b32.xlu0 %v2608_v26, %s3637_s12  ;;  %v4718_v1 = vpop.permute.xlu1 %2332  ;;  %v2517_v26 = vrot.slane %v4748_v33, 4 }
 0x281   : > { %2805 = vrot.lane.b32.xlu1 %v2801_v14, %s3643_s29  ;;  %v4781_v14 = vmul.f32 %v4767_v16, %v3989_v39  ;;  %v4809_v11 = vpop.permute.xlu0 %2107 }
 0x282   : > { %2807 = vrot.lane.b32.xlu0 %v2804_v5, %s3643_s29  ;;  %v4742_v20 = vpop.permute.xlu1 %2371  ;;  %v4789_v5 = vsel %vm613_vm1, %v4536_v9, %v4599_v61  ;;  %v2507_v61 = vmul.f32 %v4488_v59, %v4313_v0  ;;  %v2547_v59 = vmul.f32 %v2540_v51, %v4313_v0 }
 0x283   : > { %5661 = vst [vmem:[#allocation24_spill] sm:$0xff] %v4742_v20  ;;  %v2705_v45 = vrot.slane %v4781_v14, 5 }
 0x284   : > { %v2514_v25 = vrot.slane %v2507_v61, 4  ;;  %v2555_v54 = vrot.slane %v2547_v59, 5  ;;  %v2742_v61 = vmul.f32 %v4536_v9, %v4327_v17  ;;  %v5669_v59 = vrot.slane %v4549_v19, 1 }
 0x285   : > { %2228 = vrot.lane.b32.xlu1 %v2219_v38, %s3643_s29  ;;  %v4826_v10 = vpop.permute.xlu0 %2334 }
 0x286   : > { %2230 = vrot.lane.b32.xlu0 %v2222_v29, %s3643_s29  ;;  %v4769_v27 = vpop.permute.xlu1 %2449  ;;  %v2515_v42 = vsel %vm2307_vm12, %v2513_v41, %v2514_v25  ;;  %v1692_v41 = vsel %vm947_vm3, %v1690_v52, %v5669_v59 }
 0x289   : > { %1644 = vrot.lane.b32.xlu1 %v1640_v18, %s3643_s29  ;;  %v4850_v40 = vpop.permute.xlu0 %2373 }
 0x28a   : > { %2562 = vrot.lane.b32.xlu0 %v2559_v13, %s3637_s12  ;;  %v4793_v28 = vpop.permute.xlu1 %2637  ;;  %v2220_v13 = vsel %vm2021_vm4, %v2218_v55, %v2219_v38  ;;  %v2693_v38 = vmul.f32 %v4511_v36, %v4327_v17  ;;  %v5667_v55 = vrot.slane %v4526_v62, 1  ;;  %v2702_v36 = vrot.slane %v2695_v7, 5  ;;  %5668 = vst [vmem:[#allocation26_spill] sm:$0xff] %v4850_v40 }
 0x28b   : > { %5665 = vst [vmem:[#allocation25_spill] sm:$0xff] %v4793_v28  ;;  %v2162_v62 = vmul.f32 %v4578_v53, %v3996_v43  ;;  %v5670_v53 = vrot.slane %v4574_v2, 2 }
 0x28c   : > { %v1643_v21 = vsel %vm947_vm3, %v1641_v49, %v5667_v55  ;;  %v2701_v44 = vrot.slane %v2693_v38, 5 }
 0x28d   : > { %1693 = vrot.lane.b32.xlu1 %v1689_v46, %s3643_s29  ;;  %v2554_v46 = vrot.slane %v2545_v15, 5  ;;  %v4868_v7 = vpop.permute.xlu0 %2451 }
 0x28e   : > { %2525 = vrot.lane.b32.xlu0 %v2517_v26, %s3642_s28  ;;  %v4823_v56 = vpop.permute.xlu1 %1501  ;;  %v2703_v47 = vsel %vm2553_vm11, %v2701_v44, %v2702_v36  ;;  %v2694_v44 = vmul.f32 %v4767_v16, %v3996_v43 }
 0x28f   : > { %v2556_v51 = vsel %vm2553_vm11, %v2554_v46, %v2555_v54  ;;  %v2172_v46 = vrot.slane %v2162_v62, 3  ;;  %v2743_v62 = vmul.f32 %v4789_v5, %v3996_v43 }
 0x291   : > { %1987 = vrot.lane.b32.xlu1 %v1983_v37, %s3642_s28  ;;  %v1974_v37 = vmul.f32 %v4557_v32, %v3996_v43  ;;  %v2744_v32 = vmul.f32 %v4536_v9, %v4313_v0  ;;  %v2211_v9 = vmul.f32 %v4696_v34, %v3996_v43  ;;  %v2174_v55 = vsel %vm2021_vm4, %v2172_v46, %v2173_v35 }
 0x292   : > { %2566 = vrot.lane.b32.xlu0 %v2558_v24, %s3637_s12  ;;  %v4807_v24 = vmul.f32 %v4789_v5, %v3989_v39 }
 0x293   : > { %v1984_v15 = vrot.slane %v1974_v37, 2  ;;  %v2751_v49 = vrot.slane %v2744_v32, 5  ;;  %v2221_v52 = vrot.slane %v2211_v9, 3  ;;  %v2506_v37 = vmul.f32 %v4736_v23, %v3996_v43 }
 0x294   : > { %v2754_v18 = vrot.slane %v4807_v24, 5  ;;  %v2704_v32 = vrot.slane %v2694_v44, 5  ;;  %v5676_v24 = vld [vmem:[#allocation19_spill] sm:$0xff] }
 0x295   : > { %2175 = vrot.lane.b32.xlu1 %v2171_v50, %s3643_s29  ;;  %v4843_v50 = vpop.permute.xlu1 %2032  ;;  %v1986_v19 = vsel %vm1107_vm2, %v1984_v15, %v5670_v53  ;;  %v2223_v23 = vsel %vm2021_vm4, %v2221_v52, %v2222_v29 }
 0x296   : > { %2713 = vrot.lane.b32.xlu0 %v2705_v45, %s3643_s29  ;;  %v2706_v59 = vsel %vm2553_vm11, %v2704_v32, %v2705_v45 }
 0x299   : > { %2224 = vrot.lane.b32.xlu1 %v2220_v13, %s3643_s29  ;;  %v2750_v13 = vrot.slane %v2742_v61, 5  ;;  %v4862_v38 = vpop.permute.xlu1 %1497 }
 0x29a   : > { %2762 = vrot.lane.b32.xlu0 %v2754_v18, %s3643_s29 }
 0x29d   : > { %2519 = vrot.lane.b32.xlu1 %v2515_v42, %s3642_s28  ;;  %v2752_v42 = vsel %vm2553_vm11, %v2750_v13, %v2751_v49  ;;  %v4879_v2 = vpop.permute.xlu1 %2028 }
 0x29e   : > { %1646 = vrot.lane.b32.xlu0 %v1643_v21, %s3643_s29  ;;  %5672 = vst [vmem:[#allocation20_spill] sm:$0xff] %v4879_v2  ;;  %v4881_v21 = vpop.permute.xlu0 %2639 }
 0x29f   : > { %5673 = vst [vmem:[#allocation27_spill] sm:$0xff] %v4881_v21 }
 0x2a1   : > { %2560 = vrot.lane.b32.xlu1 %v2556_v51, %s3637_s12  ;;  %v2516_v51 = vrot.slane %v2506_v37, 4 }
 0x2a2   : > { %1695 = vrot.lane.b32.xlu0 %v1692_v41, %s3643_s29 }
 0x2a3   : > { %v2518_v16 = vsel %vm2307_vm12, %v2516_v51, %v2517_v26 }
 0x2a5   : > { %2707 = vrot.lane.b32.xlu1 %v2703_v47, %s3643_s29 }
 0x2a6   : > { %1989 = vrot.lane.b32.xlu0 %v1986_v19, %s3642_s28  ;;  %v4944_v19 = vsel %vm1250_vm5, %v4639_v31, %v4725_v30 }
 0x2a7   : > { %v4951_v44 = vmul.f32 %v4944_v19, %v3989_v39 }
 0x2a9   : > { %2756 = vrot.lane.b32.xlu1 %v2752_v42, %s3643_s29  ;;  %v1305_v42 = vmul.f32 %v5676_v24, %v4313_v0 }
 0x2aa   : > { %2177 = vrot.lane.b32.xlu0 %v2174_v55, %s3643_s29 }
 0x2ad   : > { %2523 = vrot.lane.b32.xlu1 %v2514_v25, %s3642_s28  ;;  %v2753_v25 = vrot.slane %v2743_v62, 5 }
 0x2ae   : > { %2226 = vrot.lane.b32.xlu0 %v2223_v23, %s3643_s29  ;;  %v4955_v23 = vmul.f32 %v4639_v31, %v4313_v0 }
 0x2af   : > { %v4890_v61 = vpop.permute.xlu1 %1457  ;;  %v2755_v26 = vsel %vm2553_vm11, %v2753_v25, %v2754_v18  ;;  %v4933_v18 = vsel %vm1250_vm5, %v5676_v24, %v4644_v63 }
 0x2b0   : > { %5674 = vst [vmem:[#allocation28_spill] sm:$0xff] %v4890_v61  ;;  %v4892_v35 = vpop.permute.xlu0 %1459  ;;  %v1306_v53 = vmul.f32 %v4933_v18, %v3989_v39  ;;  %v5681_v61 = vld [vmem:[#allocation17_spill] sm:$0xff] }
 0x2b1   : > { %5675 = vst [vmem:[#allocation29_spill] sm:$0xff] %v4892_v35  ;;  %2564 = vrot.lane.b32.xlu1 %v2555_v54, %s3637_s12  ;;  %v5682_v35 = vld [vmem:[#allocation16_spill] sm:$0xff]  ;;  %s5688_s12 = smov 112  }
 0x2b2   : > { %2521 = vrot.lane.b32.xlu0 %v2518_v16, %s3642_s28  ;;  %v2414_v20 = vsel %vm1254_vm7, %v5682_v35, %v5681_v61 }
 0x2b3   : > { %v1462_v12 = vpop.permute.xlu1 %1461 }
 0x2b4   : > { %v1464_v29 = vpop.permute.xlu0 %1463 }
 0x2b5   : > { %v1466_v15 = vsel %vm613_vm1, %v1462_v12, %v1464_v29  ;;  %2711 = vrot.lane.b32.xlu1 %v2702_v36, %s3643_s29  ;;  %v1474_v52 = vadd.f32 %v1464_v29, %v1306_v53  ;;  %v5620_v12 = vrot.slane %v4951_v44, 2  ;;  %v5621_v29 = vrot.slane %v4955_v23, 2 }
 0x2b6   : > { %2709 = vrot.lane.b32.xlu0 %v2706_v59, %s3643_s29  ;;  %v1473_v34 = vadd.f32 %v1466_v15, %v1305_v42  ;;  %v5677_v59 = vld [vmem:[#allocation12_spill] sm:$0xff] }
 0x2b7   : > { %v4907_v5 = vpop.permute.xlu1 %1550 }
 0x2b8   : > { %v1553_v33 = vpop.permute.xlu0 %1552 }
 0x2b9   : > { %2760 = vrot.lane.b32.xlu1 %v2751_v49, %s3643_s29  ;;  %v1555_v57 = vsel %vm1252_vm6, %v4907_v5, %v1553_v33 }
 0x2ba   : > { %2758 = vrot.lane.b32.xlu0 %v2755_v26, %s3643_s29  ;;  %v5678_v26 = vld [vmem:[#allocation13_spill] sm:$0xff] }
 0x2bb   : > { %v4914_v54 = vpop.permute.xlu1 %1746  ;;  %v1364_v53 = vsel %vm1254_vm7, %v5678_v26, %v5677_v59 }
 0x2bc   : > { %v4916_v36 = vpop.permute.xlu0 %1748  ;;  %v1370_v59 = vmul.f32 %v1364_v53, %v3989_v39  ;;  %v1368_v28 = vmul.f32 %v1364_v53, %v3996_v43  ;;  %v2418_v53 = vmul.f32 %v2414_v20, %v3996_v43 }
 0x2bd   : > { %v1751_v61 = vsel %vm1259_vm9, %v4914_v54, %v4916_v36  ;;  %v2419_v54 = vmul.f32 %v5682_v35, %v4313_v0 }
 0x2bf   : > { %v4918_v14 = vpop.permute.xlu1 %2081 }
 0x2c0   : > { %v4920_v45 = vpop.permute.xlu0 %2083 }
 0x2c3   : > { %v4922_v41 = vpop.permute.xlu1 %2277 }
 0x2c4   : > { %v4924_v13 = vpop.permute.xlu0 %2279 }
 0x2c7   : > { %v4926_v47 = vpop.permute.xlu1 %2613 }
 0x2c8   : > { %v4928_v49 = vpop.permute.xlu0 %2615 }
 0x2cb   : > { %v4935_v46 = vpop.permute.xlu1 %2809 }
 0x2cc   : > { %v4937_v9 = vpop.permute.xlu0 %2811 }
 0x2cf   : > { %v1649_v37 = vpop.permute.xlu1 %1648 }
 0x2d0   : > { %v1651_v63 = vpop.permute.xlu0 %1650 }
 0x2d1   : > { %v1653_v55 = vsel %vm1259_vm9, %v1649_v37, %v1651_v63  ;;  %v1661_v51 = vadd.f32 %v1651_v63, %v1474_v52  ;;  %v5679_v37 = vld [vmem:[#allocation14_spill] sm:$0xff] }
 0x2d2   : > { %v1660_v30 = vadd.f32 %v1653_v55, %v1473_v34  ;;  %v5680_v34 = vld [vmem:[#allocation15_spill] sm:$0xff] }
 0x2d3   : > { %v1698_v32 = vpop.permute.xlu1 %1697  ;;  %v1828_v15 = vadd.f32 %v5620_v12, %v1661_v51  ;;  %v1882_v63 = vsel %vm1254_vm7, %v5680_v34, %v5679_v37  ;;  %v1885_v51 = vmul.f32 %v5680_v34, %v4327_v17 }
 0x2d4   : > { %v4957_v62 = vpop.permute.xlu0 %1699  ;;  %v1827_v42 = vadd.f32 %v5621_v29, %v1660_v30  ;;  %v1886_v30 = vmul.f32 %v1882_v63, %v3996_v43  ;;  %v1887_v29 = vmul.f32 %v5680_v34, %v4313_v0  ;;  %v1888_v37 = vmul.f32 %v1882_v63, %v3989_v39 }
 0x2d5   : > { %v4961_v16 = vsel %vm1259_vm9, %v1698_v32, %v4957_v62 }
 0x2d6   : > { %v1896_v21 = vrot.slane %v1886_v30, 2  ;;  %v1897_v34 = vrot.slane %v1888_v37, 2  ;;  %v1894_v40 = vrot.slane %v1887_v29, 2  ;;  %v2420_v29 = vmul.f32 %v2414_v20, %v3989_v39 }
 0x2d7   : > { %v1992_v25 = vpop.permute.xlu1 %1991 }
 0x2d8   : > { %v1994_v52 = vpop.permute.xlu0 %1993  ;;  %v1898_v37 = vsel %vm1107_vm2, %v1896_v21, %v1897_v34  ;;  %v2428_v21 = vrot.slane %v2418_v53, 4 }
 0x2d9   : > { %v1996_v55 = vsel %vm613_vm1, %v1992_v25, %v1994_v52  ;;  %v2004_v32 = vadd.f32 %v1994_v52, %v1828_v15  ;;  %v1563_v25 = vadd.f32 %v1555_v57, %v1370_v59 }
 0x2da   : > { %v2003_v4 = vadd.f32 %v1996_v55, %v1827_v42  ;;  %v1893_v42 = vrot.slane %v1885_v51, 2 }
 0x2db   : > { %v2180_v12 = vpop.permute.xlu1 %2179  ;;  %v1759_v57 = vadd.f32 %v4916_v36, %v1563_v25 }
 0x2dc   : > { %v2182_v2 = vpop.permute.xlu0 %2181 }
 0x2dd   : > { %v2184_v15 = vsel %vm1259_vm9, %v2180_v12, %v2182_v2  ;;  %v4986_v52 = vadd.f32 %v2182_v2, %v2004_v32  ;;  %v1367_v2 = vmul.f32 %v5678_v26, %v4327_v17 }
 0x2de   : > { %v4988_v33 = vadd.f32 %v2184_v15, %v2003_v4  ;;  %v1369_v4 = vmul.f32 %v5678_v26, %v4313_v0  ;;  %v1895_v15 = vsel %vm1107_vm2, %v1893_v42, %v1894_v40  ;;  %v1906_v26 = vadd.f32 %v1897_v34, %v1759_v57 }
 0x2df   : > { %v1547_v55 = vpop.permute.xlu1 %1546 }
 0x2e0   : > { %v1549_v63 = vpop.permute.xlu0 %1548  ;;  %v1562_v59 = vadd.f32 %v4907_v5, %v1369_v4  ;;  %v1560_v30 = vadd.f32 %v1547_v55, %v1367_v2  ;;  %v2086_v5 = vsel %vm1252_vm6, %v4918_v14, %v4920_v45  ;;  %v2429_v4 = vrot.slane %v2420_v29, 4 }
 0x2e1   : > { %v1554_v12 = vsel %vm1252_vm6, %v1547_v55, %v1549_v63  ;;  %v5683_v55 = vld [vmem:[#allocation21_spill] sm:$0xff]  ;;  %v2094_v53 = vadd.f32 %v2086_v5, %v1906_v26 }
 0x2e2   : > { %v1561_v32 = vadd.f32 %v1554_v12, %v1368_v28  ;;  %v2417_v28 = vmul.f32 %v5682_v35, %v4327_v17  ;;  %v1758_v20 = vadd.f32 %v1751_v61, %v1562_v59  ;;  %v5019_v42 = vsel %vm1252_vm6, %v5683_v55, %v4669_v22  ;;  %v5684_v61 = vld [vmem:[#allocation7_spill] sm:$0xff] }
 0x2e3   : > { %v1743_v51 = vpop.permute.xlu1 %1742  ;;  %v5024_v35 = vsel %vm1252_vm6, %v4655_v60, %v4750_v3  ;;  %v1506_v45 = vsel %vm1252_vm6, %v4823_v56, %v5684_v61  ;;  %v1338_v22 = vmul.f32 %v5019_v42, %v3989_v39  ;;  %v1337_v3 = vmul.f32 %v5683_v55, %v4313_v0 }
 0x2e4   : > { %v1745_v25 = vpop.permute.xlu0 %1744  ;;  %v1905_v59 = vadd.f32 %v1894_v40, %v1758_v20  ;;  %v2282_v40 = vsel %vm1259_vm9, %v4922_v41, %v4924_v13 }
 0x2e5   : > { %v1750_v63 = vsel %vm1259_vm9, %v1743_v51, %v1745_v25  ;;  %v1757_v12 = vadd.f32 %v1745_v25, %v1561_v32 }
 0x2e6   : > { %v1756_v36 = vadd.f32 %v1750_v63, %v1560_v30  ;;  %v2425_v30 = vrot.slane %v2417_v28, 4  ;;  %v1514_v63 = vadd.f32 %v1506_v45, %v1338_v22  ;;  %v2290_v28 = vadd.f32 %v4924_v13, %v2094_v53 }
 0x2e7   : > { %v1904_v34 = vadd.f32 %v1898_v37, %v1757_v12  ;;  %v2078_v57 = vpop.permute.xlu1 %2077  ;;  %v2426_v37 = vrot.slane %v2419_v54, 4  ;;  %v5037_v12 = vmul.f32 %v5024_v35, %v3989_v39 }
 0x2e8   : > { %v1903_v2 = vadd.f32 %v1895_v15, %v1756_v36  ;;  %v2080_v32 = vpop.permute.xlu0 %2079  ;;  %v2430_v15 = vsel %vm2307_vm12, %v2428_v21, %v2429_v4  ;;  %v5046_v36 = vmul.f32 %v4655_v60, %v4313_v0  ;;  %v1513_v21 = vadd.f32 %v4823_v56, %v1337_v3 }
 0x2e9   : > { %v2085_v51 = vsel %vm1252_vm6, %v2078_v57, %v2080_v32  ;;  %v2427_v61 = vsel %vm2307_vm12, %v2425_v30, %v2426_v37  ;;  %v2438_v22 = vadd.f32 %v2429_v4, %v2290_v28  ;;  %v5686_v28 = vld [vmem:[#allocation18_spill] sm:$0xff] }
 0x2ea   : > { %v2092_v29 = vadd.f32 %v2085_v51, %v1904_v34  ;;  %v2091_v26 = vadd.f32 %v2078_v57, %v1903_v2  ;;  %v2093_v34 = vadd.f32 %v4918_v14, %v1905_v59  ;;  %v1710_v57 = vadd.f32 %v4957_v62, %v1514_v63 }
 0x2eb   : > { %v2274_v25 = vpop.permute.xlu1 %2273  ;;  %v1709_v13 = vadd.f32 %v4961_v16, %v1513_v21  ;;  %v1855_v56 = vrot.slane %v5046_v36, 2  ;;  %v2618_v14 = vsel %vm1252_vm6, %v4926_v47, %v4928_v49  ;;  %v5687_v49 = vld [vmem:[#allocation8_spill] sm:$0xff] }
 0x2ec   : > { %v2276_v5 = vpop.permute.xlu0 %2275  ;;  %v2289_v45 = vadd.f32 %v2282_v40, %v2093_v34  ;;  %v2626_v63 = vadd.f32 %v2618_v14, %v2438_v22  ;;  %v5685_v40 = vld [vmem:[#allocation22_spill] sm:$0xff]  ;;  %v1583_v14 = vmul.f32 %v5686_v28, %v4313_v0 }
 0x2ed   : > { %v2281_v54 = vsel %vm1259_vm9, %v2274_v25, %v2276_v5  ;;  %v2288_v20 = vadd.f32 %v2276_v5, %v2092_v29  ;;  %v1858_v29 = vrot.slane %v5037_v12, 2  ;;  %v1866_v16 = vadd.f32 %v1855_v56, %v1709_v13  ;;  %v5693_v12 = vld [vmem:[#allocation26_spill] sm:$0xff] }
 0x2ee   : > { %v2287_v32 = vadd.f32 %v2281_v54, %v2091_v26  ;;  %v1578_v54 = vsel %vm1252_vm6, %v5686_v28, %v5685_v40 }
 0x2ef   : > { %v2436_v2 = vadd.f32 %v2430_v15, %v2288_v20  ;;  %v2610_v41 = vpop.permute.xlu1 %2609  ;;  %v1867_v59 = vadd.f32 %v1858_v29, %v1710_v57  ;;  %v2437_v15 = vadd.f32 %v2426_v37, %v2289_v45  ;;  %v2037_v20 = vsel %vm1252_vm6, %v4843_v50, %v5687_v49 }
 0x2f0   : > { %v2435_v53 = vadd.f32 %v2427_v61, %v2287_v32  ;;  %v2612_v51 = vpop.permute.xlu0 %2611  ;;  %v2814_v37 = vsel %vm1259_vm9, %v4935_v46, %v4937_v9  ;;  %v2822_v45 = vadd.f32 %v4937_v9, %v2626_v63  ;;  %v1584_v46 = vmul.f32 %v1578_v54, %v3989_v39 }
 0x2f1   : > { %v2617_v25 = vsel %vm1252_vm6, %v2610_v41, %v2612_v51  ;;  %v2045_v32 = vadd.f32 %v2037_v20, %v1867_v59  ;;  %v2625_v57 = vadd.f32 %v4926_v47, %v2437_v15  ;;  %v5689_v51 = vld [vmem:[#allocation23_spill] sm:$0xff] }
 0x2f2   : > { %v2624_v62 = vadd.f32 %v2617_v25, %v2436_v2  ;;  %v2623_v4 = vadd.f32 %v2610_v41, %v2435_v53  ;;  %v2044_v2 = vadd.f32 %v4843_v50, %v1866_v16  ;;  %v1582_v41 = vmul.f32 %v1578_v54, %v3996_v43 }
 0x2f3   : > { %v2806_v30 = vpop.permute.xlu1 %2805  ;;  %v1396_v22 = vsel %vm613_vm1, %v5689_v51, %v4688_v8  ;;  %v2821_v47 = vadd.f32 %v2814_v37, %v2625_v57  ;;  %v1581_v50 = vmul.f32 %v5686_v28, %v4327_v17  ;;  %v1399_v15 = vmul.f32 %v5689_v51, %v4327_v17 }
 0x2f4   : > { %v2808_v3 = vpop.permute.xlu0 %2807  ;;  %v1400_v59 = vmul.f32 %v1396_v22, %v3996_v43  ;;  %v1592_v8 = vrot.slane %v1582_v41, 1  ;;  %v1402_v49 = vmul.f32 %v1396_v22, %v3989_v39  ;;  %v1924_v37 = vmul.f32 %v4671_v6, %v4327_v17 }
 0x2f5   : > { %v2813_v26 = vsel %vm1259_vm9, %v2806_v30, %v2808_v3  ;;  %v2820_v5 = vadd.f32 %v2808_v3, %v2624_v62  ;;  %v1593_v30 = vrot.slane %v1584_v46, 1  ;;  %v1589_v16 = vrot.slane %v1581_v50, 1 }
 0x2f6   : > { %v2819_v21 = vadd.f32 %v2813_v26, %v2623_v4  ;;  %v1590_v4 = vrot.slane %v1583_v14, 1  ;;  %v1921_v26 = vsel %vm613_vm1, %v4671_v6, %v4772_v48  ;;  %v1401_v48 = vmul.f32 %v5689_v51, %v4313_v0 }
 0x2f7   : > { %v2229_v34 = vpop.permute.xlu1 %2228  ;;  %2851 = vrot.lane.b32.xlu0 %v2820_v5, %s5688_s12  ;;  %v1594_v5 = vsel %vm947_vm3, %v1592_v8, %v1593_v30  ;;  %v1925_v20 = vmul.f32 %v1921_v26, %v3996_v43  ;;  %v2112_v46 = vmul.f32 %v4686_v58, %v4327_v17  ;;  %v1932_v22 = vrot.slane %v1924_v37, 2 }
 0x2f8   : > { %2849 = vrot.lane.b32.xlu1 %v2819_v21, %s5688_s12  ;;  %v2231_v61 = vpop.permute.xlu0 %2230  ;;  %v1591_v28 = vsel %vm947_vm3, %v1589_v16, %v1590_v4  ;;  %v5121_v21 = vmul.f32 %v1921_v26, %v3989_v39  ;;  %v1336_v37 = vmul.f32 %v5019_v42, %v3996_v43 }
 0x2f9   : > { %v2233_v13 = vsel %vm1259_vm9, %v2229_v34, %v2231_v61  ;;  %v5080_v53 = vadd.f32 %v2231_v61, %v2045_v32  ;;  %v5129_v34 = vmul.f32 %v4671_v6, %v4313_v0  ;;  %v2109_v32 = vsel %vm1252_vm6, %v4686_v58, %v4809_v11 }
 0x2fa   : > { %v5086_v25 = vadd.f32 %v2233_v13, %v2044_v2  ;;  %v1807_v2 = vmul.f32 %v4639_v31, %v4327_v17  ;;  %v1808_v61 = vmul.f32 %v4944_v19, %v3996_v43  ;;  %v1846_v6 = vmul.f32 %v4655_v60, %v4327_v17 }
 0x2fb   : > { %v5092_v9 = vpop.permute.xlu1 %1644  ;;  %2855 = vrot.lane.b32.xlu0 %v2822_v45, %s5688_s12  ;;  %v1847_v11 = vmul.f32 %v5024_v35, %v3996_v43  ;;  %v1935_v45 = vrot.slane %v1925_v20, 2  ;;  %v1936_v13 = vrot.slane %v5121_v21, 2  ;;  %v2113_v31 = vmul.f32 %v2109_v32, %v3996_v43 }
 0x2fc   : > { %2853 = vrot.lane.b32.xlu1 %v2821_v47, %s5688_s12  ;;  %v5096_v62 = vpop.permute.xlu0 %2562  ;;  %v5154_v19 = vmul.f32 %v4686_v58, %v4313_v0  ;;  %v5157_v51 = vmul.f32 %v2109_v32, %v3989_v39  ;;  %v1933_v60 = vrot.slane %v5129_v34, 2  ;;  %v1815_v35 = vrot.slane %v1807_v2, 2 }
 0x2fd   : > { %v1818_v50 = vrot.slane %v1808_v61, 2  ;;  %v1303_v58 = vmul.f32 %v5676_v24, %v4327_v17  ;;  %v1857_v8 = vrot.slane %v1847_v11, 2  ;;  %v2120_v16 = vrot.slane %v2112_v46, 3  ;;  %v5692_v11 = vld [vmem:[#allocation9_spill] sm:$0xff] }
 0x2fe   : > { %v2121_v26 = vrot.slane %v5154_v19, 3  ;;  %v1304_v24 = vmul.f32 %v4933_v18, %v3996_v43  ;;  %v1934_v20 = vsel %vm1107_vm2, %v1932_v22, %v1933_v60  ;;  %v5690_v32 = vrot.slane %v4955_v23, 2  ;;  %v5699_v19 = vld [vmem:[#allocation10_spill] sm:$0xff] }
 0x2ff   : > { %v5101_v3 = vpop.permute.xlu1 %1693  ;;  %1409 = vrot.lane.b32.xlu0 %v1400_v59, %s3642_s28  ;;  %v1854_v59 = vrot.slane %v1846_v6, 2  ;;  %v5691_v2 = vrot.slane %v4951_v44, 2  ;;  %v5203_v6 = vmul.f32 %v4718_v1, %v4313_v0  ;;  %v1859_v23 = vsel %vm1107_vm2, %v1857_v8, %v1858_v29 }
 0x300   : > { %1407 = vrot.lane.b32.xlu1 %v1399_v15, %s3642_s28  ;;  %v5105_v63 = vpop.permute.xlu0 %2525  ;;  %v1937_v15 = vsel %vm1107_vm2, %v1935_v45, %v1936_v13  ;;  %v5196_v18 = vsel %vm1107_vm2, %v1815_v35, %v5690_v32  ;;  %v2456_v35 = vmul.f32 %v4769_v27, %v4327_v17 }
 0x301   : > { %v1820_v61 = vsel %vm1107_vm2, %v1818_v50, %v5691_v2  ;;  %v1856_v42 = vsel %vm1107_vm2, %v1854_v59, %v1855_v56  ;;  %v5694_v56 = vld [vmem:[#allocation24_spill] sm:$0xff]  ;;  %v5245_v59 = vmul.f32 %v4769_v27, %v4313_v0  ;;  %v2348_v21 = vrot.slane %v5203_v6, 4 }
 0x302   : > { %v2375_v29 = vsel %vm1252_vm6, %v5694_v56, %v5693_v12  ;;  %v5232_v46 = vmul.f32 %v5694_v56, %v4327_v17 }
 0x303   : > { %v5111_v40 = vpop.permute.xlu1 %1987  ;;  %1597 = vrot.lane.b32.xlu0 %v1594_v5, %s3643_s29  ;;  %v2123_v5 = vrot.slane %v2113_v31, 3  ;;  %v5262_v2 = vmul.f32 %v2375_v29, %v3996_v43 }
 0x304   : > { %1595 = vrot.lane.b32.xlu1 %v1591_v28, %s3643_s29  ;;  %v5116_v54 = vpop.permute.xlu0 %2566  ;;  %v5178_v28 = vmul.f32 %v4718_v1, %v4327_v17 }
 0x306   : > { %v2347_v36 = vrot.slane %v5178_v28, 4 }
 0x307   : > { %v5134_v57 = vpop.permute.xlu1 %2175  ;;  %1413 = vrot.lane.b32.xlu0 %v1402_v49, %s3642_s28 }
 0x308   : > { %1411 = vrot.lane.b32.xlu1 %v1401_v48, %s3642_s28  ;;  %v5142_v41 = vpop.permute.xlu0 %2713  ;;  %v1335_v48 = vmul.f32 %v5683_v55, %v4327_v17  ;;  %v2453_v55 = vsel %vm613_vm1, %v4769_v27, %v4868_v7  ;;  %v2122_v7 = vsel %vm2021_vm4, %v2120_v16, %v2121_v26 }
 0x309   : > { %v2457_v50 = vmul.f32 %v2453_v55, %v3996_v43  ;;  %v5254_v16 = vmul.f32 %v2453_v55, %v3989_v39  ;;  %v2381_v55 = vmul.f32 %v2375_v29, %v3989_v39 }
 0x30b   : > { %v5160_v47 = vpop.permute.xlu1 %2224  ;;  %1601 = vrot.lane.b32.xlu0 %v1593_v30, %s3643_s29  ;;  %v2124_v30 = vrot.slane %v5157_v51, 3 }
 0x30c   : > { %1599 = vrot.lane.b32.xlu1 %v1590_v4, %s3643_s29  ;;  %v5164_v14 = vpop.permute.xlu0 %2762  ;;  %v2336_v4 = vsel %vm1250_vm5, %v4718_v1, %v4826_v10  ;;  %v1505_v1 = vsel %vm1252_vm6, %v4862_v38, %v5692_v11  ;;  %v1511_v11 = vadd.f32 %v4862_v38, %v1335_v48  ;;  %v2465_v38 = vrot.slane %v5245_v59, 4  ;;  %v2894_v59 = vld [vmem:[%s5358_s27 + $0x28] sm:$0xff] }
 0x30d   : > { %v5215_v44 = vmul.f32 %v2336_v4, %v3996_v43  ;;  %v2125_v45 = vsel %vm2021_vm4, %v2123_v5, %v2124_v30  ;;  %v5235_v31 = vmul.f32 %v2336_v4, %v3989_v39  ;;  %v5695_v5 = vld [vmem:[#allocation29_spill] sm:$0xff]  ;;  %v5696_v4 = vld [vmem:[#allocation28_spill] sm:$0xff]  ;;  %v1512_v32 = vadd.f32 %v1505_v1, %v1336_v37 }
 0x30e   : > { %v1472_v37 = vadd.f32 %v5695_v5, %v1304_v24 }
 0x30f   : > { %v5182_v49 = vpop.permute.xlu1 %2519  ;;  %1940 = vrot.lane.b32.xlu0 %v1937_v15, %s3642_s28 }
 0x310   : > { %1938 = vrot.lane.b32.xlu1 %v1934_v20, %s3642_s28  ;;  %v1647_v10 = vpop.permute.xlu0 %1646  ;;  %v1465_v20 = vsel %vm613_vm1, %v5696_v4, %v5695_v5  ;;  %v2467_v5 = vrot.slane %v2457_v50, 4 }
 0x311   : > { %v1471_v48 = vadd.f32 %v1465_v20, %v1303_v58  ;;  %v2386_v20 = vrot.slane %v5232_v46, 4 }
 0x313   : > { %v5237_v22 = vpop.permute.xlu1 %2560  ;;  %2128 = vrot.lane.b32.xlu0 %v2125_v45, %s3643_s29  ;;  %v5697_v45 = vld [vmem:[#allocation27_spill] sm:$0xff] }
 0x314   : > { %v5250_v8 = vsel %vm1252_vm6, %v5237_v22, %v5096_v62  ;;  %2126 = vrot.lane.b32.xlu1 %v2122_v7, %s3643_s29  ;;  %v1696_v15 = vpop.permute.xlu0 %1695  ;;  %v5266_v62 = vmul.f32 %v5694_v56, %v4313_v0  ;;  %v5698_v7 = vld [vmem:[#allocation25_spill] sm:$0xff]  ;;  %v2464_v56 = vrot.slane %v2456_v35, 4 }
 0x315   : > { %v1701_v27 = vsel %vm1259_vm9, %v5101_v3, %v1696_v15  ;;  %v2641_v12 = vsel %vm1252_vm6, %v5698_v7, %v5697_v45  ;;  %v1652_v3 = vsel %vm1259_vm9, %v5092_v9, %v1647_v10  ;;  %v1708_v1 = vadd.f32 %v1696_v15, %v1512_v32 }
 0x316   : > { %v1707_v29 = vadd.f32 %v1701_v27, %v1511_v11  ;;  %v2468_v9 = vrot.slane %v5254_v16, 4  ;;  %v2644_v15 = vmul.f32 %v5698_v7, %v4327_v17  ;;  %v1659_v32 = vadd.f32 %v1647_v10, %v1472_v37 }
 0x317   : > { %v5276_v4 = vpop.permute.xlu1 %2707  ;;  %1944 = vrot.lane.b32.xlu0 %v1936_v13, %s3642_s28  ;;  %v2645_v13 = vmul.f32 %v2641_v12, %v3996_v43  ;;  %v5291_v35 = vmul.f32 %v2641_v12, %v3989_v39  ;;  %v1658_v58 = vadd.f32 %v1652_v3, %v1471_v48  ;;  %v2387_v34 = vrot.slane %v5266_v62, 4 }
 0x318   : > { %1942 = vrot.lane.b32.xlu1 %v1933_v60, %s3642_s28  ;;  %v1990_v24 = vpop.permute.xlu0 %1989  ;;  %v5297_v60 = vmul.f32 %v5698_v7, %v4313_v0  ;;  %v1865_v50 = vadd.f32 %v1859_v23, %v1708_v1  ;;  %v2389_v10 = vrot.slane %v5262_v2, 4  ;;  %v2390_v11 = vrot.slane %v2381_v55, 4 }
 0x319   : > { %v1864_v45 = vadd.f32 %v1856_v42, %v1707_v29  ;;  %v2466_v7 = vsel %vm2307_vm12, %v2464_v56, %v2465_v38  ;;  %v2652_v23 = vrot.slane %v2644_v15, 5  ;;  %v1826_v12 = vadd.f32 %v1820_v61, %v1659_v32 }
 0x31a   : > { %v1995_v37 = vsel %vm613_vm1, %v5111_v40, %v1990_v24  ;;  %v2469_v51 = vsel %vm2307_vm12, %v2467_v5, %v2468_v9  ;;  %v2656_v42 = vrot.slane %v5291_v35, 5  ;;  %v1825_v55 = vadd.f32 %v5196_v18, %v1658_v58  ;;  %v2906_v35 = vld [vmem:[%s5358_s27 + $0x88] sm:$0xff] }
 0x31b   : > { %v5299_v27 = vpop.permute.xlu1 %2756  ;;  %2132 = vrot.lane.b32.xlu0 %v2124_v30, %s3643_s29  ;;  %v2655_v30 = vrot.slane %v2645_v13, 5  ;;  %v2653_v3 = vrot.slane %v5297_v60, 5  ;;  %v2002_v61 = vadd.f32 %v1990_v24, %v1826_v12  ;;  %v2350_v48 = vrot.slane %v5215_v44, 4 }
 0x31c   : > { %2130 = vrot.lane.b32.xlu1 %v2121_v26, %s3643_s29  ;;  %v2178_v46 = vpop.permute.xlu0 %2177  ;;  %v5700_v26 = vld [vmem:[#allocation20_spill] sm:$0xff]  ;;  %v2351_v29 = vrot.slane %v5235_v31, 4  ;;  %v2001_v5 = vadd.f32 %v1995_v37, %v1825_v55  ;;  %v2391_v58 = vsel %vm2307_vm12, %v2389_v10, %v2390_v11  ;;  %v2399_v31 = vadd.f32 %v2390_v11, %v5080_v53  ;;  %v2889_v55 = vld [vmem:[%s5358_s27] sm:$0xff] }
 0x31d   : > { %v2036_v2 = vsel %vm1252_vm6, %v5700_v26, %v5699_v19  ;;  %v2183_v40 = vsel %vm1259_vm9, %v5134_v57, %v2178_v46  ;;  %v2042_v18 = vadd.f32 %v5700_v26, %v1864_v45  ;;  %v2190_v24 = vadd.f32 %v2178_v46, %v2002_v61 }
 0x31e   : > { %v2043_v56 = vadd.f32 %v2036_v2, %v1865_v50  ;;  %v2189_v13 = vadd.f32 %v2183_v40, %v2001_v5  ;;  %v2657_v44 = vsel %vm2553_vm11, %v2655_v30, %v2656_v42  ;;  %v2388_v45 = vsel %vm2307_vm12, %v2386_v20, %v2387_v34 }
 0x31f   : > { %v5324_v1 = vpop.permute.xlu1 %2523  ;;  %2472 = vrot.lane.b32.xlu0 %v2469_v51, %s3642_s28  ;;  %v2349_v53 = vsel %vm2307_vm12, %v2347_v36, %v2348_v21  ;;  %v2352_v20 = vsel %vm2307_vm12, %v2350_v48, %v2351_v29  ;;  %v2398_v16 = vadd.f32 %v2387_v34, %v5086_v25  ;;  %v2896_v48 = vld [vmem:[%s5358_s27 + $0x38] sm:$0xff]  ;;  %v2360_v62 = vadd.f32 %v2351_v29, %v4986_v52 }
 0x320   : > { %2470 = vrot.lane.b32.xlu1 %v2466_v7, %s3642_s28  ;;  %v2227_v15 = vpop.permute.xlu0 %2226  ;;  %v2357_v36 = vadd.f32 %v2349_v53, %v2189_v13  ;;  %v2900_v25 = vld [vmem:[%s5358_s27 + $0x58] sm:$0xff] }
 0x321   : > { %v2232_v57 = vsel %vm1259_vm9, %v5160_v47, %v2227_v15  ;;  %v2239_v32 = vadd.f32 %v2227_v15, %v2043_v56  ;;  %v2654_v47 = vsel %vm2553_vm11, %v2652_v23, %v2653_v3  ;;  %v2358_v23 = vadd.f32 %v2352_v20, %v2190_v24  ;;  %v2891_v56 = vld [vmem:[%s5358_s27 + $0x10] sm:$0xff]  ;;  %v2893_v15 = vld [vmem:[%s5358_s27 + $0x20] sm:$0xff] }
 0x322   : > { %v2238_v50 = vadd.f32 %v2232_v57, %v2042_v18  ;;  %v3495_v5 = vpack.c.bf16 %v2891_v56, %v2889_v55  ;;  %v3497_v18 = vpack.c.bf16 %v2896_v48, %v2894_v59  ;;  %v2895_v24 = vld [vmem:[%s5358_s27 + $0x30] sm:$0xff]  ;;  %v2898_v57 = vld [vmem:[%s5358_s27 + $0x48] sm:$0xff] }
 0x323   : > { %v2397_v7 = vadd.f32 %v2391_v58, %v2239_v32  ;;  %v2565_v46 = vpop.permute.xlu1 %2564  ;;  %2660 = vrot.lane.b32.xlu0 %v2657_v44, %s3643_s29  ;;  %v3499_v58 = vpack.c.bf16 %v2895_v24, %v2893_v15  ;;  %v3501_v29 = vpack.c.bf16 %v2900_v25, %v2898_v57  ;;  %v2907_v20 = vld [vmem:[%s5358_s27 + $0x90] sm:$0xff]  ;;  %v2918_v55 = vld [vmem:[%s5358_s27 + $0xe8] sm:$0xff] }
 0x324   : > { %v2396_v10 = vadd.f32 %v2388_v45, %v2238_v50  ;;  %v2569_v12 = vsel %vm1252_vm6, %v2565_v46, %v5116_v54  ;;  %2658 = vrot.lane.b32.xlu1 %v2654_v47, %s3643_s29  ;;  %v2522_v11 = vpop.permute.xlu0 %2521  ;;  %v2576_v32 = vadd.f32 %v2565_v46, %v2398_v16  ;;  %v2528_v50 = vsel %vm613_vm1, %v5324_v1, %v5105_v63  ;;  %v2902_v1 = vld [vmem:[%s5358_s27 + $0x68] sm:$0xff]  ;;  %v2904_v46 = vld [vmem:[%s5358_s27 + $0x78] sm:$0xff]  ;;  %v2919_v56 = vld [vmem:[%s5358_s27 + $0xf0] sm:$0xff] }
 0x325   : > { %v2577_v54 = vadd.f32 %v2569_v12, %v2399_v31  ;;  %v2527_v37 = vsel %vm613_vm1, %v5182_v49, %v2522_v11  ;;  %v5363_v28 = vadd.f32 %v5250_v8, %v2397_v7  ;;  %v2534_v30 = vadd.f32 %v2522_v11, %v2358_v23  ;;  %v2892_v8 = vld [vmem:[%s5358_s27 + $0x18] sm:$0xff]  ;;  %v2897_v31 = vld [vmem:[%s5358_s27 + $0x40] sm:$0xff]  ;;  %v2903_v12 = vld [vmem:[%s5358_s27 + $0x70] sm:$0xff] }
 0x326   : > { %v2574_v51 = vadd.f32 %v5237_v22, %v2396_v10  ;;  %v2533_v2 = vadd.f32 %v2527_v37, %v2357_v36  ;;  %v2890_v22 = vld [vmem:[%s5358_s27 + $0x8] sm:$0xff]  ;;  %v2359_v45 = vadd.f32 %v2348_v21, %v4988_v33  ;;  %v2536_v47 = vadd.f32 %v5105_v63, %v2360_v62  ;;  %v2901_v21 = vld [vmem:[%s5358_s27 + $0x60] sm:$0xff]  ;;  %v2920_v16 = vld [vmem:[%s5358_s27 + $0xf8] sm:$0xff] }
 0x327   : > { %v2712_v19 = vpop.permute.xlu1 %2711  ;;  %2476 = vrot.lane.b32.xlu0 %v2468_v9, %s3642_s28  ;;  %v5370_v26 = vadd.f32 %v5164_v14, %v2577_v54  ;;  %v3493_v40 = vpack.c.bf16 %v2892_v8, %v2890_v22  ;;  %v3505_v63 = vpack.c.bf16 %v2904_v46, %v2902_v1  ;;  %v3507_v60 = vpack.c.bf16 %v2903_v12, %v2901_v21  ;;  %v2910_v11 = vld [vmem:[%s5358_s27 + $0xa8] sm:$0xff]  ;;  %v2912_v54 = vld [vmem:[%s5358_s27 + $0xb8] sm:$0xff]  ;;  %v2909_v36 = vld [vmem:[%s5358_s27 + $0xa0] sm:$0xff] }
 0x328   : > { %2474 = vrot.lane.b32.xlu1 %v2465_v38, %s3642_s28  ;;  %v2710_v49 = vpop.permute.xlu0 %2709  ;;  %v2535_v10 = vadd.f32 %v2528_v50, %v2359_v45  ;;  %v2724_v6 = vadd.f32 %v5142_v41, %v2536_v47  ;;  %v3513_v37 = vpack.c.bf16 %v2912_v54, %v2910_v11  ;;  %v2913_v22 = vld [vmem:[%s5358_s27 + $0xc0] sm:$0xff]  ;;  %v2915_v8 = vld [vmem:[%s5358_s27 + $0xd0] sm:$0xff]  ;;  %v2922_v48 = vld [vmem:[%s5358_s27 + $0x108] sm:$0xff] }
 0x329   : > { %v2715_v9 = vsel %vm1259_vm9, %v5276_v4, %v2710_v49  ;;  %v2722_v61 = vadd.f32 %v2710_v49, %v2534_v30  ;;  %3494 = vmatprep.subr.bf16.mxu0 %v3493_v40  ;;  %v2914_v30 = vld [vmem:[%s5358_s27 + $0xc8] sm:$0xff]  ;;  %v2917_v40 = vld [vmem:[%s5358_s27 + $0xe0] sm:$0xff]  ;;  %v2923_v15 = vld [vmem:[%s5358_s27 + $0x110] sm:$0xff] }
 0x32a   : > { %v2721_v38 = vadd.f32 %v2715_v9, %v2533_v2  ;;  %3496 = vmatpush1.bf16.msra.mxu0 %v3495_v5  ;;  %v3519_v9 = vpack.c.bf16 %v2915_v8, %v2913_v22  ;;  %v3523_v59 = vpack.c.bf16 %v2919_v56, %v2917_v40  ;;  %v5704_v54 = vld [vmem:[#allocation11_spill] sm:$0xff] }
 0x32b   : > { %v2761_v13 = vpop.permute.xlu1 %2760  ;;  %2829 = vrot.lane.b32.xlu0 %v2722_v61, %s5688_s12  ;;  %3498 = vmatprep.subr.bf16.mxu0 %v3497_v18  ;;  %v3521_v61 = vpack.c.bf16 %v2920_v16, %v2918_v55  ;;  %v2921_v18 = vld [vmem:[%s5358_s27 + $0x100] sm:$0xff] }
 0x32c   : > { %v2765_v4 = vsel %vm1259_vm9, %v2761_v13, %v5164_v14  ;;  %2827 = vrot.lane.b32.xlu1 %v2721_v38, %s5688_s12  ;;  %v5395_v34 = vpop.permute.xlu0 %2758  ;;  %v2899_v14 = vld [vmem:[%s5358_s27 + $0x50] sm:$0xff]  ;;  %v2924_v38 = vld [vmem:[%s5358_s27 + $0x118] sm:$0xff]  ;;  %v3527_v24 = vpack.c.bf16 %v2923_v15, %v2921_v18 }
 0x32d   : > { %v5400_v44 = vadd.f32 %v2765_v4, %v2576_v32  ;;  %v2764_v52 = vsel %vm1259_vm9, %v5299_v27, %v5395_v34  ;;  %v2716_v27 = vsel %vm1259_vm9, %v2712_v19, %v5142_v41  ;;  %v3503_v33 = vpack.c.bf16 %v2899_v14, %v2897_v31  ;;  %v2916_v19 = vld [vmem:[%s5358_s27 + $0xd8] sm:$0xff] }
 0x32e   : > { %v5410_v7 = vadd.f32 %v2764_v52, %v2574_v51  ;;  %3500 = vmatpush1.bf16.msra.mxu0 %v3499_v58  ;;  %v2723_v53 = vadd.f32 %v2716_v27, %v2535_v10  ;;  %v2911_v51 = vld [vmem:[%s5358_s27 + $0xb0] sm:$0xff]  ;;  %v3517_v49 = vpack.c.bf16 %v2916_v19, %v2914_v30  ;;  %v3525_v5 = vpack.c.bf16 %v2924_v38, %v2922_v48  ;;  %v5705_v38 = vld [vmem:[#allocation6_spill] sm:$0xff] }
 0x32f   : > { %2664 = vrot.lane.b32.xlu0 %v2656_v42, %s3643_s29  ;;  %3502 = vmatprep.subr.bf16.mxu0 %v3501_v29  ;;  %v2908_v42 = vld [vmem:[%s5358_s27 + $0x98] sm:$0xff]  ;;  %v3515_v2 = vpack.c.bf16 %v2911_v51, %v2909_v36  ;;  %v2771_v57 = vadd.f32 %v5395_v34, %v5363_v28  ;;  %v2294_v18 = vrot.slane %v5704_v54, %v5705_v38 }
 0x330   : > { %2662 = vrot.lane.b32.xlu1 %v2653_v3, %s3643_s29  ;;  %v3509_v41 = vpack.c.bf16 %v2908_v42, %v2906_v35  ;;  %v2905_v3 = vld [vmem:[%s5358_s27 + $0x80] sm:$0xff]  ;;  %v5701_v42 = vld [vmem:[#allocation5_spill] sm:$0xff] }
 0x331   : > { %v3511_v23 = vpack.c.bf16 %v2907_v20, %v2905_v3  ;;  %v5703_v20 = vld [vmem:[#allocation3_spill] sm:$0xff] }
 0x332   : > { %3504 = vmatpush1.bf16.msra.mxu0 %v3503_v33 }
 0x333   : > { %2833 = vrot.lane.b32.xlu0 %v2724_v6, %s5688_s12  ;;  %3506 = vmatprep.subr.bf16.mxu0 %v3505_v63 }
 0x334   : > { %2831 = vrot.lane.b32.xlu1 %v2723_v53, %s5688_s12  ;;  %s3264_s12 = sshll.u32 %s5719_s17, 2 }
 0x335   : > { %s579_s25 = sadd.s32 %s3264_s12, %s5706_s24 }
 0x336   : > { %3508 = vmatpush1.bf16.msra.mxu0 %v3507_v60  ;;  %v5702_v60 = vld [vmem:[#allocation2_spill] sm:$0xff]  ;;  %s3266_s26 = sshll.u32 %s579_s25, 3 }
 0x337   : > { %3510 = vmatprep.subr.bf16.mxu0 %v3509_v41  ;;  %v1767_v41 = vrot.slane %v5702_v60, %v5701_v42  ;;  %v1270_v11 = vrot.slane %v5702_v60, %v5703_v20  ;;  %s581_s17 = scalar_lea.vmem %s5575_s11, %s3266_s26 }
 0x339   : > { %v1771_v36 = vmul.f32 %v1767_v41, %v3989_v39  ;;  %v1272_v51 = vmul.f32 %v1270_v11, %v3996_v43  ;;  %v1769_v30 = vmul.f32 %v1767_v41, %v3996_v43  ;;  %v1274_v56 = vmul.f32 %v1270_v11, %v3989_v39 }
 0x33a   : > { %3512 = vmatpush1.bf16.msra.mxu0 %v3511_v23  ;;  %v1763_v23 = vrot.slane %v5704_v54, %v5701_v42  ;;  %v2301_v42 = vmul.f32 %v2294_v18, %v4313_v0 }
 0x33b   : > { %3514 = vmatprep.subr.bf16.mxu0 %v3513_v37  ;;  %v1266_v37 = vrot.slane %v5704_v54, %v5703_v20  ;;  %v1780_v16 = vrot.slane %v1771_v36, 2  ;;  %v1779_v48 = vrot.slane %v1769_v30, 2 }
 0x33c   : > { %v1768_v22 = vmul.f32 %v1763_v23, %v4327_v17  ;;  %v1770_v8 = vmul.f32 %v1763_v23, %v4313_v0 }
 0x33d   : > { %v1271_v55 = vmul.f32 %v1266_v37, %v4327_v17 }
 0x33e   : > { %3516 = vmatpush1.bf16.msra.mxu0 %v3515_v2 }
 0x33f   : > { %3518 = vmatprep.subr.bf16.mxu0 %v3517_v49 }
 0x342   : > { %3520 = vmatpush1.bf16.msra.mxu0 %v3519_v9 }
 0x343   : > { %3522 = vmatprep.subr.bf16.mxu0 %v3521_v61 }
 0x346   : > { %3524 = vmatpush1.bf16.msra.mxu0 %v3523_v59 }
 0x347   : > { %3526 = vmatprep.subr.bf16.mxu0 %v3525_v5  ;;  %v2298_v5 = vrot.slane %v5702_v60, %v5705_v38 }
 0x34a   : > { %3528 = vmatpush1.bf16.msra.mxu0 %v3527_v24 }
 0x369   : > { %v2852_v32 = vpop.permute.xlu0 %2851 }
 0x36a   : > { %v2864_v13 = vadd.f32 %v2852_v32, %v2771_v57  ;;  %v2850_v25 = vpop.permute.xlu1 %2849  ;;  %v1776_v57 = vrot.slane %v1768_v22, 2 }
 0x36b   : > { %v2857_v62 = vsel %vm1261_vm10, %v2850_v25, %v2852_v32  ;;  %v1777_v32 = vrot.slane %v1770_v8, 2  ;;  %v1273_v25 = vmul.f32 %v1266_v37, %v4313_v0 }
 0x36c   : > { %v2863_v4 = vadd.f32 %v2857_v62, %v5410_v7  ;;  %2873 = vrot.lane.b32.xlu0 %v2864_v13, %s3643_s29  ;;  %v1781_v62 = vsel %vm1107_vm2, %v1779_v48, %v1780_v16 }
 0x36d   : > { %v2856_v58 = vpop.permute.xlu0 %2855 }
 0x36e   : > { %v2866_v50 = vadd.f32 %v2856_v58, %v5370_v26  ;;  %v2854_v52 = vpop.permute.xlu1 %2853  ;;  %2871 = vrot.lane.b32.xlu1 %v2863_v4, %s3643_s29  ;;  %v2302_v4 = vmul.f32 %v2298_v5, %v3989_v39 }
 0x36f   : > { %v2858_v29 = vsel %vm1261_vm10, %v2854_v52, %v2856_v58 }
 0x370   : > { %v2865_v31 = vadd.f32 %v2858_v29, %v5400_v44  ;;  %2877 = vrot.lane.b32.xlu0 %v2866_v50, %s3643_s29  ;;  %v2312_v41 = vrot.slane %v2302_v4, 4 }
 0x371   : > { %v1410_v28 = vpop.permute.xlu0 %1409 }
 0x372   : > { %2875 = vrot.lane.b32.xlu1 %v2865_v31, %s3643_s29  ;;  %v1408_v34 = vpop.permute.xlu1 %1407  ;;  %v1422_v2 = vadd.f32 %v1410_v28, %v1272_v51  ;;  %v2309_v51 = vrot.slane %v2301_v42, 4 }
 0x373   : > { %v1415_v49 = vsel %vm613_vm1, %v1408_v34, %v1410_v28  ;;  %v2300_v28 = vmul.f32 %v2298_v5, %v3996_v43  ;;  %v2299_v34 = vmul.f32 %v2294_v18, %v4327_v17 }
 0x374   : > { %v1421_v59 = vadd.f32 %v1415_v49, %v1271_v55 }
 0x375   : > { %v1598_v14 = vpop.permute.xlu0 %1597  ;;  %v2311_v23 = vrot.slane %v2300_v28, 4  ;;  %v2308_v36 = vrot.slane %v2299_v34, 4  ;;  %v3008_v28 = vld [vmem:[%s568_s14] sm:$0x3] }
 0x376   : > { %v1596_v45 = vpop.permute.xlu1 %1595  ;;  %v1610_v61 = vadd.f32 %v1598_v14, %v1422_v2  ;;  %v3024_v34 = vld [vmem:[%s572_s13] sm:$0x3] }
 0x377   : > { %v1603_v40 = vsel %vm1259_vm9, %v1596_v45, %v1598_v14  ;;  %v2310_v8 = vsel %vm2307_vm12, %v2308_v36, %v2309_v51 }
 0x378   : > { %v1609_v13 = vadd.f32 %v1603_v40, %v1421_v59  ;;  %v1787_v29 = vadd.f32 %v1781_v62, %v1610_v61 }
 0x379   : > { %v1414_v7 = vpop.permute.xlu0 %1413 }
 0x37a   : > { %v1412_v1 = vpop.permute.xlu1 %1411  ;;  %v1424_v15 = vadd.f32 %v1414_v7, %v1274_v56 }
 0x37b   : > { %v1416_v24 = vsel %vm613_vm1, %v1412_v1, %v1414_v7  ;;  %v1778_v7 = vsel %vm1107_vm2, %v1776_v57, %v1777_v32 }
 0x37c   : > { %v1423_v31 = vadd.f32 %v1416_v24, %v1273_v25  ;;  %v1786_v39 = vadd.f32 %v1778_v7, %v1609_v13 }
 0x37d   : > { %v1602_v46 = vpop.permute.xlu0 %1601 }
 0x37e   : > { %v1600_v47 = vpop.permute.xlu1 %1599  ;;  %v1612_v50 = vadd.f32 %v1602_v46, %v1424_v15 }
 0x37f   : > { %v1604_v52 = vsel %vm1259_vm9, %v1600_v47, %v1602_v46 }
 0x380   : > { %v1611_v60 = vadd.f32 %v1604_v52, %v1423_v31  ;;  %v1789_v47 = vadd.f32 %v1780_v16, %v1612_v50 }
 0x381   : > { %v1941_v26 = vpop.permute.xlu0 %1940 }
 0x382   : > { %v1939_v27 = vpop.permute.xlu1 %1938  ;;  %v1953_v45 = vadd.f32 %v1941_v26, %v1787_v29  ;;  %v1788_v2 = vadd.f32 %v1777_v32, %v1611_v60 }
 0x383   : > { %v1946_v1 = vsel %vm613_vm1, %v1939_v27, %v1941_v26  ;;  %v2313_v26 = vsel %vm2307_vm12, %v2311_v23, %v2312_v41 }
 0x384   : > { %v1952_v54 = vadd.f32 %v1946_v1, %v1786_v39  ;;  %v3029_v1 = vrot.slane %v3024_v34, %v5703_v20 }
 0x385   : > { %v2129_v10 = vpop.permute.xlu0 %2128 }
 0x386   : > { %v2127_v33 = vpop.permute.xlu1 %2126  ;;  %v2141_v11 = vadd.f32 %v2129_v10, %v1953_v45  ;;  %v5707_v45 = vld [vmem:[#allocation4_spill] sm:$0xff] }
 0x387   : > { %v2134_v46 = vsel %vm1259_vm9, %v2127_v33, %v2129_v10  ;;  %v3017_v7 = vrot.slane %v3008_v28, %v5707_v45  ;;  %v3033_v60 = vrot.slane %v3024_v34, %v5707_v45 }
 0x388   : > { %v2140_v30 = vadd.f32 %v2134_v46, %v1952_v54  ;;  %v2319_v33 = vadd.f32 %v2313_v26, %v2141_v11 }
 0x389   : > { %v1945_v6 = vpop.permute.xlu0 %1944 }
 0x38a   : > { %v1943_v63 = vpop.permute.xlu1 %1942  ;;  %v1955_v37 = vadd.f32 %v1945_v6, %v1789_v47  ;;  %v2318_v55 = vadd.f32 %v2310_v8, %v2140_v30 }
 0x38b   : > { %v1947_v17 = vsel %vm613_vm1, %v1943_v63, %v1945_v6 }
 0x38c   : > { %v1954_v49 = vadd.f32 %v1947_v17, %v1788_v2 }
 0x38d   : > { %v5459_v21 = vpop.permute.xlu0 %2132 }
 0x38e   : > { %v5461_v44 = vpop.permute.xlu1 %2130  ;;  %v2143_v27 = vadd.f32 %v5459_v21, %v1955_v37 }
 0x38f   : > { %v2135_v10 = vsel %vm1259_vm9, %v5461_v44, %v5459_v21 }
 0x390   : > { %v2142_v63 = vadd.f32 %v2135_v10, %v1954_v49  ;;  %v2321_v21 = vadd.f32 %v2312_v41, %v2143_v27 }
 0x391   : > { %v5463_v12 = vpop.permute.xlu0 %2472 }
 0x392   : > { %v5465_v53 = vpop.permute.xlu1 %2470  ;;  %v2485_v22 = vadd.f32 %v5463_v12, %v2319_v33  ;;  %v2320_v5 = vadd.f32 %v2309_v51, %v2142_v63 }
 0x393   : > { %v2478_v6 = vsel %vm613_vm1, %v5465_v53, %v5463_v12 }
 0x394   : > { %v2484_v44 = vadd.f32 %v2478_v6, %v2318_v55 }
 0x395   : > { %v5467_v35 = vpop.permute.xlu0 %2660 }
 0x396   : > { %v5471_v3 = vpop.permute.xlu1 %2658  ;;  %v2673_v61 = vadd.f32 %v5467_v35, %v2485_v22 }
 0x397   : > { %v2666_v40 = vsel %vm1259_vm9, %v5471_v3, %v5467_v35 }
 0x398   : > { %v2672_v53 = vadd.f32 %v2666_v40, %v2484_v44 }
 0x399   : > { %v5482_v19 = vpop.permute.xlu0 %2476 }
 0x39a   : > { %v2475_v9 = vpop.permute.xlu1 %2474  ;;  %v2487_v59 = vadd.f32 %v5482_v19, %v2321_v21 }
 0x39b   : > { %v2479_v48 = vsel %vm613_vm1, %v2475_v9, %v5482_v19 }
 0x39c   : > { %v2486_v32 = vadd.f32 %v2479_v48, %v2320_v5 }
 0x39d   : > { %v2830_v58 = vpop.permute.xlu0 %2829 }
 0x39e   : > { %v2828_v14 = vpop.permute.xlu1 %2827  ;;  %v2842_v38 = vadd.f32 %v2830_v58, %v2673_v61 }
 0x39f   : > { %v2835_v12 = vsel %vm1261_vm10, %v2828_v14, %v2830_v58  ;;  %v3013_v14 = vrot.slane %v3008_v28, %v5703_v20 }
 0x3a0   : > { %v2841_v35 = vadd.f32 %v2835_v12, %v2672_v53 }
 0x3a1   : > { %v2665_v43 = vpop.permute.xlu0 %2664 }
 0x3a2   : > { %v2663_v0 = vpop.permute.xlu1 %2662  ;;  %v2675_v15 = vadd.f32 %v2665_v43, %v2487_v59 }
 0x3a3   : > { %v2667_v24 = vsel %vm1259_vm9, %v2663_v0, %v2665_v43 }
 0x3a4   : > { %v2674_v9 = vadd.f32 %v2667_v24, %v2486_v32 }
 0x3a5   : > { %v2834_v16 = vpop.permute.xlu0 %2833 }
 0x3a6   : > { %v2832_v56 = vpop.permute.xlu1 %2831  ;;  %v2844_v13 = vadd.f32 %v2834_v16, %v2675_v15 }
 0x3a7   : > { %v2836_v25 = vsel %vm1261_vm10, %v2832_v56, %v2834_v16 }
 0x3a8   : > { %v2843_v50 = vadd.f32 %v2836_v25, %v2674_v9 }
 0x3de   : > { %v2874_v18 = vpop.permute.xlu0 %2873 }
 0x3df   : > { %v2886_v57 = vadd.f32 %v2874_v18, %v2842_v38 }
 0x3e0   : > { %v2872_v3 = vpop.permute.xlu1 %2871 }
 0x3e1   : > { %v2879_v19 = vsel %vm1259_vm9, %v2872_v3, %v2874_v18  ;;  %3272 = vmatprep.mubr.msk.f32.mxu0 %vm1250_vm5, %v2886_v57 }
 0x3e2   : > { %v2885_v62 = vadd.f32 %v2879_v19, %v2841_v35  ;;  %v2878_v4 = vpop.permute.xlu0 %2877 }
 0x3e3   : > { %v2888_v58 = vadd.f32 %v2878_v4, %v2844_v13 }
 0x3e4   : > { %v2876_v52 = vpop.permute.xlu1 %2875  ;;  %2996 = vmatmul.mubr.f32.vlgmr.msra.gmra.mrb[2].mxu0 %v2885_v62 }
 0x3e5   : > { %v2880_v29 = vsel %vm1259_vm9, %v2876_v52, %v2878_v4  ;;  %3273 = vmatprep.mubr.msk.f32.mxu0 %vm1250_vm5, %v2888_v58 }
 0x3e6   : > { %v2887_v31 = vadd.f32 %v2880_v29, %v2843_v50 }
 0x3e8   : > { %3002 = vmatmul.mubr.f32.gmra.mrb[4].mxu0 %v2887_v31 }
 0x4b7   : > { %v2997_v42 = vpop.f32.mrb[2].mxu0 }
 0x4b8   : > { %v3020_v39 = vmul.f32 %v3013_v14, %v2997_v42  ;;  %v2999_v41 = vpop.f32.mrb[3].mxu0 }
 0x4b9   : > { %v3021_v11 = vmul.f32 %v3017_v7, %v2999_v41 }
 0x4ba   : > { %v3036_v46 = vadd.f32 %v3029_v1, %v3020_v39 }
 0x4bb   : > { %v3037_v47 = vadd.f32 %v3033_v60, %v3021_v11  ;;  %v3003_v54 = vpop.f32.mrb[4].mxu0 }
 0x4bc   : > { %v3040_v23 = vmax.f32 %v3036_v46, 0.0  ;;  %v3022_v43 = vmul.f32 %v3013_v14, %v3003_v54  ;;  %v3005_v37 = vpop.f32.mrb[5].mxu0 }
 0x4bd   : > { %v3041_v17 = vmax.f32 %v3037_v47, 0.0  ;;  %v3023_v36 = vmul.f32 %v3017_v7, %v3005_v37 }
 0x4be   : > { %3044 = vst [vmem:[%s581_s17] sm:$0xff] %v3040_v23  ;;  %v3038_v20 = vadd.f32 %v3029_v1, %v3022_v43 }
 0x4bf   : > { %3045 = vst.msk [vmem:[%s581_s17 + $0x8] sm:$0xff] %vm1250_vm5, %v3041_v17  ;;  %v3039_v51 = vadd.f32 %v3033_v60, %v3023_v36 }
 0x4c0   : > { %v3042_v30 = vmax.f32 %v3038_v20, 0.0 }
 0x4c1   : > { %v3043_v2 = vmax.f32 %v3039_v51, 0.0 }
 0x4c2   : > { %3046 = vst [vmem:[%s581_s17 + $0x10] sm:$0x1] %v3042_v30 }
 0x4c3   : > { %3048 = vst.msk [vmem:[%s581_s17 + $0x18] sm:$0x1] %vm3047_vm13, %v3043_v2 }
 0x4c4 PF: > { %s21_s21 = sadd.s32 1, %s3632_s21   ;;  %s5708_s17 = smov %s3624_s19 }
 0x4c5   : > { %p18_p7 = scmp.ge.s32.totalorder %s21_s21, 6   ;;  %s5709_s18 = smov %s3628_s20 }
 0x4c6   : > { %s5710_s19 = smov %s5713_s22  ;;  %s5711_s20 = smov %s5717_s23 }
 0x4c7   :  { %20 = sbr.rel (!%p18_p7) target bundleno = 3 (0x3), region = 124 }

</bundles_post_ra>
